<compile_context>
chip_gen: v5e
topology: v5e:2x2
jax: 0.10.0
libtpu: 0.0.40
codegen_flags: <defaults>
</compile_context>

<pallas_src>
import numpy as np
import jax
import jax.numpy as jnp
from jax import lax
from jax.experimental import pallas as pl
from jax.experimental.pallas import tpu as pltpu


# ---------------------------------------------------------------------------
# Static trace-time helpers (numpy)
# ---------------------------------------------------------------------------
def _halo_masks(H, W, dilation):
    """(8, H*W) f32 validity masks for the 8 non-center 3x3 taps.

    Order: dy-major then dx over (-d, 0, d), center skipped — must match the
    tap order inside `_dw3x3`.  Precomputed so the kernel does no per-tap
    integer compares / iota work on the VPU.
    """
    L = H * W
    hh = np.arange(L) // W
    ww = np.arange(L) % W
    offs = (-dilation, 0, dilation)
    rows = []
    for dy in offs:
        for dx in offs:
            if dy == 0 and dx == 0:
                continue
            valid = ((hh + dy >= 0) & (hh + dy < H) &
                     (ww + dx >= 0) & (ww + dx < W)).astype(np.float32)
            rows.append(valid)
    return jnp.asarray(np.stack(rows, axis=0))


def _get_idx(h, w):
    """torch-style frequency sorting index (static, computed in numpy)."""
    l2 = np.arange(w).reshape(1, -1)
    up = np.arange(h // 2).reshape(-1, 1) @ l2
    dn = np.arange(h - h // 2)[::-1].reshape(-1, 1) @ l2
    m = np.concatenate([up, dn], axis=0).reshape(-1)
    # TODO(synk): torch.argsort is not stable; ties may be ordered differently,
    # but any fixed permutation keeps the gather/scatter pair consistent.
    idx = np.argsort(m, kind="stable")
    inv = np.argsort(idx, kind="stable")
    return jnp.asarray(idx, jnp.int32), jnp.asarray(inv, jnp.int32)


# ---------------------------------------------------------------------------
# In-kernel building blocks (traced python, shared between kernels)
# ---------------------------------------------------------------------------
def _layernorm_c(x, w, b, eps=1e-5):
    """Channel LayerNorm on a channels-major (c, L) slab.  f32 statistics."""
    mu = jnp.mean(x, axis=0, keepdims=True)
    xc = x - mu
    var = jnp.mean(xc * xc, axis=0, keepdims=True)
    return xc * lax.rsqrt(var + eps) * w + b


def _dw3x3(y, dw, m_ref, H, W, L, dilation):
    """Depthwise 3x3 ("same") on a (c, L=H*W) slab.

    Halo handled with lane rolls (XLU) and precomputed masks; center tap seeds
    the accumulator (no roll / no mask).  dw: (c, 9) f32, m_ref: (8, L) f32 ref.
    """
    offs = (-dilation, 0, dilation)
    acc = y * dw[:, 4:5]                                  # center tap
    mi = 0
    for ti, dy in enumerate(offs):
        for tj, dx in enumerate(offs):
            if dy == 0 and dx == 0:
                continue
            t = ti * 3 + tj
            s = dy * W + dx
            shifted = pltpu.roll(y, shift=(-s) % L, axis=1)
            acc = acc + (shifted * dw[:, t:t + 1]) * m_ref[mi:mi + 1, :]
            mi += 1
    return acc


# ---------------------------------------------------------------------------
# Pallas kernels
# ---------------------------------------------------------------------------
def _make_ln_pw_dw_kernel(H, W, L, dilation):
    """Fused LayerNorm(channel) -> 1x1 conv (MXU, bf16) -> depthwise 3x3."""
    def kernel(x_ref, lnw_ref, lnb_ref, pw_ref, dww_ref, m_ref, o_ref):
        xn = _layernorm_c(x_ref[0].astype(jnp.float32), lnw_ref[...], lnb_ref[...])
        y = jnp.dot(pw_ref[...], xn.astype(jnp.bfloat16),
                    preferred_element_type=jnp.float32)   # (c_out, L)
        acc = _dw3x3(y, dww_ref[...].astype(jnp.float32), m_ref, H, W, L, dilation)
        o_ref[0] = acc.astype(o_ref.dtype)
    return kernel


def ln_pw_dw(x_flat, ln_w, ln_b, pw_w, dw_w, masks, H, W, dilation):
    """x_flat: (B, c_in, H*W) f32 -> (B, c_out, H*W) f32.  pw_w is bf16."""
    B, c_in, L = x_flat.shape
    c_out = pw_w.shape[0]
    return pl.pallas_call(
        _make_ln_pw_dw_kernel(H, W, L, dilation),
        out_shape=jax.ShapeDtypeStruct((B, c_out, L), jnp.float32),
        grid=(B,),
        in_specs=[
            pl.BlockSpec((1, c_in, L), lambda b: (b, 0, 0)),
            pl.BlockSpec((c_in, 1), lambda b: (0, 0)),
            pl.BlockSpec((c_in, 1), lambda b: (0, 0)),
            pl.BlockSpec((c_out, c_in), lambda b: (0, 0)),
            pl.BlockSpec((c_out, 9), lambda b: (0, 0)),
            pl.BlockSpec((8, L), lambda b: (0, 0)),
        ],
        out_specs=pl.BlockSpec((1, c_out, L), lambda b: (b, 0, 0)),
        compiler_params=pltpu.CompilerParams(dimension_semantics=("parallel",)),
    )(x_flat, ln_w, ln_b, pw_w, dw_w, masks)


def _make_attn_kernel(nh):
    """Per batch element: all heads.  L2-normalize, q@k^T * temperature,
    max-shifted softmax_1, @v.  bf16 MXU operands, f32 everything else."""
    def kernel(q_ref, k_ref, v_ref, t_ref, o_ref):
        for h in range(nh):
            q = q_ref[0, h].astype(jnp.float32)          # (M, S)
            k = k_ref[0, h].astype(jnp.float32)
            qn = q * lax.rsqrt(jnp.maximum(jnp.sum(q * q, -1, keepdims=True), 1e-24))
            kn = k * lax.rsqrt(jnp.maximum(jnp.sum(k * k, -1, keepdims=True), 1e-24))
            a = lax.dot_general(qn.astype(jnp.bfloat16), kn.astype(jnp.bfloat16),
                                (((1,), (1,)), ((), ())),
                                preferred_element_type=jnp.float32)   # (M, M)
            a = a * t_ref[h]                             # temperature[head] (SMEM)
            # softmax_1 == e^a / (sum e^a + 1); shift by m >= 0 so exp never
            # overflows regardless of the learned temperature.
            m = jnp.maximum(jnp.max(a, -1, keepdims=True), 0.0)
            e = jnp.exp(a - m)
            p = e * pl.reciprocal(jnp.sum(e, -1, keepdims=True) + jnp.exp(-m),
                                  approx=True)
            out = jnp.dot(p.astype(jnp.bfloat16), v_ref[0, h],
                          preferred_element_type=jnp.float32)         # (M, S)
            o_ref[0, h] = out.astype(o_ref.dtype)
    return kernel


def attn_core(q, k, v, temperature):
    """q/k/v: (B, nh, M, S) bf16, S a multiple of 128; temperature: (nh,) f32."""
    B, nh, M, S = q.shape
    spec = pl.BlockSpec((1, nh, M, S), lambda b: (b, 0, 0, 0))
    return pl.pallas_call(
        _make_attn_kernel(nh),
        out_shape=jax.ShapeDtypeStruct((B, nh, M, S), jnp.float32),
        grid=(B,),
        in_specs=[spec, spec, spec,
                  pl.BlockSpec(memory_space=pltpu.MemorySpace.SMEM)],
        out_specs=spec,
        compiler_params=pltpu.CompilerParams(dimension_semantics=("parallel",)),
    )(q, k, v, temperature)


def _make_attn_out_ffn_in_kernel(H, W, L, dilation):
    """Fused: x = res + W_out @ o  (residual + attn projection)
              y = dw3x3_dilated(W_ffn_in @ LayerNorm(x))."""
    def kernel(res_ref, o_ref, wout_ref, lnw_ref, lnb_ref, wffn_ref, dww_ref,
               m_ref, x_out_ref, y_out_ref):
        x = res_ref[0].astype(jnp.float32) + jnp.dot(
            wout_ref[...], o_ref[0], preferred_element_type=jnp.float32)  # (C, L)
        x_out_ref[0] = x.astype(x_out_ref.dtype)
        xn = _layernorm_c(x, lnw_ref[...], lnb_ref[...])
        y = jnp.dot(wffn_ref[...], xn.astype(jnp.bfloat16),
                    preferred_element_type=jnp.float32)                   # (2h, L)
        acc = _dw3x3(y, dww_ref[...].astype(jnp.float32), m_ref, H, W, L, dilation)
        y_out_ref[0] = acc.astype(y_out_ref.dtype)
    return kernel


def attn_out_ffn_in(res, o_bf16, w_out, ln_w, ln_b, w_ffn, dw_w, masks, H, W,
                    dilation):
    """res: (B,C,L) f32, o: (B,C,L) bf16 -> (x_new (B,C,L) f32, y (B,2h,L) f32)."""
    B, C, L = res.shape
    hid2 = w_ffn.shape[0]
    return pl.pallas_call(
        _make_attn_out_ffn_in_kernel(H, W, L, dilation),
        out_shape=(jax.ShapeDtypeStruct((B, C, L), res.dtype),
                   jax.ShapeDtypeStruct((B, hid2, L), jnp.float32)),
        grid=(B,),
        in_specs=[
            pl.BlockSpec((1, C, L), lambda b: (b, 0, 0)),      # res (aliased)
            pl.BlockSpec((1, C, L), lambda b: (b, 0, 0)),      # attn out (bf16)
            pl.BlockSpec((C, C), lambda b: (0, 0)),            # w_attn_out (bf16)
            pl.BlockSpec((C, 1), lambda b: (0, 0)),            # ln2 weight
            pl.BlockSpec((C, 1), lambda b: (0, 0)),            # ln2 bias
            pl.BlockSpec((hid2, C), lambda b: (0, 0)),         # w_ffn_in (bf16)
            pl.BlockSpec((hid2, 9), lambda b: (0, 0)),         # dw taps
            pl.BlockSpec((8, L), lambda b: (0, 0)),            # halo masks
        ],
        out_specs=(pl.BlockSpec((1, C, L), lambda b: (b, 0, 0)),
                   pl.BlockSpec((1, hid2, L), lambda b: (b, 0, 0))),
        input_output_aliases={0: 0},
        compiler_params=pltpu.CompilerParams(dimension_semantics=("parallel",)),
    )(res, o_bf16, w_out, ln_w, ln_b, w_ffn, dw_w, masks)


def _make_ffn_out_kernel(hidden):
    def kernel(res_ref, y_ref, w_ref, o_ref):
        y = y_ref[0].astype(jnp.float32)                       # (2*hidden, TL)
        x1 = y[:hidden]
        x2 = y[hidden:]
        g = x1 * (1.0 / (1.0 + jnp.exp(-x1))) * x2             # SiLU(x1) * x2
        out = jnp.dot(w_ref[...], g.astype(jnp.bfloat16),
                      preferred_element_type=jnp.float32)      # (C, TL)
        o_ref[0] = (res_ref[0].astype(jnp.float32) + out).astype(o_ref.dtype)
    return kernel


def _choose_tl(L):
    for cand in (8192, 4096, 2048, 1024, 512, 256, 128):
        if cand <= L and L % cand == 0:
            return cand
    return L


def ffn_out(res, y_bf16, w):
    """res + W @ (silu(y1)*y2), L-tiled.  res: (B,C,L) f32, y: (B,2h,L) bf16."""
    B, C, L = res.shape
    hid2 = y_bf16.shape[1]
    hidden = w.shape[1]
    TL = _choose_tl(L)
    return pl.pallas_call(
        _make_ffn_out_kernel(hidden),
        out_shape=jax.ShapeDtypeStruct((B, C, L), res.dtype),
        grid=(B, L // TL),
        in_specs=[
            pl.BlockSpec((1, C, TL), lambda b, l: (b, 0, l)),
            pl.BlockSpec((1, hid2, TL), lambda b, l: (b, 0, l)),
            pl.BlockSpec((C, hidden), lambda b, l: (0, 0)),
        ],
        out_specs=pl.BlockSpec((1, C, TL), lambda b, l: (b, 0, l)),
        input_output_aliases={0: 0},
        compiler_params=pltpu.CompilerParams(
            dimension_semantics=("parallel", "parallel")),
    )(res, y_bf16, w)


# ---------------------------------------------------------------------------
# Pure-JAX reference blocks (same math, incl. bf16 MXU-operand casts) for
# in-script validation.
# ---------------------------------------------------------------------------
def _ref_ln_pw_dw(x_flat, ln_w, ln_b, pw_w, dw_w, H, W, dilation):
    B, c_in, L = x_flat.shape
    mu = jnp.mean(x_flat, axis=1, keepdims=True)
    var = jnp.mean((x_flat - mu) ** 2, axis=1, keepdims=True)
    xn = (x_flat - mu) * lax.rsqrt(var + 1e-5) * ln_w[None] + ln_b[None]
    y = jnp.einsum("oc,bcl->bol", pw_w, xn.astype(jnp.bfloat16),
                   preferred_element_type=jnp.float32)
    c_out = pw_w.shape[0]
    y4 = lax.conv_general_dilated(
        y.reshape(B, c_out, H, W), dw_w.reshape(c_out, 1, 3, 3),
        window_strides=(1, 1),
        padding=[(dilation, dilation), (dilation, dilation)],
        rhs_dilation=(dilation, dilation),
        dimension_numbers=("NCHW", "OIHW", "NCHW"),
        feature_group_count=c_out, precision="highest")
    return y4.reshape(B, c_out, L)


def _ref_attn_core(q, k, v, temperature):
    q = q.astype(jnp.float32)
    k = k.astype(jnp.float32)
    qn = q * lax.rsqrt(jnp.maximum(jnp.sum(q * q, -1, keepdims=True), 1e-24))
    kn = k * lax.rsqrt(jnp.maximum(jnp.sum(k * k, -1, keepdims=True), 1e-24))
    a = jnp.einsum("bhms,bhns->bhmn", qn.astype(jnp.bfloat16),
                   kn.astype(jnp.bfloat16), preferred_element_type=jnp.float32)
    a = a * temperature[None, :, None, None]
    e = jnp.exp(a)
    p = e / (jnp.sum(e, -1, keepdims=True) + 1.0)
    return jnp.einsum("bhmn,bhns->bhms", p.astype(jnp.bfloat16),
                      v.astype(jnp.bfloat16), preferred_element_type=jnp.float32)


def _ref_attn_out_ffn_in(res, o_bf16, w_out, ln_w, ln_b, w_ffn, dw_w, H, W,
                         dilation):
    x = res + jnp.einsum("oc,bcl->bol", w_out, o_bf16,
                         preferred_element_type=jnp.float32)
    y = _ref_ln_pw_dw(x, ln_w, ln_b, w_ffn, dw_w, H, W, dilation)
    return x, y


def _ref_ffn_out(res, y_bf16, w):
    hidden = w.shape[1]
    y = y_bf16.astype(jnp.float32)
    x1, x2 = y[:, :hidden], y[:, hidden:]
    g = x1 * (1.0 / (1.0 + jnp.exp(-x1))) * x2
    return res + jnp.einsum("oc,bcl->bol", w, g.astype(jnp.bfloat16),
                            preferred_element_type=jnp.float32)


# ---------------------------------------------------------------------------
# TransformerBlock forward (FFT / permutation glue in XLA, compute in Pallas).
# ---------------------------------------------------------------------------
def transformer_block_forward(x, p, num_heads, use_pallas=True):
    """x: (B, C, H, W) NCHW, like the PyTorch module."""
    B, C, H, W = x.shape
    L = H * W
    factor = 2
    x_flat = x.reshape(B, C, L)

    # bf16 copies of the MXU weights (activations are cast at the dot).
    w_qkv = p["w_qkv"].astype(jnp.bfloat16)
    w_attn_out = p["w_attn_out"].astype(jnp.bfloat16)
    w_ffn_in = p["w_ffn_in"].astype(jnp.bfloat16)
    w_ffn_out = p["w_ffn_out"].astype(jnp.bfloat16)

    masks1 = _halo_masks(H, W, 1)
    masks2 = _halo_masks(H, W, 2)

    # ---------------- attention branch: x = x + attn(norm1(x)) --------------
    if use_pallas:
        qkv = ln_pw_dw(x_flat, p["ln1_w"], p["ln1_b"], w_qkv, p["dw_qkv"],
                       masks1, H, W, dilation=1)
    else:
        qkv = _ref_ln_pw_dw(x_flat, p["ln1_w"], p["ln1_b"], w_qkv, p["dw_qkv"],
                            H, W, dilation=1)
    qkv4 = qkv.reshape(B, 3 * C, H, W)

    Wp = -(-W // 2) * 2                       # pad width to a multiple of 2
    if Wp != W:
        qkv4 = jnp.pad(qkv4, ((0, 0), (0, 0), (0, 0), (0, Wp - W)))
    Fq = jnp.fft.rfft2(qkv4, norm="ortho")    # (B, 3C, H, Wr)
    Wr = Fq.shape[-1]
    idx, inv_idx = _get_idx(H, Wr)

    def fft_pack(t):                          # complex (B,C,H,Wr) -> real (B,2C,H*Wr)
        r = jnp.concatenate([t.real, t.imag], axis=1)
        return r.reshape(B, 2 * C, H * Wr)[..., idx]

    q = fft_pack(Fq[:, 0 * C:1 * C])
    k = fft_pack(Fq[:, 1 * C:2 * C])
    v = fft_pack(Fq[:, 2 * C:3 * C])

    Lf = H * Wr
    Lp = -(-Lf // factor) * factor            # pad length to a multiple of factor
    if Lp != Lf:
        padw = ((0, 0), (0, 0), (0, Lp - Lf))
        q, k, v = jnp.pad(q, padw), jnp.pad(k, padw), jnp.pad(v, padw)

    cph = (2 * C) // num_heads
    hw = Lp // factor

    def to_heads(t):   # 'b (head c) (factor hw) -> b head (c factor) hw'
        return t.reshape(B, num_heads, cph, factor, hw).reshape(
            B, num_heads, cph * factor, hw)

    qh = to_heads(q).astype(jnp.bfloat16)
    kh = to_heads(k).astype(jnp.bfloat16)
    vh = to_heads(v).astype(jnp.bfloat16)

    if use_pallas:
        # Zero-pad S (= hw) to a multiple of 128 for lane-dense matmuls/stores.
        # Padding after the factor split keeps the reference semantics intact.
        Spad = -(-hw // 128) * 128
        if Spad != hw:
            padw = ((0, 0), (0, 0), (0, 0), (0, Spad - hw))
            qh, kh, vh = jnp.pad(qh, padw), jnp.pad(kh, padw), jnp.pad(vh, padw)
        oh = attn_core(qh, kh, vh, p["temperature"])[..., :hw]
    else:
        oh = _ref_attn_core(qh, kh, vh, p["temperature"])

    o = oh.reshape(B, num_heads, cph, factor, hw).reshape(B, 2 * C, Lp)
    o = o[..., :Lf]                           # undo factor pad
    o = o[..., inv_idx]                       # scatter back (inverse permutation)
    o = o.reshape(B, 2 * C, H, Wr)
    o = o[:, :C] + 1j * o[:, C:]              # real2comp
    o = jnp.fft.irfft2(o, norm="ortho")       # (B, C, H, Wp)
    o = o[..., :W].reshape(B, C, L).astype(jnp.bfloat16)

    # ------- fused: x = x + project_out(o);  y = dw(project_in(norm2(x))) ---
    hidden = p["w_ffn_out"].shape[1]
    if use_pallas:
        x_flat, y = attn_out_ffn_in(x_flat, o, w_attn_out, p["ln2_w"], p["ln2_b"],
                                    w_ffn_in, p["dw_ffn"], masks2, H, W, dilation=2)
    else:
        x_flat, y = _ref_attn_out_ffn_in(x_flat, o, w_attn_out, p["ln2_w"],
                                         p["ln2_b"], w_ffn_in, p["dw_ffn"],
                                         H, W, dilation=2)

    # FFN FFT channel modulation (XLA): real weight * complex + real bias,
    # matching the PyTorch broadcast semantics (bias added to the real part).
    y4 = y.reshape(B, 2 * hidden, H, W)
    if Wp != W:
        y4 = jnp.pad(y4, ((0, 0), (0, 0), (0, 0), (0, Wp - W)))
    Yf = jnp.fft.rfft2(y4)                    # default norm, like torch
    Yf = p["fft_w"] * Yf + p["fft_b"]
    y4 = jnp.fft.irfft2(Yf)[..., :W]          # (B, 2*hidden, H, W)
    y = y4.reshape(B, 2 * hidden, L).astype(jnp.bfloat16)

    if use_pallas:
        x_flat = ffn_out(x_flat, y, w_ffn_out)
    else:
        x_flat = _ref_ffn_out(x_flat, y, w_ffn_out)

    return x_flat.reshape(B, C, H, W)


# ---------------------------------------------------------------------------
if __name__ == "__main__":
    B, dim, H, W = 2, 4, 16, 16
    num_heads = 2
    ffn_expansion_factor = 2.0                     # bias=False, LayerNorm='WithBias'
    hidden = int(dim * ffn_expansion_factor)

    key = jax.random.PRNGKey(0)
    ks = jax.random.split(key, 10)

    params = {
        "ln1_w": jnp.ones((dim, 1), jnp.float32),
        "ln1_b": jnp.zeros((dim, 1), jnp.float32),
        "w_qkv": 0.2 * jax.random.normal(ks[0], (3 * dim, dim), jnp.float32),
        "dw_qkv": 0.2 * jax.random.normal(ks[1], (3 * dim, 9), jnp.float32),
        "temperature": jnp.ones((num_heads,), jnp.float32),
        "w_attn_out": 0.2 * jax.random.normal(ks[2], (dim, dim), jnp.float32),
        "ln2_w": jnp.ones((dim, 1), jnp.float32),
        "ln2_b": jnp.zeros((dim, 1), jnp.float32),
        "w_ffn_in": 0.2 * jax.random.normal(ks[3], (2 * hidden, dim), jnp.float32),
        "dw_ffn": 0.2 * jax.random.normal(ks[4], (2 * hidden, 9), jnp.float32),
        "fft_w": jax.random.normal(ks[5], (1, 2 * hidden, 1, 1), jnp.float32),
        "fft_b": jax.random.normal(ks[6], (1, 2 * hidden, 1, 1), jnp.float32),
        "w_ffn_out": 0.2 * jax.random.normal(ks[7], (dim, hidden), jnp.float32),
    }

    x = jax.random.normal(ks[8], (B, dim, H, W), jnp.float32)

    fwd = jax.jit(lambda xx: transformer_block_forward(xx, params, num_heads, True))
    out = jax.block_until_ready(fwd(x))

    ref_fwd = jax.jit(lambda xx: transformer_block_forward(xx, params, num_heads, False))
    ref = jax.block_until_ready(ref_fwd(x))

    assert out.shape == (B, dim, H, W), out.shape
    assert bool(jnp.all(jnp.isfinite(out)))
    # Both paths use bf16 MXU operands with f32 accumulation; tolerance covers
    # MXU vs XLA accumulation-order and approx-reciprocal differences only.
    assert jnp.allclose(out, ref, atol=2e-2, rtol=2e-2), \
        float(jnp.max(jnp.abs(out - ref)))

    print("KERNEL_OK")
</pallas_src>

<mosaic_0001>
module attributes {stable_mosaic.version = 11 : i64} {
  func.func @kernel(%arg0: i32, %arg1: memref<1x4x256xf32, #tpu.memory_space<vmem>>, %arg2: memref<4x1xf32, #tpu.memory_space<vmem>>, %arg3: memref<4x1xf32, #tpu.memory_space<vmem>>, %arg4: memref<12x4xbf16, #tpu.memory_space<vmem>>, %arg5: memref<12x9xf32, #tpu.memory_space<vmem>>, %arg6: memref<8x256xf32, #tpu.memory_space<vmem>>, %arg7: memref<1x12x256xf32, #tpu.memory_space<vmem>>) attributes {dimension_semantics = [#tpu.dimension_semantics<parallel>], iteration_bounds = array<i64: 2>, scalar_prefetch = 0 : i64, scratch_operands = 0 : i64, tpu.core_type = #tpu.core_type<tc>, window_params = [{transform_indices = @transform_0, window_bounds = array<i64: 1, 4, 256>}, {pipeline_mode = #tpu.pipeline_mode<synchronous>, transform_indices = @transform_1, window_bounds = array<i64: 4, 1>}, {pipeline_mode = #tpu.pipeline_mode<synchronous>, transform_indices = @transform_2, window_bounds = array<i64: 4, 1>}, {pipeline_mode = #tpu.pipeline_mode<synchronous>, transform_indices = @transform_3, window_bounds = array<i64: 12, 4>}, {pipeline_mode = #tpu.pipeline_mode<synchronous>, transform_indices = @transform_4, window_bounds = array<i64: 12, 9>}, {pipeline_mode = #tpu.pipeline_mode<synchronous>, transform_indices = @transform_5, window_bounds = array<i64: 8, 256>}, {transform_indices = @transform_6, window_bounds = array<i64: 1, 12, 256>}]} {
    %c0 = arith.constant 0 : index
    %c0_0 = arith.constant 0 : index
    %c0_1 = arith.constant 0 : index
    %0 = vector.load %arg1[%c0, %c0_0, %c0_1] : memref<1x4x256xf32, #tpu.memory_space<vmem>>, vector<1x4x256xf32>
    %1 = vector.shape_cast %0 : vector<1x4x256xf32> to vector<4x256xf32>
    %c0_2 = arith.constant 0 : index
    %c0_3 = arith.constant 0 : index
    %2 = vector.load %arg2[%c0_2, %c0_3] : memref<4x1xf32, #tpu.memory_space<vmem>>, vector<4x1xf32>
    %c0_4 = arith.constant 0 : index
    %c0_5 = arith.constant 0 : index
    %3 = vector.load %arg3[%c0_4, %c0_5] : memref<4x1xf32, #tpu.memory_space<vmem>>, vector<4x1xf32>
    %cst = arith.constant dense<0.000000e+00> : vector<256xf32>
    %4 = vector.multi_reduction <add>, %1, %cst [0] : vector<4x256xf32> to vector<256xf32>
    %5 = vector.shape_cast %4 : vector<256xf32> to vector<1x256xf32>
    %cst_6 = arith.constant 4.000000e+00 : f32
    %6 = vector.broadcast %cst_6 : f32 to vector<1x256xf32>
    %7 = arith.divf %5, %6 : vector<1x256xf32>
    %8 = vector.broadcast %7 : vector<1x256xf32> to vector<4x256xf32>
    %9 = arith.subf %1, %8 : vector<4x256xf32>
    %10 = arith.mulf %9, %9 : vector<4x256xf32>
    %cst_7 = arith.constant dense<0.000000e+00> : vector<256xf32>
    %11 = vector.multi_reduction <add>, %10, %cst_7 [0] : vector<4x256xf32> to vector<256xf32>
    %12 = vector.shape_cast %11 : vector<256xf32> to vector<1x256xf32>
    %cst_8 = arith.constant 4.000000e+00 : f32
    %13 = vector.broadcast %cst_8 : f32 to vector<1x256xf32>
    %14 = arith.divf %12, %13 : vector<1x256xf32>
    %cst_9 = arith.constant 9.99999974E-6 : f32
    %15 = vector.broadcast %cst_9 : f32 to vector<1x256xf32>
    %16 = arith.addf %14, %15 : vector<1x256xf32>
    %17 = math.rsqrt %16 : vector<1x256xf32>
    %18 = vector.broadcast %17 : vector<1x256xf32> to vector<4x256xf32>
    %19 = arith.mulf %9, %18 : vector<4x256xf32>
    %20 = vector.broadcast %2 : vector<4x1xf32> to vector<4x256xf32>
    %21 = arith.mulf %19, %20 : vector<4x256xf32>
    %22 = vector.broadcast %3 : vector<4x1xf32> to vector<4x256xf32>
    %23 = arith.addf %21, %22 : vector<4x256xf32>
    %c0_10 = arith.constant 0 : index
    %c0_11 = arith.constant 0 : index
    %24 = vector.load %arg4[%c0_10, %c0_11] : memref<12x4xbf16, #tpu.memory_space<vmem>>, vector<12x4xbf16>
    %25 = arith.truncf %23 : vector<4x256xf32> to vector<4x256xbf16>
    %cst_12 = arith.constant dense<0.000000e+00> : vector<12x256xf32>
    %26 = tpu.matmul %24, %25, %cst_12 {dimension_numbers = #tpu.dot_dimension_numbers<[1], [0], [0], [1], [0, 0, 1, 1], [], []>} : vector<12x4xbf16>, vector<4x256xbf16>, vector<12x256xf32> -> vector<12x256xf32>
    %c0_13 = arith.constant 0 : index
    %c0_14 = arith.constant 0 : index
    %27 = vector.load %arg5[%c0_13, %c0_14] : memref<12x9xf32, #tpu.memory_space<vmem>>, vector<12x9xf32>
    %28 = vector.extract_strided_slice %27 {offsets = [0, 4], sizes = [12, 1], strides = [1, 1]} : vector<12x9xf32> to vector<12x1xf32>
    %29 = vector.broadcast %28 : vector<12x1xf32> to vector<12x256xf32>
    %30 = arith.mulf %26, %29 : vector<12x256xf32>
    %c17_i32 = arith.constant 17 : i32
    %31 = tpu.dynamic_rotate %26 by %c17_i32 dim 1 : vector<12x256xf32>, i32 -> vector<12x256xf32>
    %32 = vector.extract_strided_slice %27 {offsets = [0, 0], sizes = [12, 1], strides = [1, 1]} : vector<12x9xf32> to vector<12x1xf32>
    %33 = vector.broadcast %32 : vector<12x1xf32> to vector<12x256xf32>
    %34 = arith.mulf %31, %33 : vector<12x256xf32>
    %c0_15 = arith.constant 0 : index
    %c0_16 = arith.constant 0 : index
    %35 = vector.load %arg6[%c0_15, %c0_16] : memref<8x256xf32, #tpu.memory_space<vmem>>, vector<1x256xf32>
    %36 = vector.broadcast %35 : vector<1x256xf32> to vector<12x256xf32>
    %37 = arith.mulf %34, %36 : vector<12x256xf32>
    %38 = arith.addf %30, %37 : vector<12x256xf32>
    %c16_i32 = arith.constant 16 : i32
    %39 = tpu.dynamic_rotate %26 by %c16_i32 dim 1 : vector<12x256xf32>, i32 -> vector<12x256xf32>
    %40 = vector.extract_strided_slice %27 {offsets = [0, 1], sizes = [12, 1], strides = [1, 1]} : vector<12x9xf32> to vector<12x1xf32>
    %41 = vector.broadcast %40 : vector<12x1xf32> to vector<12x256xf32>
    %42 = arith.mulf %39, %41 : vector<12x256xf32>
    %c1 = arith.constant 1 : index
    %c0_17 = arith.constant 0 : index
    %43 = vector.load %arg6[%c1, %c0_17] : memref<8x256xf32, #tpu.memory_space<vmem>>, vector<1x256xf32>
    %44 = vector.broadcast %43 : vector<1x256xf32> to vector<12x256xf32>
    %45 = arith.mulf %42, %44 : vector<12x256xf32>
    %46 = arith.addf %38, %45 : vector<12x256xf32>
    %c15_i32 = arith.constant 15 : i32
    %47 = tpu.dynamic_rotate %26 by %c15_i32 dim 1 : vector<12x256xf32>, i32 -> vector<12x256xf32>
    %48 = vector.extract_strided_slice %27 {offsets = [0, 2], sizes = [12, 1], strides = [1, 1]} : vector<12x9xf32> to vector<12x1xf32>
    %49 = vector.broadcast %48 : vector<12x1xf32> to vector<12x256xf32>
    %50 = arith.mulf %47, %49 : vector<12x256xf32>
    %c2 = arith.constant 2 : index
    %c0_18 = arith.constant 0 : index
    %51 = vector.load %arg6[%c2, %c0_18] : memref<8x256xf32, #tpu.memory_space<vmem>>, vector<1x256xf32>
    %52 = vector.broadcast %51 : vector<1x256xf32> to vector<12x256xf32>
    %53 = arith.mulf %50, %52 : vector<12x256xf32>
    %54 = arith.addf %46, %53 : vector<12x256xf32>
    %c1_i32 = arith.constant 1 : i32
    %55 = tpu.dynamic_rotate %26 by %c1_i32 dim 1 : vector<12x256xf32>, i32 -> vector<12x256xf32>
    %56 = vector.extract_strided_slice %27 {offsets = [0, 3], sizes = [12, 1], strides = [1, 1]} : vector<12x9xf32> to vector<12x1xf32>
    %57 = vector.broadcast %56 : vector<12x1xf32> to vector<12x256xf32>
    %58 = arith.mulf %55, %57 : vector<12x256xf32>
    %c3 = arith.constant 3 : index
    %c0_19 = arith.constant 0 : index
    %59 = vector.load %arg6[%c3, %c0_19] : memref<8x256xf32, #tpu.memory_space<vmem>>, vector<1x256xf32>
    %60 = vector.broadcast %59 : vector<1x256xf32> to vector<12x256xf32>
    %61 = arith.mulf %58, %60 : vector<12x256xf32>
    %62 = arith.addf %54, %61 : vector<12x256xf32>
    %c255_i32 = arith.constant 255 : i32
    %63 = tpu.dynamic_rotate %26 by %c255_i32 dim 1 : vector<12x256xf32>, i32 -> vector<12x256xf32>
    %64 = vector.extract_strided_slice %27 {offsets = [0, 5], sizes = [12, 1], strides = [1, 1]} : vector<12x9xf32> to vector<12x1xf32>
    %65 = vector.broadcast %64 : vector<12x1xf32> to vector<12x256xf32>
    %66 = arith.mulf %63, %65 : vector<12x256xf32>
    %c4 = arith.constant 4 : index
    %c0_20 = arith.constant 0 : index
    %67 = vector.load %arg6[%c4, %c0_20] : memref<8x256xf32, #tpu.memory_space<vmem>>, vector<1x256xf32>
    %68 = vector.broadcast %67 : vector<1x256xf32> to vector<12x256xf32>
    %69 = arith.mulf %66, %68 : vector<12x256xf32>
    %70 = arith.addf %62, %69 : vector<12x256xf32>
    %c241_i32 = arith.constant 241 : i32
    %71 = tpu.dynamic_rotate %26 by %c241_i32 dim 1 : vector<12x256xf32>, i32 -> vector<12x256xf32>
    %72 = vector.extract_strided_slice %27 {offsets = [0, 6], sizes = [12, 1], strides = [1, 1]} : vector<12x9xf32> to vector<12x1xf32>
    %73 = vector.broadcast %72 : vector<12x1xf32> to vector<12x256xf32>
    %74 = arith.mulf %71, %73 : vector<12x256xf32>
    %c5 = arith.constant 5 : index
    %c0_21 = arith.constant 0 : index
    %75 = vector.load %arg6[%c5, %c0_21] : memref<8x256xf32, #tpu.memory_space<vmem>>, vector<1x256xf32>
    %76 = vector.broadcast %75 : vector<1x256xf32> to vector<12x256xf32>
    %77 = arith.mulf %74, %76 : vector<12x256xf32>
    %78 = arith.addf %70, %77 : vector<12x256xf32>
    %c240_i32 = arith.constant 240 : i32
    %79 = tpu.dynamic_rotate %26 by %c240_i32 dim 1 : vector<12x256xf32>, i32 -> vector<12x256xf32>
    %80 = vector.extract_strided_slice %27 {offsets = [0, 7], sizes = [12, 1], strides = [1, 1]} : vector<12x9xf32> to vector<12x1xf32>
    %81 = vector.broadcast %80 : vector<12x1xf32> to vector<12x256xf32>
    %82 = arith.mulf %79, %81 : vector<12x256xf32>
    %c6 = arith.constant 6 : index
    %c0_22 = arith.constant 0 : index
    %83 = vector.load %arg6[%c6, %c0_22] : memref<8x256xf32, #tpu.memory_space<vmem>>, vector<1x256xf32>
    %84 = vector.broadcast %83 : vector<1x256xf32> to vector<12x256xf32>
    %85 = arith.mulf %82, %84 : vector<12x256xf32>
    %86 = arith.addf %78, %85 : vector<12x256xf32>
    %c239_i32 = arith.constant 239 : i32
    %87 = tpu.dynamic_rotate %26 by %c239_i32 dim 1 : vector<12x256xf32>, i32 -> vector<12x256xf32>
    %88 = vector.extract_strided_slice %27 {offsets = [0, 8], sizes = [12, 1], strides = [1, 1]} : vector<12x9xf32> to vector<12x1xf32>
    %89 = vector.broadcast %88 : vector<12x1xf32> to vector<12x256xf32>
    %90 = arith.mulf %87, %89 : vector<12x256xf32>
    %c7 = arith.constant 7 : index
    %c0_23 = arith.constant 0 : index
    %91 = vector.load %arg6[%c7, %c0_23] : memref<8x256xf32, #tpu.memory_space<vmem>>, vector<1x256xf32>
    %92 = vector.broadcast %91 : vector<1x256xf32> to vector<12x256xf32>
    %93 = arith.mulf %90, %92 : vector<12x256xf32>
    %94 = arith.addf %86, %93 : vector<12x256xf32>
    %c0_24 = arith.constant 0 : index
    %c0_25 = arith.constant 0 : index
    %c0_26 = arith.constant 0 : index
    %95 = vector.load %arg7[%c0_24, %c0_25, %c0_26] : memref<1x12x256xf32, #tpu.memory_space<vmem>>, vector<1x12x256xf32>
    %96 = vector.shape_cast %95 : vector<1x12x256xf32> to vector<12x256xf32>
    %97 = vector.shape_cast %94 : vector<12x256xf32> to vector<1x12x256xf32>
    tpu.vector_store %arg7[%c0_24, %c0_25, %c0_26], %97 {strides = array<i32>} : memref<1x12x256xf32, #tpu.memory_space<vmem>>, vector<1x12x256xf32>,
    return
  }
  func.func @transform_0(%arg0: i32) -> (i32, i32, i32) {
    %c0_i32 = arith.constant 0 : i32
    %c0_i32_0 = arith.constant 0 : i32
    %c0_i32_1 = arith.constant 0 : i32
    return %arg0, %c0_i32, %c0_i32_0 : i32, i32, i32
  }
  func.func @transform_1(%arg0: i32) -> (i32, i32) {
    %c0_i32 = arith.constant 0 : i32
    %c0_i32_0 = arith.constant 0 : i32
    %c0_i32_1 = arith.constant 0 : i32
    return %c0_i32, %c0_i32_0 : i32, i32
  }
  func.func @transform_2(%arg0: i32) -> (i32, i32) {
    %c0_i32 = arith.constant 0 : i32
    %c0_i32_0 = arith.constant 0 : i32
    %c0_i32_1 = arith.constant 0 : i32
    return %c0_i32, %c0_i32_0 : i32, i32
  }
  func.func @transform_3(%arg0: i32) -> (i32, i32) {
    %c0_i32 = arith.constant 0 : i32
    %c0_i32_0 = arith.constant 0 : i32
    %c0_i32_1 = arith.constant 0 : i32
    return %c0_i32, %c0_i32_0 : i32, i32
  }
  func.func @transform_4(%arg0: i32) -> (i32, i32) {
    %c0_i32 = arith.constant 0 : i32
    %c0_i32_0 = arith.constant 0 : i32
    %c0_i32_1 = arith.constant 0 : i32
    return %c0_i32, %c0_i32_0 : i32, i32
  }
  func.func @transform_5(%arg0: i32) -> (i32, i32) {
    %c0_i32 = arith.constant 0 : i32
    %c0_i32_0 = arith.constant 0 : i32
    %c0_i32_1 = arith.constant 0 : i32
    return %c0_i32, %c0_i32_0 : i32, i32
  }
  func.func @transform_6(%arg0: i32) -> (i32, i32, i32) {
    %c0_i32 = arith.constant 0 : i32
    %c0_i32_0 = arith.constant 0 : i32
    %c0_i32_1 = arith.constant 0 : i32
    return %arg0, %c0_i32, %c0_i32_0 : i32, i32, i32
  }
}

module attributes {stable_mosaic.version = 11 : i64} {
  func.func @kernel(%arg0: i32, %arg1: memref<1x2x8x128xbf16, #tpu.memory_space<vmem>>, %arg2: memref<1x2x8x128xbf16, #tpu.memory_space<vmem>>, %arg3: memref<1x2x8x128xbf16, #tpu.memory_space<vmem>>, %arg4: memref<2xf32, #tpu.memory_space<smem>>, %arg5: memref<1x2x8x128xf32, #tpu.memory_space<vmem>>) attributes {dimension_semantics = [#tpu.dimension_semantics<parallel>], iteration_bounds = array<i64: 2>, scalar_prefetch = 0 : i64, scratch_operands = 0 : i64, tpu.core_type = #tpu.core_type<tc>, window_params = [{transform_indices = @transform_0, window_bounds = array<i64: 1, 2, 8, 128>}, {transform_indices = @transform_1, window_bounds = array<i64: 1, 2, 8, 128>}, {transform_indices = @transform_2, window_bounds = array<i64: 1, 2, 8, 128>}, {transform_indices = @transform_3, window_bounds = array<i64: 2>}, {transform_indices = @transform_4, window_bounds = array<i64: 1, 2, 8, 128>}]} {
    %c0 = arith.constant 0 : index
    %c0_0 = arith.constant 0 : index
    %c0_1 = arith.constant 0 : index
    %c0_2 = arith.constant 0 : index
    %0 = vector.load %arg1[%c0, %c0_0, %c0_1, %c0_2] : memref<1x2x8x128xbf16, #tpu.memory_space<vmem>>, vector<1x1x8x128xbf16>
    %1 = vector.shape_cast %0 : vector<1x1x8x128xbf16> to vector<8x128xbf16>
    %2 = arith.extf %1 : vector<8x128xbf16> to vector<8x128xf32>
    %c0_3 = arith.constant 0 : index
    %c0_4 = arith.constant 0 : index
    %c0_5 = arith.constant 0 : index
    %c0_6 = arith.constant 0 : index
    %3 = vector.load %arg2[%c0_3, %c0_4, %c0_5, %c0_6] : memref<1x2x8x128xbf16, #tpu.memory_space<vmem>>, vector<1x1x8x128xbf16>
    %4 = vector.shape_cast %3 : vector<1x1x8x128xbf16> to vector<8x128xbf16>
    %5 = arith.extf %4 : vector<8x128xbf16> to vector<8x128xf32>
    %6 = arith.mulf %2, %2 : vector<8x128xf32>
    %cst = arith.constant dense<0.000000e+00> : vector<8xf32>
    %7 = vector.multi_reduction <add>, %6, %cst [1] : vector<8x128xf32> to vector<8xf32>
    %8 = vector.shape_cast %7 : vector<8xf32> to vector<8x1xf32>
    %cst_7 = arith.constant 1.000000e-24 : f32
    %9 = vector.broadcast %cst_7 : f32 to vector<8x1xf32>
    %10 = arith.maximumf %8, %9 : vector<8x1xf32>
    %11 = math.rsqrt %10 : vector<8x1xf32>
    %12 = vector.broadcast %11 : vector<8x1xf32> to vector<8x128xf32>
    %13 = arith.mulf %2, %12 : vector<8x128xf32>
    %14 = arith.mulf %5, %5 : vector<8x128xf32>
    %cst_8 = arith.constant dense<0.000000e+00> : vector<8xf32>
    %15 = vector.multi_reduction <add>, %14, %cst_8 [1] : vector<8x128xf32> to vector<8xf32>
    %16 = vector.shape_cast %15 : vector<8xf32> to vector<8x1xf32>
    %cst_9 = arith.constant 1.000000e-24 : f32
    %17 = vector.broadcast %cst_9 : f32 to vector<8x1xf32>
    %18 = arith.maximumf %16, %17 : vector<8x1xf32>
    %19 = math.rsqrt %18 : vector<8x1xf32>
    %20 = vector.broadcast %19 : vector<8x1xf32> to vector<8x128xf32>
    %21 = arith.mulf %5, %20 : vector<8x128xf32>
    %22 = arith.truncf %13 : vector<8x128xf32> to vector<8x128xbf16>
    %23 = arith.truncf %21 : vector<8x128xf32> to vector<8x128xbf16>
    %cst_10 = arith.constant dense<0.000000e+00> : vector<8x8xf32>
    %24 = tpu.matmul %22, %23, %cst_10 {dimension_numbers = #tpu.dot_dimension_numbers<[1], [1], [0], [0], [0, 0, 1, 0], [], []>} : vector<8x128xbf16>, vector<8x128xbf16>, vector<8x8xf32> -> vector<8x8xf32>
    %c0_11 = arith.constant 0 : index
    %25 = memref.load %arg4[%c0_11] : memref<2xf32, #tpu.memory_space<smem>>
    %26 = vector.broadcast %25 : f32 to vector<8x8xf32>
    %27 = arith.mulf %24, %26 : vector<8x8xf32>
    %cst_12 = arith.constant dense<0xFF800000> : vector<8xf32>
    %28 = vector.multi_reduction <maximumf>, %27, %cst_12 [1] : vector<8x8xf32> to vector<8xf32>
    %29 = vector.shape_cast %28 : vector<8xf32> to vector<8x1xf32>
    %cst_13 = arith.constant 0.000000e+00 : f32
    %30 = vector.broadcast %cst_13 : f32 to vector<8x1xf32>
    %31 = arith.maximumf %29, %30 : vector<8x1xf32>
    %32 = vector.broadcast %31 : vector<8x1xf32> to vector<8x8xf32>
    %33 = arith.subf %27, %32 : vector<8x8xf32>
    %34 = math.exp %33 : vector<8x8xf32>
    %cst_14 = arith.constant dense<0.000000e+00> : vector<8xf32>
    %35 = vector.multi_reduction <add>, %34, %cst_14 [1] : vector<8x8xf32> to vector<8xf32>
    %36 = vector.shape_cast %35 : vector<8xf32> to vector<8x1xf32>
    %cst_15 = arith.constant 0.000000e+00 : f32
    %37 = vector.broadcast %cst_15 : f32 to vector<8x1xf32>
    %38 = arith.subf %37, %31 : vector<8x1xf32>
    %39 = math.exp %38 : vector<8x1xf32>
    %40 = arith.addf %36, %39 : vector<8x1xf32>
    %41 = tpu.reciprocal %40 {approx = true} : vector<8x1xf32> -> vector<8x1xf32>
    %42 = vector.broadcast %41 : vector<8x1xf32> to vector<8x8xf32>
    %43 = arith.mulf %34, %42 : vector<8x8xf32>
    %44 = arith.truncf %43 : vector<8x8xf32> to vector<8x8xbf16>
    %c0_16 = arith.constant 0 : index
    %c0_17 = arith.constant 0 : index
    %c0_18 = arith.constant 0 : index
    %c0_19 = arith.constant 0 : index
    %45 = vector.load %arg3[%c0_16, %c0_17, %c0_18, %c0_19] : memref<1x2x8x128xbf16, #tpu.memory_space<vmem>>, vector<1x1x8x128xbf16>
    %46 = vector.shape_cast %45 : vector<1x1x8x128xbf16> to vector<8x128xbf16>
    %cst_20 = arith.constant dense<0.000000e+00> : vector<8x128xf32>
    %47 = tpu.matmul %44, %46, %cst_20 {dimension_numbers = #tpu.dot_dimension_numbers<[1], [0], [0], [1], [0, 0, 1, 1], [], []>} : vector<8x8xbf16>, vector<8x128xbf16>, vector<8x128xf32> -> vector<8x128xf32>
    %c0_21 = arith.constant 0 : index
    %c0_22 = arith.constant 0 : index
    %c0_23 = arith.constant 0 : index
    %c0_24 = arith.constant 0 : index
    %48 = vector.load %arg5[%c0_21, %c0_22, %c0_23, %c0_24] : memref<1x2x8x128xf32, #tpu.memory_space<vmem>>, vector<1x1x8x128xf32>
    %49 = vector.shape_cast %48 : vector<1x1x8x128xf32> to vector<8x128xf32>
    %50 = vector.shape_cast %47 : vector<8x128xf32> to vector<1x1x8x128xf32>
    tpu.vector_store %arg5[%c0_21, %c0_22, %c0_23, %c0_24], %50 {strides = array<i32>} : memref<1x2x8x128xf32, #tpu.memory_space<vmem>>, vector<1x1x8x128xf32>,
    %c0_25 = arith.constant 0 : index
    %c1 = arith.constant 1 : index
    %c0_26 = arith.constant 0 : index
    %c0_27 = arith.constant 0 : index
    %51 = vector.load %arg1[%c0_25, %c1, %c0_26, %c0_27] : memref<1x2x8x128xbf16, #tpu.memory_space<vmem>>, vector<1x1x8x128xbf16>
    %52 = vector.shape_cast %51 : vector<1x1x8x128xbf16> to vector<8x128xbf16>
    %53 = arith.extf %52 : vector<8x128xbf16> to vector<8x128xf32>
    %c0_28 = arith.constant 0 : index
    %c1_29 = arith.constant 1 : index
    %c0_30 = arith.constant 0 : index
    %c0_31 = arith.constant 0 : index
    %54 = vector.load %arg2[%c0_28, %c1_29, %c0_30, %c0_31] : memref<1x2x8x128xbf16, #tpu.memory_space<vmem>>, vector<1x1x8x128xbf16>
    %55 = vector.shape_cast %54 : vector<1x1x8x128xbf16> to vector<8x128xbf16>
    %56 = arith.extf %55 : vector<8x128xbf16> to vector<8x128xf32>
    %57 = arith.mulf %53, %53 : vector<8x128xf32>
    %cst_32 = arith.constant dense<0.000000e+00> : vector<8xf32>
    %58 = vector.multi_reduction <add>, %57, %cst_32 [1] : vector<8x128xf32> to vector<8xf32>
    %59 = vector.shape_cast %58 : vector<8xf32> to vector<8x1xf32>
    %cst_33 = arith.constant 1.000000e-24 : f32
    %60 = vector.broadcast %cst_33 : f32 to vector<8x1xf32>
    %61 = arith.maximumf %59, %60 : vector<8x1xf32>
    %62 = math.rsqrt %61 : vector<8x1xf32>
    %63 = vector.broadcast %62 : vector<8x1xf32> to vector<8x128xf32>
    %64 = arith.mulf %53, %63 : vector<8x128xf32>
    %65 = arith.mulf %56, %56 : vector<8x128xf32>
    %cst_34 = arith.constant dense<0.000000e+00> : vector<8xf32>
    %66 = vector.multi_reduction <add>, %65, %cst_34 [1] : vector<8x128xf32> to vector<8xf32>
    %67 = vector.shape_cast %66 : vector<8xf32> to vector<8x1xf32>
    %cst_35 = arith.constant 1.000000e-24 : f32
    %68 = vector.broadcast %cst_35 : f32 to vector<8x1xf32>
    %69 = arith.maximumf %67, %68 : vector<8x1xf32>
    %70 = math.rsqrt %69 : vector<8x1xf32>
    %71 = vector.broadcast %70 : vector<8x1xf32> to vector<8x128xf32>
    %72 = arith.mulf %56, %71 : vector<8x128xf32>
    %73 = arith.truncf %64 : vector<8x128xf32> to vector<8x128xbf16>
    %74 = arith.truncf %72 : vector<8x128xf32> to vector<8x128xbf16>
    %cst_36 = arith.constant dense<0.000000e+00> : vector<8x8xf32>
    %75 = tpu.matmul %73, %74, %cst_36 {dimension_numbers = #tpu.dot_dimension_numbers<[1], [1], [0], [0], [0, 0, 1, 0], [], []>} : vector<8x128xbf16>, vector<8x128xbf16>, vector<8x8xf32> -> vector<8x8xf32>
    %c1_37 = arith.constant 1 : index
    %76 = memref.load %arg4[%c1_37] : memref<2xf32, #tpu.memory_space<smem>>
    %77 = vector.broadcast %76 : f32 to vector<8x8xf32>
    %78 = arith.mulf %75, %77 : vector<8x8xf32>
    %cst_38 = arith.constant dense<0xFF800000> : vector<8xf32>
    %79 = vector.multi_reduction <maximumf>, %78, %cst_38 [1] : vector<8x8xf32> to vector<8xf32>
    %80 = vector.shape_cast %79 : vector<8xf32> to vector<8x1xf32>
    %cst_39 = arith.constant 0.000000e+00 : f32
    %81 = vector.broadcast %cst_39 : f32 to vector<8x1xf32>
    %82 = arith.maximumf %80, %81 : vector<8x1xf32>
    %83 = vector.broadcast %82 : vector<8x1xf32> to vector<8x8xf32>
    %84 = arith.subf %78, %83 : vector<8x8xf32>
    %85 = math.exp %84 : vector<8x8xf32>
    %cst_40 = arith.constant dense<0.000000e+00> : vector<8xf32>
    %86 = vector.multi_reduction <add>, %85, %cst_40 [1] : vector<8x8xf32> to vector<8xf32>
    %87 = vector.shape_cast %86 : vector<8xf32> to vector<8x1xf32>
    %cst_41 = arith.constant 0.000000e+00 : f32
    %88 = vector.broadcast %cst_41 : f32 to vector<8x1xf32>
    %89 = arith.subf %88, %82 : vector<8x1xf32>
    %90 = math.exp %89 : vector<8x1xf32>
    %91 = arith.addf %87, %90 : vector<8x1xf32>
    %92 = tpu.reciprocal %91 {approx = true} : vector<8x1xf32> -> vector<8x1xf32>
    %93 = vector.broadcast %92 : vector<8x1xf32> to vector<8x8xf32>
    %94 = arith.mulf %85, %93 : vector<8x8xf32>
    %95 = arith.truncf %94 : vector<8x8xf32> to vector<8x8xbf16>
    %c0_42 = arith.constant 0 : index
    %c1_43 = arith.constant 1 : index
    %c0_44 = arith.constant 0 : index
    %c0_45 = arith.constant 0 : index
    %96 = vector.load %arg3[%c0_42, %c1_43, %c0_44, %c0_45] : memref<1x2x8x128xbf16, #tpu.memory_space<vmem>>, vector<1x1x8x128xbf16>
    %97 = vector.shape_cast %96 : vector<1x1x8x128xbf16> to vector<8x128xbf16>
    %cst_46 = arith.constant dense<0.000000e+00> : vector<8x128xf32>
    %98 = tpu.matmul %95, %97, %cst_46 {dimension_numbers = #tpu.dot_dimension_numbers<[1], [0], [0], [1], [0, 0, 1, 1], [], []>} : vector<8x8xbf16>, vector<8x128xbf16>, vector<8x128xf32> -> vector<8x128xf32>
    %c0_47 = arith.constant 0 : index
    %c1_48 = arith.constant 1 : index
    %c0_49 = arith.constant 0 : index
    %c0_50 = arith.constant 0 : index
    %99 = vector.load %arg5[%c0_47, %c1_48, %c0_49, %c0_50] : memref<1x2x8x128xf32, #tpu.memory_space<vmem>>, vector<1x1x8x128xf32>
    %100 = vector.shape_cast %99 : vector<1x1x8x128xf32> to vector<8x128xf32>
    %101 = vector.shape_cast %98 : vector<8x128xf32> to vector<1x1x8x128xf32>
    tpu.vector_store %arg5[%c0_47, %c1_48, %c0_49, %c0_50], %101 {strides = array<i32>} : memref<1x2x8x128xf32, #tpu.memory_space<vmem>>, vector<1x1x8x128xf32>,
    return
  }
  func.func @transform_0(%arg0: i32) -> (i32, i32, i32, i32) {
    %c0_i32 = arith.constant 0 : i32
    %c0_i32_0 = arith.constant 0 : i32
    %c0_i32_1 = arith.constant 0 : i32
    %c0_i32_2 = arith.constant 0 : i32
    return %arg0, %c0_i32, %c0_i32_0, %c0_i32_1 : i32, i32, i32, i32
  }
  func.func @transform_1(%arg0: i32) -> (i32, i32, i32, i32) {
    %c0_i32 = arith.constant 0 : i32
    %c0_i32_0 = arith.constant 0 : i32
    %c0_i32_1 = arith.constant 0 : i32
    %c0_i32_2 = arith.constant 0 : i32
    return %arg0, %c0_i32, %c0_i32_0, %c0_i32_1 : i32, i32, i32, i32
  }
  func.func @transform_2(%arg0: i32) -> (i32, i32, i32, i32) {
    %c0_i32 = arith.constant 0 : i32
    %c0_i32_0 = arith.constant 0 : i32
    %c0_i32_1 = arith.constant 0 : i32
    %c0_i32_2 = arith.constant 0 : i32
    return %arg0, %c0_i32, %c0_i32_0, %c0_i32_1 : i32, i32, i32, i32
  }
  func.func @transform_3(%arg0: i32) -> i32 {
    %c0_i32 = arith.constant 0 : i32
    %c0_i32_0 = arith.constant 0 : i32
    return %c0_i32 : i32
  }
  func.func @transform_4(%arg0: i32) -> (i32, i32, i32, i32) {
    %c0_i32 = arith.constant 0 : i32
    %c0_i32_0 = arith.constant 0 : i32
    %c0_i32_1 = arith.constant 0 : i32
    %c0_i32_2 = arith.constant 0 : i32
    return %arg0, %c0_i32, %c0_i32_0, %c0_i32_1 : i32, i32, i32, i32
  }
}

module attributes {stable_mosaic.version = 11 : i64} {
  func.func @kernel(%arg0: i32, %arg1: memref<1x4x256xf32, #tpu.memory_space<vmem>>, %arg2: memref<1x4x256xbf16, #tpu.memory_space<vmem>>, %arg3: memref<4x4xbf16, #tpu.memory_space<vmem>>, %arg4: memref<4x1xf32, #tpu.memory_space<vmem>>, %arg5: memref<4x1xf32, #tpu.memory_space<vmem>>, %arg6: memref<16x4xbf16, #tpu.memory_space<vmem>>, %arg7: memref<16x9xf32, #tpu.memory_space<vmem>>, %arg8: memref<8x256xf32, #tpu.memory_space<vmem>>, %arg9: memref<1x4x256xf32, #tpu.memory_space<vmem>>, %arg10: memref<1x16x256xf32, #tpu.memory_space<vmem>>) attributes {dimension_semantics = [#tpu.dimension_semantics<parallel>], iteration_bounds = array<i64: 2>, scalar_prefetch = 0 : i64, scratch_operands = 0 : i64, tpu.core_type = #tpu.core_type<tc>, window_params = [{transform_indices = @transform_0, window_bounds = array<i64: 1, 4, 256>}, {transform_indices = @transform_1, window_bounds = array<i64: 1, 4, 256>}, {pipeline_mode = #tpu.pipeline_mode<synchronous>, transform_indices = @transform_2, window_bounds = array<i64: 4, 4>}, {pipeline_mode = #tpu.pipeline_mode<synchronous>, transform_indices = @transform_3, window_bounds = array<i64: 4, 1>}, {pipeline_mode = #tpu.pipeline_mode<synchronous>, transform_indices = @transform_4, window_bounds = array<i64: 4, 1>}, {pipeline_mode = #tpu.pipeline_mode<synchronous>, transform_indices = @transform_5, window_bounds = array<i64: 16, 4>}, {pipeline_mode = #tpu.pipeline_mode<synchronous>, transform_indices = @transform_6, window_bounds = array<i64: 16, 9>}, {pipeline_mode = #tpu.pipeline_mode<synchronous>, transform_indices = @transform_7, window_bounds = array<i64: 8, 256>}, {transform_indices = @transform_8, window_bounds = array<i64: 1, 4, 256>}, {transform_indices = @transform_9, window_bounds = array<i64: 1, 16, 256>}]} {
    %c0 = arith.constant 0 : index
    %c0_0 = arith.constant 0 : index
    %c0_1 = arith.constant 0 : index
    %0 = vector.load %arg1[%c0, %c0_0, %c0_1] : memref<1x4x256xf32, #tpu.memory_space<vmem>>, vector<1x4x256xf32>
    %1 = vector.shape_cast %0 : vector<1x4x256xf32> to vector<4x256xf32>
    %c0_2 = arith.constant 0 : index
    %c0_3 = arith.constant 0 : index
    %2 = vector.load %arg3[%c0_2, %c0_3] : memref<4x4xbf16, #tpu.memory_space<vmem>>, vector<4x4xbf16>
    %c0_4 = arith.constant 0 : index
    %c0_5 = arith.constant 0 : index
    %c0_6 = arith.constant 0 : index
    %3 = vector.load %arg2[%c0_4, %c0_5, %c0_6] : memref<1x4x256xbf16, #tpu.memory_space<vmem>>, vector<1x4x256xbf16>
    %4 = vector.shape_cast %3 : vector<1x4x256xbf16> to vector<4x256xbf16>
    %cst = arith.constant dense<0.000000e+00> : vector<4x256xf32>
    %5 = tpu.matmul %2, %4, %cst {dimension_numbers = #tpu.dot_dimension_numbers<[1], [0], [0], [1], [0, 0, 1, 1], [], []>} : vector<4x4xbf16>, vector<4x256xbf16>, vector<4x256xf32> -> vector<4x256xf32>
    %6 = arith.addf %1, %5 : vector<4x256xf32>
    %c0_7 = arith.constant 0 : index
    %c0_8 = arith.constant 0 : index
    %c0_9 = arith.constant 0 : index
    %7 = vector.load %arg9[%c0_7, %c0_8, %c0_9] : memref<1x4x256xf32, #tpu.memory_space<vmem>>, vector<1x4x256xf32>
    %8 = vector.shape_cast %7 : vector<1x4x256xf32> to vector<4x256xf32>
    %9 = vector.shape_cast %6 : vector<4x256xf32> to vector<1x4x256xf32>
    tpu.vector_store %arg9[%c0_7, %c0_8, %c0_9], %9 {strides = array<i32>} : memref<1x4x256xf32, #tpu.memory_space<vmem>>, vector<1x4x256xf32>,
    %c0_10 = arith.constant 0 : index
    %c0_11 = arith.constant 0 : index
    %10 = vector.load %arg4[%c0_10, %c0_11] : memref<4x1xf32, #tpu.memory_space<vmem>>, vector<4x1xf32>
    %c0_12 = arith.constant 0 : index
    %c0_13 = arith.constant 0 : index
    %11 = vector.load %arg5[%c0_12, %c0_13] : memref<4x1xf32, #tpu.memory_space<vmem>>, vector<4x1xf32>
    %cst_14 = arith.constant dense<0.000000e+00> : vector<256xf32>
    %12 = vector.multi_reduction <add>, %6, %cst_14 [0] : vector<4x256xf32> to vector<256xf32>
    %13 = vector.shape_cast %12 : vector<256xf32> to vector<1x256xf32>
    %cst_15 = arith.constant 4.000000e+00 : f32
    %14 = vector.broadcast %cst_15 : f32 to vector<1x256xf32>
    %15 = arith.divf %13, %14 : vector<1x256xf32>
    %16 = vector.broadcast %15 : vector<1x256xf32> to vector<4x256xf32>
    %17 = arith.subf %6, %16 : vector<4x256xf32>
    %18 = arith.mulf %17, %17 : vector<4x256xf32>
    %cst_16 = arith.constant dense<0.000000e+00> : vector<256xf32>
    %19 = vector.multi_reduction <add>, %18, %cst_16 [0] : vector<4x256xf32> to vector<256xf32>
    %20 = vector.shape_cast %19 : vector<256xf32> to vector<1x256xf32>
    %cst_17 = arith.constant 4.000000e+00 : f32
    %21 = vector.broadcast %cst_17 : f32 to vector<1x256xf32>
    %22 = arith.divf %20, %21 : vector<1x256xf32>
    %cst_18 = arith.constant 9.99999974E-6 : f32
    %23 = vector.broadcast %cst_18 : f32 to vector<1x256xf32>
    %24 = arith.addf %22, %23 : vector<1x256xf32>
    %25 = math.rsqrt %24 : vector<1x256xf32>
    %26 = vector.broadcast %25 : vector<1x256xf32> to vector<4x256xf32>
    %27 = arith.mulf %17, %26 : vector<4x256xf32>
    %28 = vector.broadcast %10 : vector<4x1xf32> to vector<4x256xf32>
    %29 = arith.mulf %27, %28 : vector<4x256xf32>
    %30 = vector.broadcast %11 : vector<4x1xf32> to vector<4x256xf32>
    %31 = arith.addf %29, %30 : vector<4x256xf32>
    %c0_19 = arith.constant 0 : index
    %c0_20 = arith.constant 0 : index
    %32 = vector.load %arg6[%c0_19, %c0_20] : memref<16x4xbf16, #tpu.memory_space<vmem>>, vector<16x4xbf16>
    %33 = arith.truncf %31 : vector<4x256xf32> to vector<4x256xbf16>
    %cst_21 = arith.constant dense<0.000000e+00> : vector<16x256xf32>
    %34 = tpu.matmul %32, %33, %cst_21 {dimension_numbers = #tpu.dot_dimension_numbers<[1], [0], [0], [1], [0, 0, 1, 1], [], []>} : vector<16x4xbf16>, vector<4x256xbf16>, vector<16x256xf32> -> vector<16x256xf32>
    %c0_22 = arith.constant 0 : index
    %c0_23 = arith.constant 0 : index
    %35 = vector.load %arg7[%c0_22, %c0_23] : memref<16x9xf32, #tpu.memory_space<vmem>>, vector<16x9xf32>
    %36 = vector.extract_strided_slice %35 {offsets = [0, 4], sizes = [16, 1], strides = [1, 1]} : vector<16x9xf32> to vector<16x1xf32>
    %37 = vector.broadcast %36 : vector<16x1xf32> to vector<16x256xf32>
    %38 = arith.mulf %34, %37 : vector<16x256xf32>
    %c34_i32 = arith.constant 34 : i32
    %39 = tpu.dynamic_rotate %34 by %c34_i32 dim 1 : vector<16x256xf32>, i32 -> vector<16x256xf32>
    %40 = vector.extract_strided_slice %35 {offsets = [0, 0], sizes = [16, 1], strides = [1, 1]} : vector<16x9xf32> to vector<16x1xf32>
    %41 = vector.broadcast %40 : vector<16x1xf32> to vector<16x256xf32>
    %42 = arith.mulf %39, %41 : vector<16x256xf32>
    %c0_24 = arith.constant 0 : index
    %c0_25 = arith.constant 0 : index
    %43 = vector.load %arg8[%c0_24, %c0_25] : memref<8x256xf32, #tpu.memory_space<vmem>>, vector<1x256xf32>
    %44 = vector.broadcast %43 : vector<1x256xf32> to vector<16x256xf32>
    %45 = arith.mulf %42, %44 : vector<16x256xf32>
    %46 = arith.addf %38, %45 : vector<16x256xf32>
    %c32_i32 = arith.constant 32 : i32
    %47 = tpu.dynamic_rotate %34 by %c32_i32 dim 1 : vector<16x256xf32>, i32 -> vector<16x256xf32>
    %48 = vector.extract_strided_slice %35 {offsets = [0, 1], sizes = [16, 1], strides = [1, 1]} : vector<16x9xf32> to vector<16x1xf32>
    %49 = vector.broadcast %48 : vector<16x1xf32> to vector<16x256xf32>
    %50 = arith.mulf %47, %49 : vector<16x256xf32>
    %c1 = arith.constant 1 : index
    %c0_26 = arith.constant 0 : index
    %51 = vector.load %arg8[%c1, %c0_26] : memref<8x256xf32, #tpu.memory_space<vmem>>, vector<1x256xf32>
    %52 = vector.broadcast %51 : vector<1x256xf32> to vector<16x256xf32>
    %53 = arith.mulf %50, %52 : vector<16x256xf32>
    %54 = arith.addf %46, %53 : vector<16x256xf32>
    %c30_i32 = arith.constant 30 : i32
    %55 = tpu.dynamic_rotate %34 by %c30_i32 dim 1 : vector<16x256xf32>, i32 -> vector<16x256xf32>
    %56 = vector.extract_strided_slice %35 {offsets = [0, 2], sizes = [16, 1], strides = [1, 1]} : vector<16x9xf32> to vector<16x1xf32>
    %57 = vector.broadcast %56 : vector<16x1xf32> to vector<16x256xf32>
    %58 = arith.mulf %55, %57 : vector<16x256xf32>
    %c2 = arith.constant 2 : index
    %c0_27 = arith.constant 0 : index
    %59 = vector.load %arg8[%c2, %c0_27] : memref<8x256xf32, #tpu.memory_space<vmem>>, vector<1x256xf32>
    %60 = vector.broadcast %59 : vector<1x256xf32> to vector<16x256xf32>
    %61 = arith.mulf %58, %60 : vector<16x256xf32>
    %62 = arith.addf %54, %61 : vector<16x256xf32>
    %c2_i32 = arith.constant 2 : i32
    %63 = tpu.dynamic_rotate %34 by %c2_i32 dim 1 : vector<16x256xf32>, i32 -> vector<16x256xf32>
    %64 = vector.extract_strided_slice %35 {offsets = [0, 3], sizes = [16, 1], strides = [1, 1]} : vector<16x9xf32> to vector<16x1xf32>
    %65 = vector.broadcast %64 : vector<16x1xf32> to vector<16x256xf32>
    %66 = arith.mulf %63, %65 : vector<16x256xf32>
    %c3 = arith.constant 3 : index
    %c0_28 = arith.constant 0 : index
    %67 = vector.load %arg8[%c3, %c0_28] : memref<8x256xf32, #tpu.memory_space<vmem>>, vector<1x256xf32>
    %68 = vector.broadcast %67 : vector<1x256xf32> to vector<16x256xf32>
    %69 = arith.mulf %66, %68 : vector<16x256xf32>
    %70 = arith.addf %62, %69 : vector<16x256xf32>
    %c254_i32 = arith.constant 254 : i32
    %71 = tpu.dynamic_rotate %34 by %c254_i32 dim 1 : vector<16x256xf32>, i32 -> vector<16x256xf32>
    %72 = vector.extract_strided_slice %35 {offsets = [0, 5], sizes = [16, 1], strides = [1, 1]} : vector<16x9xf32> to vector<16x1xf32>
    %73 = vector.broadcast %72 : vector<16x1xf32> to vector<16x256xf32>
    %74 = arith.mulf %71, %73 : vector<16x256xf32>
    %c4 = arith.constant 4 : index
    %c0_29 = arith.constant 0 : index
    %75 = vector.load %arg8[%c4, %c0_29] : memref<8x256xf32, #tpu.memory_space<vmem>>, vector<1x256xf32>
    %76 = vector.broadcast %75 : vector<1x256xf32> to vector<16x256xf32>
    %77 = arith.mulf %74, %76 : vector<16x256xf32>
    %78 = arith.addf %70, %77 : vector<16x256xf32>
    %c226_i32 = arith.constant 226 : i32
    %79 = tpu.dynamic_rotate %34 by %c226_i32 dim 1 : vector<16x256xf32>, i32 -> vector<16x256xf32>
    %80 = vector.extract_strided_slice %35 {offsets = [0, 6], sizes = [16, 1], strides = [1, 1]} : vector<16x9xf32> to vector<16x1xf32>
    %81 = vector.broadcast %80 : vector<16x1xf32> to vector<16x256xf32>
    %82 = arith.mulf %79, %81 : vector<16x256xf32>
    %c5 = arith.constant 5 : index
    %c0_30 = arith.constant 0 : index
    %83 = vector.load %arg8[%c5, %c0_30] : memref<8x256xf32, #tpu.memory_space<vmem>>, vector<1x256xf32>
    %84 = vector.broadcast %83 : vector<1x256xf32> to vector<16x256xf32>
    %85 = arith.mulf %82, %84 : vector<16x256xf32>
    %86 = arith.addf %78, %85 : vector<16x256xf32>
    %c224_i32 = arith.constant 224 : i32
    %87 = tpu.dynamic_rotate %34 by %c224_i32 dim 1 : vector<16x256xf32>, i32 -> vector<16x256xf32>
    %88 = vector.extract_strided_slice %35 {offsets = [0, 7], sizes = [16, 1], strides = [1, 1]} : vector<16x9xf32> to vector<16x1xf32>
    %89 = vector.broadcast %88 : vector<16x1xf32> to vector<16x256xf32>
    %90 = arith.mulf %87, %89 : vector<16x256xf32>
    %c6 = arith.constant 6 : index
    %c0_31 = arith.constant 0 : index
    %91 = vector.load %arg8[%c6, %c0_31] : memref<8x256xf32, #tpu.memory_space<vmem>>, vector<1x256xf32>
    %92 = vector.broadcast %91 : vector<1x256xf32> to vector<16x256xf32>
    %93 = arith.mulf %90, %92 : vector<16x256xf32>
    %94 = arith.addf %86, %93 : vector<16x256xf32>
    %c222_i32 = arith.constant 222 : i32
    %95 = tpu.dynamic_rotate %34 by %c222_i32 dim 1 : vector<16x256xf32>, i32 -> vector<16x256xf32>
    %96 = vector.extract_strided_slice %35 {offsets = [0, 8], sizes = [16, 1], strides = [1, 1]} : vector<16x9xf32> to vector<16x1xf32>
    %97 = vector.broadcast %96 : vector<16x1xf32> to vector<16x256xf32>
    %98 = arith.mulf %95, %97 : vector<16x256xf32>
    %c7 = arith.constant 7 : index
    %c0_32 = arith.constant 0 : index
    %99 = vector.load %arg8[%c7, %c0_32] : memref<8x256xf32, #tpu.memory_space<vmem>>, vector<1x256xf32>
    %100 = vector.broadcast %99 : vector<1x256xf32> to vector<16x256xf32>
    %101 = arith.mulf %98, %100 : vector<16x256xf32>
    %102 = arith.addf %94, %101 : vector<16x256xf32>
    %c0_33 = arith.constant 0 : index
    %c0_34 = arith.constant 0 : index
    %c0_35 = arith.constant 0 : index
    %103 = vector.load %arg10[%c0_33, %c0_34, %c0_35] : memref<1x16x256xf32, #tpu.memory_space<vmem>>, vector<1x16x256xf32>
    %104 = vector.shape_cast %103 : vector<1x16x256xf32> to vector<16x256xf32>
    %105 = vector.shape_cast %102 : vector<16x256xf32> to vector<1x16x256xf32>
    tpu.vector_store %arg10[%c0_33, %c0_34, %c0_35], %105 {strides = array<i32>} : memref<1x16x256xf32, #tpu.memory_space<vmem>>, vector<1x16x256xf32>,
    return
  }
  func.func @transform_0(%arg0: i32) -> (i32, i32, i32) {
    %c0_i32 = arith.constant 0 : i32
    %c0_i32_0 = arith.constant 0 : i32
    %c0_i32_1 = arith.constant 0 : i32
    return %arg0, %c0_i32, %c0_i32_0 : i32, i32, i32
  }
  func.func @transform_1(%arg0: i32) -> (i32, i32, i32) {
    %c0_i32 = arith.constant 0 : i32
    %c0_i32_0 = arith.constant 0 : i32
    %c0_i32_1 = arith.constant 0 : i32
    return %arg0, %c0_i32, %c0_i32_0 : i32, i32, i32
  }
  func.func @transform_2(%arg0: i32) -> (i32, i32) {
    %c0_i32 = arith.constant 0 : i32
    %c0_i32_0 = arith.constant 0 : i32
    %c0_i32_1 = arith.constant 0 : i32
    return %c0_i32, %c0_i32_0 : i32, i32
  }
  func.func @transform_3(%arg0: i32) -> (i32, i32) {
    %c0_i32 = arith.constant 0 : i32
    %c0_i32_0 = arith.constant 0 : i32
    %c0_i32_1 = arith.constant 0 : i32
    return %c0_i32, %c0_i32_0 : i32, i32
  }
  func.func @transform_4(%arg0: i32) -> (i32, i32) {
    %c0_i32 = arith.constant 0 : i32
    %c0_i32_0 = arith.constant 0 : i32
    %c0_i32_1 = arith.constant 0 : i32
    return %c0_i32, %c0_i32_0 : i32, i32
  }
  func.func @transform_5(%arg0: i32) -> (i32, i32) {
    %c0_i32 = arith.constant 0 : i32
    %c0_i32_0 = arith.constant 0 : i32
    %c0_i32_1 = arith.constant 0 : i32
    return %c0_i32, %c0_i32_0 : i32, i32
  }
  func.func @transform_6(%arg0: i32) -> (i32, i32) {
    %c0_i32 = arith.constant 0 : i32
    %c0_i32_0 = arith.constant 0 : i32
    %c0_i32_1 = arith.constant 0 : i32
    return %c0_i32, %c0_i32_0 : i32, i32
  }
  func.func @transform_7(%arg0: i32) -> (i32, i32) {
    %c0_i32 = arith.constant 0 : i32
    %c0_i32_0 = arith.constant 0 : i32
    %c0_i32_1 = arith.constant 0 : i32
    return %c0_i32, %c0_i32_0 : i32, i32
  }
  func.func @transform_8(%arg0: i32) -> (i32, i32, i32) {
    %c0_i32 = arith.constant 0 : i32
    %c0_i32_0 = arith.constant 0 : i32
    %c0_i32_1 = arith.constant 0 : i32
    return %arg0, %c0_i32, %c0_i32_0 : i32, i32, i32
  }
  func.func @transform_9(%arg0: i32) -> (i32, i32, i32) {
    %c0_i32 = arith.constant 0 : i32
    %c0_i32_0 = arith.constant 0 : i32
    %c0_i32_1 = arith.constant 0 : i32
    return %arg0, %c0_i32, %c0_i32_0 : i32, i32, i32
  }
}

module attributes {stable_mosaic.version = 11 : i64} {
  func.func @kernel(%arg0: i32, %arg1: i32, %arg2: memref<1x4x256xf32, #tpu.memory_space<vmem>>, %arg3: memref<1x16x256xbf16, #tpu.memory_space<vmem>>, %arg4: memref<4x8xbf16, #tpu.memory_space<vmem>>, %arg5: memref<1x4x256xf32, #tpu.memory_space<vmem>>) attributes {dimension_semantics = [#tpu.dimension_semantics<parallel>, #tpu.dimension_semantics<parallel>], iteration_bounds = array<i64: 2, 1>, scalar_prefetch = 0 : i64, scratch_operands = 0 : i64, tpu.core_type = #tpu.core_type<tc>, window_params = [{transform_indices = @transform_0, window_bounds = array<i64: 1, 4, 256>}, {transform_indices = @transform_1, window_bounds = array<i64: 1, 16, 256>}, {pipeline_mode = #tpu.pipeline_mode<synchronous>, transform_indices = @transform_2, window_bounds = array<i64: 4, 8>}, {transform_indices = @transform_3, window_bounds = array<i64: 1, 4, 256>}]} {
    %c0 = arith.constant 0 : index
    %c0_0 = arith.constant 0 : index
    %c0_1 = arith.constant 0 : index
    %0 = vector.load %arg3[%c0, %c0_0, %c0_1] : memref<1x16x256xbf16, #tpu.memory_space<vmem>>, vector<1x16x256xbf16>
    %1 = vector.shape_cast %0 : vector<1x16x256xbf16> to vector<16x256xbf16>
    %2 = arith.extf %1 : vector<16x256xbf16> to vector<16x256xf32>
    %3 = vector.extract_strided_slice %2 {offsets = [0, 0], sizes = [8, 256], strides = [1, 1]} : vector<16x256xf32> to vector<8x256xf32>
    %4 = vector.extract_strided_slice %2 {offsets = [8, 0], sizes = [8, 256], strides = [1, 1]} : vector<16x256xf32> to vector<8x256xf32>
    %cst = arith.constant 0.000000e+00 : f32
    %5 = vector.broadcast %cst : f32 to vector<8x256xf32>
    %6 = arith.subf %5, %3 : vector<8x256xf32>
    %7 = math.exp %6 : vector<8x256xf32>
    %cst_2 = arith.constant 1.000000e+00 : f32
    %8 = vector.broadcast %cst_2 : f32 to vector<8x256xf32>
    %9 = arith.addf %8, %7 : vector<8x256xf32>
    %cst_3 = arith.constant 1.000000e+00 : f32
    %10 = vector.broadcast %cst_3 : f32 to vector<8x256xf32>
    %11 = arith.divf %10, %9 : vector<8x256xf32>
    %12 = arith.mulf %3, %11 : vector<8x256xf32>
    %13 = arith.mulf %12, %4 : vector<8x256xf32>
    %c0_4 = arith.constant 0 : index
    %c0_5 = arith.constant 0 : index
    %14 = vector.load %arg4[%c0_4, %c0_5] : memref<4x8xbf16, #tpu.memory_space<vmem>>, vector<4x8xbf16>
    %15 = arith.truncf %13 : vector<8x256xf32> to vector<8x256xbf16>
    %cst_6 = arith.constant dense<0.000000e+00> : vector<4x256xf32>
    %16 = tpu.matmul %14, %15, %cst_6 {dimension_numbers = #tpu.dot_dimension_numbers<[1], [0], [0], [1], [0, 0, 1, 1], [], []>} : vector<4x8xbf16>, vector<8x256xbf16>, vector<4x256xf32> -> vector<4x256xf32>
    %c0_7 = arith.constant 0 : index
    %c0_8 = arith.constant 0 : index
    %c0_9 = arith.constant 0 : index
    %17 = vector.load %arg2[%c0_7, %c0_8, %c0_9] : memref<1x4x256xf32, #tpu.memory_space<vmem>>, vector<1x4x256xf32>
    %18 = vector.shape_cast %17 : vector<1x4x256xf32> to vector<4x256xf32>
    %19 = arith.addf %18, %16 : vector<4x256xf32>
    %c0_10 = arith.constant 0 : index
    %c0_11 = arith.constant 0 : index
    %c0_12 = arith.constant 0 : index
    %20 = vector.load %arg5[%c0_10, %c0_11, %c0_12] : memref<1x4x256xf32, #tpu.memory_space<vmem>>, vector<1x4x256xf32>
    %21 = vector.shape_cast %20 : vector<1x4x256xf32> to vector<4x256xf32>
    %22 = vector.shape_cast %19 : vector<4x256xf32> to vector<1x4x256xf32>
    tpu.vector_store %arg5[%c0_10, %c0_11, %c0_12], %22 {strides = array<i32>} : memref<1x4x256xf32, #tpu.memory_space<vmem>>, vector<1x4x256xf32>,
    return
  }
  func.func @transform_0(%arg0: i32, %arg1: i32) -> (i32, i32, i32) {
    %c0_i32 = arith.constant 0 : i32
    %c0_i32_0 = arith.constant 0 : i32
    return %arg0, %c0_i32, %arg1 : i32, i32, i32
  }
  func.func @transform_1(%arg0: i32, %arg1: i32) -> (i32, i32, i32) {
    %c0_i32 = arith.constant 0 : i32
    %c0_i32_0 = arith.constant 0 : i32
    return %arg0, %c0_i32, %arg1 : i32, i32, i32
  }
  func.func @transform_2(%arg0: i32, %arg1: i32) -> (i32, i32) {
    %c0_i32 = arith.constant 0 : i32
    %c0_i32_0 = arith.constant 0 : i32
    %c0_i32_1 = arith.constant 0 : i32
    return %c0_i32, %c0_i32_0 : i32, i32
  }
  func.func @transform_3(%arg0: i32, %arg1: i32) -> (i32, i32, i32) {
    %c0_i32 = arith.constant 0 : i32
    %c0_i32_0 = arith.constant 0 : i32
    return %arg0, %c0_i32, %arg1 : i32, i32, i32
  }
}

</mosaic_0001>

<bundles_post_ra>
// kernel: _lambda_.4
= control target key start
LH: loop header
LB: loop body
LE: loop exit
PB: predicated region body
PF: predicated region fallthrough
CT: control target
= control target key end

     0   :  { %s953_s21 = smov 0   ;;  %s1304_s0 = inlined_call_operand.vmem [shape: f32[2,4,256], index: 0, kind: input, shape index: {}]   ;;  %s1305_s1 = inlined_call_operand.vmem [shape: f32[4,1], index: 1, kind: input, shape index: {}]   ;;  %s1306_s2 = inlined_call_operand.vmem [shape: f32[4,1], index: 2, kind: input, shape index: {}]   ;;  %s1307_s3 = inlined_call_operand.vmem [shape: bf16[12,4], index: 3, kind: input, shape index: {}]   ;;  %s1308_s4 = inlined_call_operand.vmem [shape: f32[12,9], index: 4, kind: input, shape index: {}]   ;;  %s1309_s5 = inlined_call_operand.vmem [shape: f32[8,256], index: 5, kind: input, shape index: {}]   ;;  %s1310_s6 = inlined_call_operand.vmem [shape: f32[2,12,256], index: 6, kind: output, shape index: {}]  }
   0x1 LB: > { %s813_s22 = sadd.s32 4294967295, %s897_s21   ;;  %p817_p0 = scmp.ge.s32.totalorder %s897_s21, 1  ;;  %s897_s21 = sphi %s953_s21, %s16_s21  }
   0x2   : > { %p212_p1 = scmp.lt.s32.totalorder %s897_s21, 3 }
   0x4   : > { %p213_p2 = pnand %p817_p0, %p212_p1 }
   0x5   : > { %p242_p3 = scmp.lt.s32.totalorder (!%p213_p2), %s813_s22, 1  ;;  %s909_s15 = smov (!%p213_p2), 17  }
   0x6   : > { %216 = sbr.rel (%p213_p2) target bundleno = 485 (0x1e5), region = 44  ;;  %s910_s16 = smov (!%p213_p2), 16  }
   0x7   : > { %s911_s17 = smov (!%p213_p2), 15   ;;  %s912_s18 = smov (!%p213_p2), 1  }
   0x8   : > { %s913_s19 = smov (!%p213_p2), 127   ;;  %s914_s20 = smov (!%p213_p2), 113  }
   0x9   : > { %s915_s23 = smov (!%p213_p2), 112   ;;  %s916_s24 = smov (!%p213_p2), 111  }
   0xb   : > { %v254_v0 = vld [vmem:[%s1305_s1] sm:$0xf]  ;;  %v899_v1 = vmov 0   ;;  %v900_v2 = vmov 4.0   ;;  %s1312_s22 = smov (!%p242_p3, %s813_s22), 1  ;;  %vm262_vm0 = vcmask 1043456  }
   0xc   : > { %867 = vset.pattern.permute.xlu0 %v899_v1  ;;  %869 = vset.pattern.permute.xlu2 %v899_v1  ;;  %885 = vrcp.f32 %v900_v2  ;;  %s837_s25 = sshll.u32 %s1312_s22, 3  ;;  %v255_v3 = vld [vmem:[%s1306_s2] sm:$0xf]  ;;  %v976_v7 = vld [vmem:[%s1308_s4 + $0x8] sm:$0xf]  ;;  %vm382_vm8 = vcmask 1041408  }
   0xd   : > { %345 = vperm.xlu0 %867, %v254_v0   ;;  %s246_s28 = scalar_lea.vmem %s1304_s0, %s837_s25  ;;  %vm378_vm9 = vcmask 31744  }
   0xe   : > { %v253_v5 = vld [vmem:[%s246_s28] sm:$0xff] }
   0xf   : > { %257 = vst [vmem:[#allocation1] ss:$2 sm:$0xff] %v253_v5 }
  0x12   : > { %v886_v4 = vpop.eup %885 }
  0x13   : > { %v278_v6 = vmul.f32 4.0, %v886_v4  ;;  %vm282_vm1 = vweird.f32 %v886_v4 }
  0x15   : > { %355 = vperm.xlu0 %867, %v255_v3   ;;  %v279_v8 = vsub.f32 1.0, %v278_v6 }
  0x16   : > { %v259_v9 = vld.sshfl [vmem:[#allocation1 + $0x8] sm:$0xff pattern:$0x75316420]  ;;  %v258_v11 = vld.sshfl [vmem:[#allocation1] sm:$0xff pattern:$0x75316420] }
  0x17   : > { %v270_v10 = vsel %vm262_vm0, %v259_v9, 0.0  ;;  %v280_v13 = vmul.f32 %v886_v4, %v279_v8  ;;  %v263_v14 = vsel %vm262_vm0, %v258_v11, 0.0  ;;  %v988_v8 = vld [vmem:[%s1308_s4] sm:$0xff]  ;;  %v901_v9 = vmov 4  }
  0x18   : > { %v271_v12 = vrot.slane %v270_v10, 4  ;;  %v264_v15 = vrot.slane %v263_v14, 4  ;;  %868 = vset.pattern.permute.xlu1 %v901_v9  ;;  %449 = vperm.xlu2 %869, %v988_v8  }
  0x19   : > { %v281_v19 = vadd.f32 %v886_v4, %v280_v13  ;;  %421 = vperm.xlu1 %868, %v988_v8  }
  0x1a   : > { %v272_v16 = vadd.f32 %v271_v12, %v270_v10  ;;  %v265_v17 = vadd.f32 %v264_v15, %v263_v14  ;;  %v902_v10 = vmov 839922192   ;;  %v903_v12 = vmov 1  }
  0x1b   : > { %v283_v24 = vsel %vm282_vm1, %v886_v4, %v281_v19  ;;  %v348_v11 = vunpack.c.l.s4 %v902_v10 }
  0x1c   : > { %v273_v18 = vrot.slane %v272_v16, 2  ;;  %v266_v20 = vrot.slane %v265_v17, 2 }
  0x1d   : > { %453 = vperm.xlu0 %867, %v976_v7   ;;  %v349_v14 = vunpack.c.0.s8 %v348_v11 }
  0x1e   : > { %v274_v21 = vadd.f32 %v273_v18, %v272_v16  ;;  %v267_v22 = vadd.f32 %v266_v20, %v265_v17  ;;  %v904_v16 = vmov 2  }
  0x20   : > { %v275_v23 = vrot.slane %v274_v21, 1  ;;  %v268_v25 = vrot.slane %v267_v22, 1  ;;  %870 = vset.pattern.permute.xlu2 %v903_v12 }
  0x21   : > { %426 = vperm.xlu1 %868, %v976_v7   ;;  %488 = vperm.xlu2 %870, %v988_v8  }
  0x22   : > { %v276_v26 = vadd.f32 %v275_v23, %v274_v21  ;;  %v269_v27 = vadd.f32 %v268_v25, %v267_v22  ;;  %v905_v21 = vmov 3   ;;  %v824_v22 = vld [vmem:[%s1307_s3] sm:$0xf]  ;;  %v839_v23 = vld [vmem:[%s1307_s3] sm:$0x30] }
  0x24   : > { %v285_v28 = vmul.f32 %v283_v24, %v276_v26  ;;  %v284_v29 = vmul.f32 %v283_v24, %v269_v27 }
  0x25   : > { %871 = vset.pattern.permute.xlu0 %v903_v12 }
  0x26   : > { %v288_v30 = vrot.slane %v285_v28, 4  ;;  %492 = vperm.xlu0 %871, %v976_v7   ;;  %v906_v28 = vmov 5  }
  0x28   : > { %v289_v31 = vsel %vm262_vm0, %v284_v29, %v288_v30 }
  0x29   : > { %v291_v32 = vsub.f32 %v253_v5, %v289_v31  ;;  %873 = vset.pattern.permute.xlu1 %v904_v16  ;;  %875 = vset.pattern.permute.xlu2 %v905_v21  ;;  %v825_v31 = vor.u32 %v839_v23, %v824_v22 }
  0x2a   : > { %532 = vperm.xlu1 %873, %v976_v7   ;;  %572 = vperm.xlu2 %875, %v976_v7  }
  0x2b   : > { %v292_v33 = vmul.f32 %v291_v32, %v291_v32 }
  0x2d   : > { %294 = vst [vmem:[#allocation1] ss:$2 sm:$0xff] %v292_v33  ;;  %v908_v33 = vmov 7  }
  0x2e   : > { %872 = vset.pattern.permute.xlu0 %v904_v16 }
  0x2f   : > { %528 = vperm.xlu0 %872, %v988_v8  }
  0x32   : > { %874 = vset.pattern.permute.xlu1 %v905_v21  ;;  %877 = vset.pattern.permute.xlu2 %v906_v28 }
  0x33   : > { %568 = vperm.xlu1 %874, %v988_v8   ;;  %612 = vperm.xlu2 %877, %v976_v7  }
  0x34   : > { %v296_v34 = vld.sshfl [vmem:[#allocation1 + $0x8] sm:$0xff pattern:$0x75316420]  ;;  %v295_v36 = vld.sshfl [vmem:[#allocation1] sm:$0xff pattern:$0x75316420] }
  0x35   : > { %v306_v35 = vsel %vm262_vm0, %v296_v34, 0.0  ;;  %v299_v38 = vsel %vm262_vm0, %v295_v36, 0.0 }
  0x36   : > { %v307_v37 = vrot.slane %v306_v35, 4  ;;  %v300_v39 = vrot.slane %v299_v38, 4 }
  0x38   : > { %v308_v40 = vadd.f32 %v307_v37, %v306_v35  ;;  %v301_v41 = vadd.f32 %v300_v39, %v299_v38 }
  0x3a   : > { %v309_v42 = vrot.slane %v308_v40, 2  ;;  %v302_v43 = vrot.slane %v301_v41, 2 }
  0x3b   : > { %876 = vset.pattern.permute.xlu1 %v906_v28 }
  0x3c   : > { %v310_v44 = vadd.f32 %v309_v42, %v308_v40  ;;  %v303_v45 = vadd.f32 %v302_v43, %v301_v41  ;;  %608 = vperm.xlu1 %876, %v988_v8  }
  0x3e   : > { %v311_v46 = vrot.slane %v310_v44, 1  ;;  %v304_v47 = vrot.slane %v303_v45, 1 }
  0x40   : > { %v312_v48 = vadd.f32 %v311_v46, %v310_v44  ;;  %v305_v49 = vadd.f32 %v304_v47, %v303_v45  ;;  %v917_v44 = vmov 8  }
  0x41   : > { %884 = vset.pattern.permute.xlu0 %v917_v44 }
  0x42   : > { %v314_v50 = vmul.f32 %v312_v48, %v283_v24  ;;  %v313_v51 = vmul.f32 %v305_v49, %v283_v24 }
  0x44   : > { %v316_v52 = vadd.f32 1e-05, %v314_v50  ;;  %v315_v53 = vadd.f32 1e-05, %v313_v51 }
  0x46   : > { %887 = vrsqrt.f32 %v316_v52  ;;  %vm333_vm2 = vweird.f32 %v316_v52  ;;  %vm323_vm5 = vweird.f32 %v315_v53 }
  0x47   : > { %889 = vrsqrt.f32 %v315_v53 }
  0x4c   : > { %v888_v54 = vpop.eup %887 }
  0x4d   : > { %v328_v55 = vmul.f32 %v888_v54, %v316_v52  ;;  %v890_v56 = vpop.eup %889  ;;  %vm334_vm3 = vweird.f32 %v888_v54 }
  0x4e   : > { %v318_v57 = vmul.f32 %v890_v56, %v315_v53  ;;  %vm335_vm4 = vmor %vm333_vm2, %vm334_vm3  ;;  %vm324_vm6 = vweird.f32 %v890_v56 }
  0x4f   : > { %v329_v58 = vmul.f32 %v888_v54, %v328_v55  ;;  %vm325_vm7 = vmor %vm323_vm5, %vm324_vm6 }
  0x50   : > { %v319_v59 = vmul.f32 %v890_v56, %v318_v57 }
  0x51   : > { %v330_v60 = vmul.f32 0.5, %v329_v58 }
  0x52   : > { %v320_v61 = vmul.f32 0.5, %v319_v59 }
  0x53   : > { %v331_v62 = vsub.f32 1.5, %v330_v60 }
  0x54   : > { %v321_v63 = vsub.f32 1.5, %v320_v61 }
  0x55   : > { %v332_v0 = vmul.f32 %v888_v54, %v331_v62 }
  0x56   : > { %v322_v1 = vmul.f32 %v890_v56, %v321_v63 }
  0x57   : > { %v336_v2 = vsel %vm335_vm4, %v888_v54, %v332_v0 }
  0x58   : > { %v339_v3 = vrot.slane %v336_v2, 4  ;;  %v326_v4 = vsel %vm325_vm7, %v890_v56, %v322_v1  ;;  %v441_v56 = vlaneseq  ;;  %v1087_v1 = vld [vmem:[%s1309_s5] ss:$8 sm:$0x3] }
  0x59   : > { %v462_v2 = vperm.slane %v1087_v1, 0 }
  0x5a   : > { %v340_v5 = vsel %vm262_vm0, %v326_v4, %v339_v3  ;;  %v1075_v58 = vand.u32 127, %v441_v56  ;;  %v463_v3 = vperm.slane %v1087_v1, 1 }
  0x5b   : > { %v342_v6 = vmul.f32 %v340_v5, %v291_v32  ;;  %v907_v32 = vmov 6  }
  0x5c   : > { %879 = vset.pattern.permute.xlu2 %v907_v32  ;;  %878 = vset.pattern.permute.xlu1 %v907_v32  ;;  %vm562_vm10 = vcmp.lt.s32.totalorder %v1075_v58, 1  ;;  %vm443_vm11 = vcmp.lt.s32.totalorder %v1075_v58, 17  ;;  %vm482_vm12 = vcmp.lt.s32.totalorder %v1075_v58, 16  ;;  %vm522_vm13 = vcmp.lt.s32.totalorder %v1075_v58, 15 }
  0x5d   : > { %652 = vperm.xlu2 %879, %v976_v7   ;;  %648 = vperm.xlu1 %878, %v988_v8   ;;  %v1130_v32 = vld [vmem:[%s1309_s5 + $0x3] ss:$8 sm:$0x3]  ;;  %vm602_vm14 = vcmp.lt.s32.totalorder %v1075_v58, 127  ;;  %vm642_vm15 = vcmp.lt.s32.totalorder %v1075_v58, 113  ;;  %vm682_vm0 = vcmp.lt.s32.totalorder %v1075_v58, 112 }
  0x5e   : > { %vm722_vm1 = vcmp.lt.s32.totalorder %v1075_v58, 111 }
  0x65   : > { %881 = vset.pattern.permute.xlu2 %v908_v33  ;;  %880 = vset.pattern.permute.xlu1 %v908_v33 }
  0x66   : > { %692 = vperm.xlu2 %881, %v976_v7   ;;  %688 = vperm.xlu1 %880, %v988_v8  }
  0x6e   : > { %882 = vset.pattern.permute.xlu1 %v917_v44  ;;  %883 = vset.pattern.permute.xlu2 %v917_v44 }
  0x72   : > { %v450_v42 = vpop.permute.xlu2 %449 }
  0x7b   : > { %v1042_v43 = vpop.permute.xlu2 %488 }
  0x7f   : > { %v346_v13 = vpop.permute.xlu0 %345 }
  0x80   : > { %v350_v15 = vperm.slane %v346_v13, %v349_v14 }
  0x82   : > { %v352_v18 = vmul.f32 %v350_v15, %v342_v6  ;;  %v1105_v15 = vld [vmem:[%s1309_s5 + $0x1] ss:$8 sm:$0x3] }
  0x84   : > { %v1046_v45 = vpop.permute.xlu2 %572 }
  0x87   : > { %v356_v17 = vpop.permute.xlu0 %355 }
  0x88   : > { %v360_v19 = vperm.slane %v356_v17, %v349_v14 }
  0x8a   : > { %v362_v20 = vadd.f32 %v360_v19, %v352_v18  ;;  %v502_v18 = vperm.slane %v1105_v15, 0  ;;  %v503_v19 = vperm.slane %v1105_v15, 1 }
  0x8b   : > { %v1011_v34 = vpop.permute.xlu1 %421 }
  0x8c   : > { %366 = vst [vmem:[#allocation1] ss:$2 sm:$0xff] %v362_v20 }
  0x8d   : > { %v1050_v46 = vpop.permute.xlu2 %612 }
  0x8f   : > { %v1068_v52 = vpop.permute.xlu0 %453 }
  0x93   : > { %v367_v24 = vld.sshfl [vmem:[#allocation1] sm:$0xff pattern:$0x75316420]  ;;  %v368_v25 = vld.sshfl [vmem:[#allocation1 + $0x8] sm:$0xff pattern:$0x75316420]  ;;  %v1022_v38 = vpop.permute.xlu1 %426 }
  0x94   : > { %v371_v26 = vpack.c.bf16 %v367_v24, %v367_v24  ;;  %v372_v27 = vpack.c.bf16 %v368_v25, %v368_v25 }
  0x96   : > { %v384_v29 = vsel %vm382_vm8, %v371_v26, 0  ;;  %v387_v30 = vsel %vm382_vm8, %v372_v27, 0 }
  0x97   : > { %396 = vmatpush.bf16.msra.mxu0 %v384_v29  ;;  %410 = vmatpush.bf16.msra.mxu1 %v387_v30  ;;  %v1124_v29 = vld [vmem:[%s1309_s5 + $0x2] ss:$8 sm:$0x3] }
  0x98   : > { %v1071_v54 = vpop.permute.xlu0 %492 }
  0x9a   : > { %826 = vmatmul.msk.bf16.vlgmr.msra.gmra.mxu0 %vm378_vm9, %v825_v31  ;;  %827 = vmatmul.msk.bf16.vlgmr.msra.gmra.mxu1 %vm378_vm9, %v825_v31 }
  0x9c   : > { %v1053_v47 = vpop.permute.xlu1 %532 }
  0xa1   : > { %v529_v60 = vpop.permute.xlu0 %528 }
  0xa5   : > { %v569_v49 = vpop.permute.xlu1 %568 }
  0xae   : > { %v1066_v51 = vpop.permute.xlu1 %608 }
  0xb7   : > { %v1056_v48 = vpop.permute.xlu2 %652 }
  0xc0   : > { %v1064_v50 = vpop.permute.xlu2 %692 }
  0xcf   : > { %v1073_v55 = vpop.permute.xlu1 %648 }
  0xd8   : > { %v1077_v59 = vpop.permute.xlu1 %688 }
 0x117   : > { %v398_v35 = vpop.f32.mrf.mxu0  ;;  %v1013_v36 = vpop.f32.mrf.mxu1 }
 0x118   : > { %437 = vrot.lane.b32.xlu0 %v1013_v36, %s909_s15  ;;  %474 = vrot.lane.b32.xlu1 %v398_v35, %s910_s16  ;;  %v1019_v37 = vmul.f32 %v1011_v34, %v398_v35  ;;  %v430_v12 = vmul.f32 %v1011_v34, %v1013_v36  ;;  %v542_v34 = vperm.slane %v1124_v29, 0 }
 0x119   : > { %433 = vrot.lane.b32.xlu2 %v398_v35, %s909_s15 }
 0x11f   : > { %v400_v39 = vpop.f32.mrf.mxu0  ;;  %v1033_v41 = vpop.f32.mrf.mxu1 }
 0x120   : > { %478 = vrot.lane.b32.xlu0 %v1013_v36, %s910_s16  ;;  %514 = vrot.lane.b32.xlu1 %v398_v35, %s911_s17  ;;  %v1028_v40 = vmul.f32 %v1022_v38, %v400_v39 }
 0x121   : > { %554 = vrot.lane.b32.xlu2 %v398_v35, %s912_s18 }
 0x128   : > { %594 = vrot.lane.b32.xlu0 %v398_v35, %s913_s19  ;;  %518 = vrot.lane.b32.xlu1 %v1013_v36, %s911_s17 }
 0x129   : > { %558 = vrot.lane.b32.xlu2 %v1013_v36, %s912_s18 }
 0x130   : > { %634 = vrot.lane.b32.xlu0 %v398_v35, %s914_s20  ;;  %439 = vrot.lane.b32.xlu1 %v1033_v41, %s909_s15 }
 0x131   : > { %598 = vrot.lane.b32.xlu2 %v1013_v36, %s913_s19 }
 0x138   : > { %674 = vrot.lane.b32.xlu0 %v398_v35, %s915_s23  ;;  %480 = vrot.lane.b32.xlu1 %v1033_v41, %s910_s16 }
 0x139   : > { %638 = vrot.lane.b32.xlu2 %v1013_v36, %s914_s20 }
 0x140   : > { %714 = vrot.lane.b32.xlu0 %v398_v35, %s916_s24  ;;  %556 = vrot.lane.b32.xlu1 %v400_v39, %s912_s18  ;;  %v543_v35 = vperm.slane %v1124_v29, 1 }
 0x141   : > { %678 = vrot.lane.b32.xlu2 %v1013_v36, %s915_s23 }
 0x148   : > { %560 = vrot.lane.b32.xlu0 %v1033_v41, %s912_s18  ;;  %596 = vrot.lane.b32.xlu1 %v400_v39, %s913_s19 }
 0x149   : > { %435 = vrot.lane.b32.xlu2 %v400_v39, %s909_s15 }
 0x150   : > { %600 = vrot.lane.b32.xlu0 %v1033_v41, %s913_s19  ;;  %636 = vrot.lane.b32.xlu1 %v400_v39, %s914_s20 }
 0x151   : > { %476 = vrot.lane.b32.xlu2 %v400_v39, %s910_s16 }
 0x158   : > { %640 = vrot.lane.b32.xlu0 %v1033_v41, %s914_s20  ;;  %676 = vrot.lane.b32.xlu1 %v400_v39, %s915_s23 }
 0x159   : > { %516 = vrot.lane.b32.xlu2 %v400_v39, %s911_s17 }
 0x160   : > { %680 = vrot.lane.b32.xlu0 %v1033_v41, %s915_s23  ;;  %716 = vrot.lane.b32.xlu1 %v400_v39, %s916_s24 }
 0x161   : > { %520 = vrot.lane.b32.xlu2 %v1033_v41, %s911_s17  ;;  %s838_s17 = sshll.u32 %s1312_s22, 5 }
 0x162   : > { %s251_s20 = scalar_lea.vmem %s1310_s6, %s838_s17 }
 0x168   : > { %720 = vrot.lane.b32.xlu0 %v1033_v41, %s916_s24  ;;  %728 = vperm.xlu1 %882, %v988_v8  }
 0x169   : > { %718 = vrot.lane.b32.xlu2 %v1013_v36, %s916_s24 }
 0x171   : > { %732 = vperm.xlu2 %883, %v976_v7  }
 0x173   : > { %v434_v53 = vpop.permute.xlu2 %433 }
 0x17b   : > { %v555_v57 = vpop.permute.xlu2 %554 }
 0x183   : > { %v559_v61 = vpop.permute.xlu2 %558 }
 0x184   : > { %v563_v62 = vsel %vm562_vm10, %v555_v57, %v559_v61  ;;  %v565_v7 = vsel %vm562_vm10, %v559_v61, %v555_v57 }
 0x185   : > { %v575_v63 = vmul.f32 %v569_v49, %v565_v7  ;;  %v576_v0 = vmul.f32 %v569_v49, %v563_v62 }
 0x18a   : > { %v438_v4 = vpop.permute.xlu0 %437  ;;  %v475_v5 = vpop.permute.xlu1 %474 }
 0x18b   : > { %v444_v6 = vsel %vm443_vm11, %v434_v53, %v438_v4  ;;  %v446_v8 = vsel %vm443_vm11, %v438_v4, %v434_v53  ;;  %v599_v9 = vpop.permute.xlu2 %598 }
 0x18c   : > { %v456_v10 = vmul.f32 %v450_v42, %v446_v8  ;;  %v457_v11 = vmul.f32 %v450_v42, %v444_v6  ;;  %v582_v42 = vperm.slane %v1130_v32, 0  ;;  %v1158_v8 = vld [vmem:[%s1309_s5 + $0x5] ss:$8 sm:$0x3] }
 0x18e   : > { %v466_v13 = vmul.f32 %v462_v2, %v456_v10  ;;  %v467_v14 = vmul.f32 %v463_v3, %v457_v11  ;;  %v586_v61 = vmul.f32 %v582_v42, %v575_v63 }
 0x190   : > { %v470_v16 = vadd.f32 %v466_v13, %v1019_v37  ;;  %v471_v17 = vadd.f32 %v467_v14, %v430_v12 }
 0x192   : > { %v479_v20 = vpop.permute.xlu0 %478  ;;  %v515_v21 = vpop.permute.xlu1 %514 }
 0x193   : > { %v483_v22 = vsel %vm482_vm12, %v475_v5, %v479_v20  ;;  %v485_v23 = vsel %vm482_vm12, %v479_v20, %v475_v5  ;;  %v639_v24 = vpop.permute.xlu2 %638  ;;  %v663_v20 = vperm.slane %v1158_v8, 1 }
 0x194   : > { %v495_v25 = vmul.f32 %v1042_v43, %v485_v23  ;;  %v496_v26 = vmul.f32 %v1042_v43, %v483_v22  ;;  %v583_v43 = vperm.slane %v1130_v32, 1 }
 0x196   : > { %v506_v27 = vmul.f32 %v502_v18, %v495_v25  ;;  %v507_v28 = vmul.f32 %v503_v19, %v496_v26  ;;  %v587_v62 = vmul.f32 %v583_v43, %v576_v0 }
 0x198   : > { %v510_v30 = vadd.f32 %v506_v27, %v470_v16  ;;  %v511_v31 = vadd.f32 %v507_v28, %v471_v17  ;;  %v662_v17 = vperm.slane %v1158_v8, 0 }
 0x19a   : > { %v595_v33 = vpop.permute.xlu0 %594  ;;  %v519_v36 = vpop.permute.xlu1 %518 }
 0x19b   : > { %v523_v37 = vsel %vm522_vm13, %v515_v21, %v519_v36  ;;  %v525_v39 = vsel %vm522_vm13, %v519_v36, %v515_v21  ;;  %v679_v53 = vpop.permute.xlu2 %678  ;;  %v603_v63 = vsel %vm602_vm14, %v595_v33, %v599_v9  ;;  %v605_v0 = vsel %vm602_vm14, %v599_v9, %v595_v33 }
 0x19c   : > { %v535_v44 = vmul.f32 %v529_v60, %v525_v39  ;;  %v536_v49 = vmul.f32 %v529_v60, %v523_v37  ;;  %v1153_v60 = vld [vmem:[%s1309_s5 + $0x4] ss:$8 sm:$0x3]  ;;  %v615_v21 = vmul.f32 %v1066_v51, %v603_v63  ;;  %v616_v22 = vmul.f32 %v1066_v51, %v605_v0 }
 0x19d   : > { %v622_v14 = vperm.slane %v1153_v60, 0  ;;  %v623_v16 = vperm.slane %v1153_v60, 1 }
 0x19e   : > { %v546_v56 = vmul.f32 %v542_v34, %v535_v44  ;;  %v547_v57 = vmul.f32 %v543_v35, %v536_v49 }
 0x19f   : > { %v626_v28 = vmul.f32 %v622_v14, %v615_v21  ;;  %v627_v51 = vmul.f32 %v623_v16, %v616_v22 }
 0x1a0   : > { %v550_v7 = vadd.f32 %v546_v56, %v510_v30  ;;  %v551_v4 = vadd.f32 %v547_v57, %v511_v31 }
 0x1a2   : > { %v590_v5 = vadd.f32 %v586_v61, %v550_v7  ;;  %v591_v6 = vadd.f32 %v587_v62, %v551_v4  ;;  %v635_v10 = vpop.permute.xlu0 %634  ;;  %v440_v11 = vpop.permute.xlu1 %439 }
 0x1a3   : > { %v643_v12 = vsel %vm642_vm15, %v635_v10, %v639_v24  ;;  %v645_v13 = vsel %vm642_vm15, %v639_v24, %v635_v10  ;;  %v1179_v24 = vld [vmem:[%s1309_s5 + $0x6] ss:$8 sm:$0x3]  ;;  %v436_v25 = vpop.permute.xlu2 %435 }
 0x1a4   : > { %v655_v9 = vmul.f32 %v1073_v55, %v643_v12  ;;  %v656_v23 = vmul.f32 %v1073_v55, %v645_v13  ;;  %v702_v26 = vperm.slane %v1179_v24, 0  ;;  %v703_v27 = vperm.slane %v1179_v24, 1 }
 0x1a5   : > { %v630_v39 = vadd.f32 %v626_v28, %v590_v5  ;;  %v631_v44 = vadd.f32 %v627_v51, %v591_v6  ;;  %v445_v21 = vsel %vm443_vm11, %v436_v25, %v440_v11  ;;  %v447_v22 = vsel %vm443_vm11, %v440_v11, %v436_v25 }
 0x1a6   : > { %v666_v55 = vmul.f32 %v662_v17, %v655_v9  ;;  %v667_v30 = vmul.f32 %v663_v20, %v656_v23  ;;  %v458_v51 = vmul.f32 %v1068_v52, %v447_v22 }
 0x1a8   : > { %v670_v57 = vadd.f32 %v666_v55, %v630_v39  ;;  %v671_v61 = vadd.f32 %v667_v30, %v631_v44  ;;  %v459_v55 = vmul.f32 %v1068_v52, %v445_v21  ;;  %v468_v39 = vmul.f32 %v462_v2, %v458_v51 }
 0x1aa   : > { %v675_v31 = vpop.permute.xlu0 %674  ;;  %v481_v33 = vpop.permute.xlu1 %480 }
 0x1ab   : > { %v683_v36 = vsel %vm682_vm0, %v675_v31, %v679_v53  ;;  %v685_v37 = vsel %vm682_vm0, %v679_v53, %v675_v31  ;;  %v477_v63 = vpop.permute.xlu2 %476 }
 0x1ac   : > { %v695_v49 = vmul.f32 %v1077_v59, %v683_v36  ;;  %v696_v56 = vmul.f32 %v1077_v59, %v685_v37  ;;  %v484_v23 = vsel %vm482_vm12, %v477_v63, %v481_v33  ;;  %v486_v28 = vsel %vm482_vm12, %v481_v33, %v477_v63 }
 0x1ad   : > { %v497_v36 = vmul.f32 %v1071_v54, %v486_v28  ;;  %v498_v11 = vmul.f32 %v1071_v54, %v484_v23  ;;  %v469_v33 = vmul.f32 %v463_v3, %v459_v55 }
 0x1ae   : > { %v706_v62 = vmul.f32 %v702_v26, %v695_v49  ;;  %v707_v7 = vmul.f32 %v703_v27, %v696_v56  ;;  %v432_v49 = vmul.f32 %v1022_v38, %v1033_v41  ;;  %v472_v38 = vadd.f32 %v468_v39, %v1028_v40 }
 0x1af   : > { %v508_v56 = vmul.f32 %v502_v18, %v497_v36  ;;  %v509_v54 = vmul.f32 %v503_v19, %v498_v11 }
 0x1b0   : > { %v1202_v4 = vadd.f32 %v706_v62, %v670_v57  ;;  %v1204_v10 = vadd.f32 %v707_v7, %v671_v61  ;;  %v473_v41 = vadd.f32 %v469_v33, %v432_v49 }
 0x1b1   : > { %v512_v63 = vadd.f32 %v508_v56, %v472_v38 }
 0x1b2   : > { %v1206_v53 = vpop.permute.xlu0 %714  ;;  %v557_v5 = vpop.permute.xlu1 %556  ;;  %v513_v40 = vadd.f32 %v509_v54, %v473_v41 }
 0x1b3   : > { %v517_v12 = vpop.permute.xlu2 %516 }
 0x1ba   : > { %v561_v6 = vpop.permute.xlu0 %560  ;;  %v597_v0 = vpop.permute.xlu1 %596 }
 0x1bb   : > { %v521_v9 = vpop.permute.xlu2 %520  ;;  %v564_v57 = vsel %vm562_vm10, %v557_v5, %v561_v6  ;;  %v566_v1 = vsel %vm562_vm10, %v561_v6, %v557_v5 }
 0x1bc   : > { %v524_v30 = vsel %vm522_vm13, %v517_v12, %v521_v9  ;;  %v526_v31 = vsel %vm522_vm13, %v521_v9, %v517_v12  ;;  %v577_v18 = vmul.f32 %v1046_v45, %v566_v1  ;;  %v578_v19 = vmul.f32 %v1046_v45, %v564_v57 }
 0x1bd   : > { %v537_v52 = vmul.f32 %v1053_v47, %v526_v31  ;;  %v538_v44 = vmul.f32 %v1053_v47, %v524_v30 }
 0x1be   : > { %v588_v21 = vmul.f32 %v582_v42, %v577_v18 }
 0x1bf   : > { %v548_v3 = vmul.f32 %v542_v34, %v537_v52  ;;  %v549_v15 = vmul.f32 %v543_v35, %v538_v44 }
 0x1c1   : > { %v553_v12 = vadd.f32 %v549_v15, %v513_v40 }
 0x1c2   : > { %v601_v59 = vpop.permute.xlu0 %600  ;;  %v637_v13 = vpop.permute.xlu1 %636 }
 0x1c3   : > { %v604_v2 = vsel %vm602_vm14, %v597_v0, %v601_v59  ;;  %v606_v47 = vsel %vm602_vm14, %v601_v59, %v597_v0  ;;  %v719_v61 = vpop.permute.xlu2 %718  ;;  %v552_v0 = vadd.f32 %v548_v3, %v512_v63 }
 0x1c4   : > { %v617_v5 = vmul.f32 %v1050_v46, %v604_v2  ;;  %v618_v34 = vmul.f32 %v1050_v46, %v606_v47  ;;  %v589_v46 = vmul.f32 %v583_v43, %v578_v19 }
 0x1c5   : > { %v592_v42 = vadd.f32 %v588_v21, %v552_v0 }
 0x1c6   : > { %v628_v22 = vmul.f32 %v622_v14, %v617_v5  ;;  %v629_v9 = vmul.f32 %v623_v16, %v618_v34  ;;  %v593_v32 = vadd.f32 %v589_v46, %v553_v12  ;;  %v723_v16 = vsel %vm722_vm1, %v1206_v53, %v719_v61 }
 0x1c8   : > { %v632_v30 = vadd.f32 %v628_v22, %v592_v42  ;;  %v633_v31 = vadd.f32 %v629_v9, %v593_v32 }
 0x1ca   : > { %v641_v25 = vpop.permute.xlu0 %640  ;;  %v677_v37 = vpop.permute.xlu1 %676 }
 0x1cb   : > { %v644_v62 = vsel %vm642_vm15, %v637_v13, %v641_v25  ;;  %v646_v7 = vsel %vm642_vm15, %v641_v25, %v637_v13  ;;  %v733_v55 = vpop.permute.xlu2 %732 }
 0x1cc   : > { %v657_v59 = vmul.f32 %v1056_v48, %v644_v62  ;;  %v658_v13 = vmul.f32 %v1056_v48, %v646_v7  ;;  %v834_v48 = vld [vmem:[%s1309_s5 + $0x7] ss:$8 sm:$0x3] }
 0x1cd   : > { %v742_v51 = vperm.slane %v834_v48, 0  ;;  %v743_v60 = vperm.slane %v834_v48, 1 }
 0x1ce   : > { %v668_v43 = vmul.f32 %v662_v17, %v657_v59  ;;  %v669_v14 = vmul.f32 %v663_v20, %v658_v13 }
 0x1d0   : > { %v672_v39 = vadd.f32 %v668_v43, %v632_v30  ;;  %v673_v33 = vadd.f32 %v669_v14, %v633_v31 }
 0x1d2   : > { %v681_v6 = vpop.permute.xlu0 %680  ;;  %v717_v29 = vpop.permute.xlu1 %716 }
 0x1d3   : > { %v684_v35 = vsel %vm682_vm0, %v677_v37, %v681_v6  ;;  %v686_v45 = vsel %vm682_vm0, %v681_v6, %v677_v37 }
 0x1d4   : > { %v697_v23 = vmul.f32 %v1064_v50, %v684_v35  ;;  %v698_v28 = vmul.f32 %v1064_v50, %v686_v45  ;;  %v725_v50 = vsel %vm722_vm1, %v719_v61, %v1206_v53 }
 0x1d6   : > { %v708_v36 = vmul.f32 %v702_v26, %v697_v23  ;;  %v709_v8 = vmul.f32 %v703_v27, %v698_v28 }
 0x1d8   : > { %v713_v24 = vadd.f32 %v709_v8, %v673_v33  ;;  %v712_v27 = vadd.f32 %v708_v36, %v672_v39 }
 0x1da   : > { %v721_v17 = vpop.permute.xlu0 %720  ;;  %v729_v20 = vpop.permute.xlu1 %728 }
 0x1db   : > { %v735_v11 = vmul.f32 %v729_v20, %v723_v16  ;;  %v736_v25 = vmul.f32 %v729_v20, %v725_v50  ;;  %v724_v37 = vsel %vm722_vm1, %v717_v29, %v721_v17  ;;  %v726_v53 = vsel %vm722_vm1, %v721_v17, %v717_v29 }
 0x1dc   : > { %v737_v52 = vmul.f32 %v733_v55, %v724_v37  ;;  %v738_v44 = vmul.f32 %v733_v55, %v726_v53 }
 0x1dd   : > { %v746_v49 = vmul.f32 %v742_v51, %v735_v11  ;;  %v747_v26 = vmul.f32 %v743_v60, %v736_v25 }
 0x1de   : > { %v748_v56 = vmul.f32 %v742_v51, %v737_v52  ;;  %v749_v54 = vmul.f32 %v743_v60, %v738_v44 }
 0x1df   : > { %v750_v57 = vadd.f32 %v746_v49, %v1202_v4  ;;  %v751_v1 = vadd.f32 %v747_v26, %v1204_v10 }
 0x1e0   : > { %v752_v58 = vadd.f32 %v748_v56, %v712_v27  ;;  %v753_v2 = vadd.f32 %v749_v54, %v713_v24 }
 0x1e1   : > { %754 = vst [vmem:[%s251_s20] sm:$0xff] %v750_v57 }
 0x1e2   : > { %755 = vst [vmem:[%s251_s20 + $0x8] sm:$0xff] %v751_v1 }
 0x1e3   : > { %756 = vst [vmem:[%s251_s20 + $0x10] sm:$0xf] %v752_v58 }
 0x1e4   : > { %757 = vst [vmem:[%s251_s20 + $0x18] sm:$0xf] %v753_v2 }
 0x1e5 PF: > { %s16_s21 = sadd.s32 1, %s897_s21  }
 0x1e6   : > { %p13_p4 = scmp.ge.s32.totalorder %s16_s21, 4  }
 0x1e8   :  { %15 = sbr.rel (!%p13_p4) target bundleno = 1 (0x1), region = 81 }

// kernel: _lambda_.5
= control target key start
LH: loop header
LB: loop body
LE: loop exit
PB: predicated region body
PF: predicated region fallthrough
CT: control target
= control target key end

     0   :  { %9 = vsyncpa [#allocation3], 0  ;;  %s650_s15 = smov 0   ;;  %s701_s0 = inlined_call_operand.vmem [shape: bf16[2,2,8,128], index: 0, kind: input, shape index: {}]   ;;  %s702_s1 = inlined_call_operand.vmem [shape: bf16[2,2,8,128], index: 1, kind: input, shape index: {}]   ;;  %s703_s2 = inlined_call_operand.vmem [shape: bf16[2,2,8,128], index: 2, kind: input, shape index: {}]   ;;  %s704_s3 = inlined_call_operand.vmem [shape: f32[2], index: 3, kind: input, shape index: {}]   ;;  %s705_s4 = inlined_call_operand.vmem [shape: f32[2,2,8,128], index: 4, kind: output, shape index: {}]  }
   0x1 LB: > { %s530_s16 = sadd.s32 4294967295, %s622_s15   ;;  %p532_p0 = scmp.ge.s32.totalorder %s622_s15, 1  ;;  %s622_s15 = sphi %s650_s15, %s15_s15  }
   0x2   : > { %p145_p1 = scmp.lt.s32.totalorder %s622_s15, 3  ;;  %s157_s19 = sshll.u32 %s704_s3, 4  ;;  %s158_s19 = int_to_ptr.vmem [resolvable:$true] %s157_s19 }
   0x3   : > { %p566_p3 = scmp.eq.s32.totalorder %s530_s16, 0  ;;  %s624_s20 = smov [#allocation2]  }
   0x4   : > { %p146_p2 = pnand %p532_p0, %p145_p1 }
   0x6   : > { %p562_p4 = pneg %p146_p2  ;;  %194 = sbr.rel (%p146_p2) target bundleno = 708 (0x2c4), region = 36 }
   0x8   : > { %p563_p5 = pnand %p566_p3, %p562_p4 }
   0xa   : > { %565 = dma.vmem_to_smem (!%p563_p5), %s158_s19, 16, %s624_s20, [#allocation3]  }
   0xb   : > { %617 = dma.done.wait (%p566_p3), [#allocation3], 16  }
   0xc   : > { %619 = vsyncadd (%p566_p3), [#allocation3], 4294967280 }
   0xd   : > { %201 = sfence }
   0xe   : > { %p232_p6 = scmp.lt.s32.totalorder %s530_s16, 1  ;;  %s548_s28 = sld [smem:[#allocation2 + $0x1]]  ;;  %vm305_vm12 = vcmask 64512   ;;  %vm327_vm13 = vcmask 1043456  }
   0xf   : > { %s302_s29 = sld [smem:[#allocation2]] }
  0x10   : > { %s707_s16 = smov (!%p232_p6, %s530_s16), 1 }
  0x11   : > { %s664_s21 = sshll.u32 %s707_s16, 3  ;;  %s557_s7 = sshll.u32 %s707_s16, 4 }
  0x12   : > { %s241_s24 = scalar_lea.vmem %s702_s1, %s664_s21  ;;  %s236_s27 = scalar_lea.vmem %s701_s0, %s664_s21 }
  0x13   : > { %v547_v0 = vld [vmem:[%s241_s24] sm:$0xff]   ;;  %s246_s6 = scalar_lea.vmem %s703_s2, %s664_s21  ;;  %s251_s10 = scalar_lea.vmem %s705_s4, %s557_s7 }
  0x14   : > { %v350_v1 = vunpack.c.h.bf16 %v547_v0  ;;  %v256_v2 = vunpack.c.l.bf16 %v547_v0  ;;  %v546_v3 = vld [vmem:[%s236_s27] sm:$0xff]   ;;  %v397_v55 = vstv %s548_s28 }
  0x15   : > { %v674_v6 = vunpack.c.h.bf16 %v546_v3  ;;  %v676_v7 = vunpack.c.l.bf16 %v546_v3  ;;  %v303_v60 = vstv %s302_s29 }
  0x16   : > { %v366_v4 = vmul.f32 %v350_v1, %v350_v1  ;;  %v272_v5 = vmul.f32 %v256_v2, %v256_v2 }
  0x17   : > { %v351_v8 = vmul.f32 %v674_v6, %v674_v6  ;;  %v257_v9 = vmul.f32 %v676_v7, %v676_v7 }
  0x18   : > { %367 = vadd.xlane.f32.xlu0 %v366_v4  ;;  %273 = vadd.xlane.f32.xlu1 %v272_v5 }
  0x20   : > { %352 = vadd.xlane.f32.xlu0 %v351_v8  ;;  %258 = vadd.xlane.f32.xlu1 %v257_v9 }
  0x8b   : > { %v368_v10 = vpop.xlane.xlu0 %367  ;;  %v274_v11 = vpop.xlane.xlu1 %273 }
  0x8c   : > { %v369_v12 = vmax.f32 %v368_v10, 1e-24  ;;  %v275_v13 = vmax.f32 %v274_v11, 1e-24 }
  0x8e   : > { %577 = vrsqrt.f32 %v369_v12  ;;  %vm282_vm0 = vweird.f32 %v275_v13  ;;  %vm376_vm4 = vweird.f32 %v369_v12 }
  0x8f   : > { %579 = vrsqrt.f32 %v275_v13 }
  0x93   : > { %v353_v14 = vpop.xlane.xlu0 %352  ;;  %v259_v15 = vpop.xlane.xlu1 %258 }
  0x94   : > { %v578_v16 = vpop.eup %577  ;;  %v354_v17 = vmax.f32 %v353_v14, 1e-24  ;;  %v260_v18 = vmax.f32 %v259_v15, 1e-24  ;;  %v323_v14 = vld [vmem:[%s246_s6] sm:$0xf] }
  0x95   : > { %v580_v19 = vpop.eup %579  ;;  %v371_v20 = vmul.f32 %v578_v16, %v369_v12  ;;  %vm377_vm2 = vweird.f32 %v578_v16  ;;  %v549_v12 = vld [vmem:[%s246_s6 + $0x4] sm:$0xf]  ;;  %v329_v15 = vsel %vm327_vm13, %v323_v14, 0 }
  0x96   : > { %v277_v21 = vmul.f32 %v580_v19, %v275_v13  ;;  %581 = vrsqrt.f32 %v354_v17  ;;  %vm283_vm1 = vweird.f32 %v580_v19  ;;  %vm378_vm5 = vmor %vm376_vm4, %vm377_vm2  ;;  %vm267_vm6 = vweird.f32 %v260_v18  ;;  %338 = vmatpush.bf16.msra.mxu1 %v329_v15 }
  0x97   : > { %v372_v22 = vmul.f32 %v578_v16, %v371_v20  ;;  %583 = vrsqrt.f32 %v260_v18  ;;  %vm284_vm3 = vmor %vm282_vm0, %vm283_vm1  ;;  %vm361_vm9 = vweird.f32 %v354_v17  ;;  %v422_v13 = vsel %vm327_vm13, %v549_v12, 0 }
  0x98   : > { %v278_v23 = vmul.f32 %v580_v19, %v277_v21  ;;  %431 = vmatpush.bf16.msra.mxu3 %v422_v13 }
  0x99   : > { %v373_v24 = vmul.f32 0.5, %v372_v22 }
  0x9a   : > { %v279_v25 = vmul.f32 0.5, %v278_v23 }
  0x9b   : > { %v374_v26 = vsub.f32 1.5, %v373_v24 }
  0x9c   : > { %v582_v27 = vpop.eup %581  ;;  %v280_v28 = vsub.f32 1.5, %v279_v25 }
  0x9d   : > { %v584_v29 = vpop.eup %583  ;;  %v356_v30 = vmul.f32 %v582_v27, %v354_v17  ;;  %v375_v31 = vmul.f32 %v578_v16, %v374_v26  ;;  %vm362_vm8 = vweird.f32 %v582_v27 }
  0x9e   : > { %v262_v32 = vmul.f32 %v584_v29, %v260_v18  ;;  %v281_v33 = vmul.f32 %v580_v19, %v280_v28  ;;  %vm268_vm7 = vweird.f32 %v584_v29  ;;  %vm363_vm11 = vmor %vm361_vm9, %vm362_vm8 }
  0x9f   : > { %v357_v34 = vmul.f32 %v582_v27, %v356_v30  ;;  %v379_v35 = vsel %vm378_vm5, %v578_v16, %v375_v31  ;;  %vm269_vm10 = vmor %vm267_vm6, %vm268_vm7 }
  0xa0   : > { %v263_v36 = vmul.f32 %v584_v29, %v262_v32  ;;  %v285_v37 = vsel %vm284_vm3, %v580_v19, %v281_v33  ;;  %v380_v38 = vmul.f32 %v379_v35, %v350_v1 }
  0xa1   : > { %v358_v39 = vmul.f32 0.5, %v357_v34  ;;  %v286_v40 = vmul.f32 %v285_v37, %v256_v2 }
  0xa2   : > { %v264_v41 = vmul.f32 0.5, %v263_v36  ;;  %v382_v42 = vpack.c.bf16 %v380_v38, %v380_v38 }
  0xa3   : > { %v359_v43 = vsub.f32 1.5, %v358_v39  ;;  %v288_v44 = vpack.c.bf16 %v286_v40, %v286_v40 }
  0xa4   : > { %v265_v45 = vsub.f32 1.5, %v264_v41  ;;  %390 = vmatpush.bf16.xpose.msra.mxu2 %v382_v42 }
  0xa5   : > { %296 = vmatpush.bf16.xpose.msra.mxu0 %v288_v44  ;;  %v360_v46 = vmul.f32 %v582_v27, %v359_v43 }
  0xa6   : > { %v266_v47 = vmul.f32 %v584_v29, %v265_v45 }
  0xa7   : > { %v364_v48 = vsel %vm363_vm11, %v582_v27, %v360_v46 }
  0xa8   : > { %v270_v49 = vsel %vm269_vm10, %v584_v29, %v266_v47  ;;  %v365_v50 = vmul.f32 %v364_v48, %v674_v6 }
  0xa9   : > { %v271_v51 = vmul.f32 %v270_v49, %v676_v7 }
  0xaa   : > { %v381_v52 = vpack.c.bf16 %v365_v50, %v365_v50 }
  0xab   : > { %v287_v53 = vpack.c.bf16 %v271_v51, %v271_v51 }
  0xac   : > { %391 = vmatmul.bf16.vlgmr.msra.gmra.mxu2 %v381_v52 }
  0xad   : > { %297 = vmatmul.bf16.vlgmr.msra.gmra.mxu0 %v287_v53 }
 0x12a   : > { %v298_v54 = vpop.f32.mrf.mxu0 }
 0x12b   : > { %v304_v61 = vmul.f32 %v303_v60, %v298_v54 }
 0x12d   : > { %v306_v63 = vsel %vm305_vm12, %v304_v61, -inf }
 0x12f   : > { %v392_v56 = vpop.f32.mrf.mxu2 }
 0x130   : > { %v398_v57 = vmul.f32 %v397_v55, %v392_v56 }
 0x132   : > { %v300_v58 = vpop.f32.mrf.mxu0  ;;  %v399_v59 = vsel %vm305_vm12, %v398_v57, -inf }
 0x133   : > { %400 = vmax.xlane.f32.xlu2 %v399_v59 }
 0x137   : > { %v394_v62 = vpop.f32.mrf.mxu2 }
 0x13b   : > { %307 = vmax.xlane.f32.xlu2 %v306_v63 }
 0x1a6   : > { %v401_v0 = vpop.xlane.xlu2 %400 }
 0x1a7   : > { %v402_v1 = vmax.f32 %v401_v0, 0.0 }
 0x1a9   : > { %v403_v2 = vsub.f32 %v398_v57, %v402_v1  ;;  %v409_v16 = vsub.f32 0.0, %v402_v1 }
 0x1ab   : > { %v404_v3 = vmul.f32 1.442695, %v403_v2  ;;  %v410_v17 = vmul.f32 1.442695, %v409_v16 }
 0x1ad   : > { %585 = vpow2.f32 %v404_v3 }
 0x1ae   : > { %v308_v4 = vpop.xlane.xlu2 %307 }
 0x1af   : > { %v309_v5 = vmax.f32 %v308_v4, 0.0 }
 0x1b1   : > { %v310_v6 = vsub.f32 %v304_v61, %v309_v5  ;;  %v316_v18 = vsub.f32 0.0, %v309_v5 }
 0x1b3   : > { %v586_v7 = vpop.eup %585  ;;  %v311_v8 = vmul.f32 1.442695, %v310_v6  ;;  %v317_v19 = vmul.f32 1.442695, %v316_v18 }
 0x1b4   : > { %v406_v9 = vsel %vm305_vm12, %v586_v7, 0.0 }
 0x1b5   : > { %587 = vpow2.f32 %v311_v8  ;;  %407 = vadd.xlane.f32.xlu0 %v406_v9 }
 0x1b6   : > { %589 = vpow2.f32 %v410_v17 }
 0x1b7   : > { %591 = vpow2.f32 %v317_v19 }
 0x1bb   : > { %v588_v10 = vpop.eup %587 }
 0x1bc   : > { %v313_v11 = vsel %vm305_vm12, %v588_v10, 0.0  ;;  %v590_v20 = vpop.eup %589 }
 0x1bd   : > { %314 = vadd.xlane.f32.xlu1 %v313_v11  ;;  %v592_v23 = vpop.eup %591 }
 0x228   : > { %v408_v21 = vpop.xlane.xlu0 %407 }
 0x229   : > { %v412_v22 = vadd.f32 %v590_v20, %v408_v21 }
 0x22b   : > { %593 = vrcp.f32 %v412_v22 }
 0x230   : > { %v315_v24 = vpop.xlane.xlu1 %314 }
 0x231   : > { %v594_v25 = vpop.eup %593  ;;  %v319_v26 = vadd.f32 %v592_v23, %v315_v24 }
 0x232   : > { %v414_v27 = vmul.f32 %v594_v25, %v586_v7 }
 0x233   : > { %595 = vrcp.f32 %v319_v26 }
 0x234   : > { %v415_v28 = vpack.c.bf16 %v414_v27, %v414_v27 }
 0x236   : > { %550 = vmatmul.msk.bf16.vlgmr.msra.gmra.mxu3 %vm305_vm12, %v415_v28 }
 0x239   : > { %v596_v29 = vpop.eup %595 }
 0x23a   : > { %v321_v30 = vmul.f32 %v596_v29, %v588_v10 }
 0x23c   : > { %v322_v31 = vpack.c.bf16 %v321_v30, %v321_v30 }
 0x23e   : > { %545 = vmatmul.msk.bf16.vlgmr.msra.gmra.mxu1 %vm305_vm12, %v322_v31 }
 0x2b9   : > { %v433_v32 = vpop.f32.mrf.mxu3 }
 0x2ba   : > { %551 = vst [vmem:[%s251_s10 + $0x8] sm:$0xff] %v433_v32 }
 0x2bb   : > { %v340_v33 = vpop.f32.mrf.mxu1 }
 0x2bc   : > { %344 = vst [vmem:[%s251_s10] sm:$0xff] %v340_v33 }
 0x2c1   : > { %v435_v34 = vpop.f32.mrf.mxu3 }
 0x2c3   : > { %v342_v35 = vpop.f32.mrf.mxu1 }
 0x2c4 PF: > { %s15_s15 = sadd.s32 1, %s622_s15  }
 0x2c5   : > { %p12_p7 = scmp.ge.s32.totalorder %s15_s15, 4  }
 0x2c7   :  { %14 = sbr.rel (!%p12_p7) target bundleno = 1 (0x1), region = 81 }
 0x2cc   :  { %460 = vsyncpa [#allocation3], 1 }
 0x2cd   :  { %462 = vsyncpa [#allocation3 + $0x1], 1 }

// kernel: reverse.2
= control target key start
LH: loop header
LB: loop body
LE: loop exit
PB: predicated region body
PF: predicated region fallthrough
CT: control target
= control target key end

     0   :  { %v72_v3 = vlaneseq  ;;  %v65_v6 = vld [vmem:[#allocation0 + $0x7] ss:$-1 sm:$0xff]  ;;  %v79_v8 = vld [vmem:[#allocation0 + $0x17] ss:$-1 sm:$0xff]  ;;  %s331_s0 = inlined_call_operand.vmem [shape: f32[2,4,16,7], index: 0, kind: input, shape index: {}]   ;;  %s332_s1 = inlined_call_operand.vmem [shape: f32[2,4,16,7], index: 1, kind: output, shape index: {}]  }
   0x1   :  { %v45_v0 = vld [vmem:[%s331_s0] sm:$0xff]  ;;  %v47_v1 = vld [vmem:[%s331_s0 + $0x8] sm:$0xff]  ;;  %v49_v2 = vld [vmem:[%s331_s0 + $0x10] sm:$0xff]  ;;  %v66_v12 = vrot.slane %v65_v6, 1  ;;  %v80_v13 = vrot.slane %v79_v8, 1 }
   0x2   :  { %46 = vst [vmem:[#allocation0 + $0x8] sm:$0xff] %v45_v0  ;;  %v51_v4 = vld [vmem:[%s331_s0 + $0x18] sm:$0xff]  ;;  %v53_v5 = vld [vmem:[%s331_s0 + $0x20] sm:$0xff]  ;;  %v55_v7 = vld [vmem:[%s331_s0 + $0x28] sm:$0xff]  ;;  %v73_v10 = vshrl.u32 %v72_v3, 7 }
   0x3   :  { %48 = vst [vmem:[#allocation0 + $0x18] sm:$0xff] %v47_v1  ;;  %v57_v9 = vld [vmem:[%s331_s0 + $0x30] sm:$0xff]  ;;  %v59_v11 = vld [vmem:[%s331_s0 + $0x38] sm:$0xff]  ;;  %v93_v14 = vld [vmem:[#allocation0 + $0x27] ss:$-1 sm:$0xff] }
   0x4   :  { %50 = vst [vmem:[#allocation0 + $0x28] sm:$0xff] %v49_v2  ;;  %vm74_vm0 = vcmp.lt.s32.totalorder %v73_v10, 7  ;;  %v107_v16 = vld [vmem:[#allocation0 + $0x37] ss:$-1 sm:$0xff]  ;;  %v94_v19 = vrot.slane %v93_v14, 1 }
   0x5   :  { %52 = vst [vmem:[#allocation0 + $0x38] sm:$0xff] %v51_v4  ;;  %v121_v22 = vld [vmem:[#allocation0 + $0x47] ss:$-1 sm:$0xff]  ;;  %v108_v24 = vrot.slane %v107_v16, 1  ;;  %v135_v28 = vld [vmem:[#allocation0 + $0x57] ss:$-1 sm:$0xff] }
   0x6   :  { %54 = vst [vmem:[#allocation0 + $0x48] sm:$0xff] %v53_v5  ;;  %v122_v29 = vrot.slane %v121_v22, 1  ;;  %v149_v32 = vld [vmem:[#allocation0 + $0x67] ss:$-1 sm:$0xff]  ;;  %v136_v33 = vrot.slane %v135_v28, 1 }
   0x7   :  { %56 = vst [vmem:[#allocation0 + $0x58] sm:$0xff] %v55_v7  ;;  %v163_v36 = vld [vmem:[#allocation0 + $0x77] ss:$-1 sm:$0xff]  ;;  %v150_v37 = vrot.slane %v149_v32, 1 }
   0x8   :  { %58 = vst [vmem:[#allocation0 + $0x68] sm:$0xff] %v57_v9  ;;  %v164_v40 = vrot.slane %v163_v36, 1 }
   0x9   :  { %60 = vst [vmem:[#allocation0 + $0x78] sm:$0xff] %v59_v11  ;;  %v70_v15 = vld [vmem:[#allocation0 + $0xf] ss:$-1 sm:$0xff] }
   0xa   :  { %67 = vst [vmem:[#allocation1] sm:$0xff] %v66_v12  ;;  %v71_v17 = vrot.slane %v70_v15, 1  ;;  %v84_v18 = vld [vmem:[#allocation0 + $0x1f] ss:$-1 sm:$0xff] }
   0xb   :  { %81 = vst [vmem:[#allocation1 + $0x8] sm:$0xff] %v80_v13  ;;  %v85_v20 = vrot.slane %v84_v18, 1  ;;  %v98_v21 = vld [vmem:[#allocation0 + $0x2f] ss:$-1 sm:$0xff] }
   0xc   :  { %75 = vst.msk [vmem:[#allocation1] sm:$0xff] %vm74_vm0, %v71_v17  ;;  %v99_v23 = vrot.slane %v98_v21, 1  ;;  %v112_v25 = vld [vmem:[#allocation0 + $0x3f] ss:$-1 sm:$0xff] }
   0xd   :  { %89 = vst.msk [vmem:[#allocation1 + $0x8] sm:$0xff] %vm74_vm0, %v85_v20  ;;  %v113_v26 = vrot.slane %v112_v25, 1  ;;  %v126_v27 = vld [vmem:[#allocation0 + $0x4f] ss:$-1 sm:$0xff] }
   0xe   :  { %95 = vst [vmem:[#allocation1 + $0x10] sm:$0xff] %v94_v19  ;;  %v140_v30 = vld [vmem:[#allocation0 + $0x5f] ss:$-1 sm:$0xff]  ;;  %v127_v31 = vrot.slane %v126_v27, 1 }
   0xf   :  { %103 = vst.msk [vmem:[#allocation1 + $0x10] sm:$0xff] %vm74_vm0, %v99_v23  ;;  %v154_v34 = vld [vmem:[#allocation0 + $0x6f] ss:$-1 sm:$0xff]  ;;  %v141_v35 = vrot.slane %v140_v30, 1 }
  0x10   :  { %109 = vst [vmem:[#allocation1 + $0x18] sm:$0xff] %v108_v24  ;;  %v168_v38 = vld [vmem:[#allocation0 + $0x7f] ss:$-1 sm:$0xff]  ;;  %v155_v39 = vrot.slane %v154_v34, 1 }
  0x11   :  { %117 = vst.msk [vmem:[#allocation1 + $0x18] sm:$0xff] %vm74_vm0, %v113_v26  ;;  %v169_v41 = vrot.slane %v168_v38, 1 }
  0x12   :  { %123 = vst [vmem:[#allocation1 + $0x20] sm:$0xff] %v122_v29 }
  0x13   :  { %131 = vst.msk [vmem:[#allocation1 + $0x20] sm:$0xff] %vm74_vm0, %v127_v31  ;;  %v216_v42 = vld [vmem:[#allocation1] sm:$0xff] }
  0x14   :  { %137 = vst [vmem:[#allocation1 + $0x28] sm:$0xff] %v136_v33  ;;  %v218_v43 = vld [vmem:[#allocation1 + $0x8] sm:$0xff] }
  0x15   :  { %145 = vst.msk [vmem:[#allocation1 + $0x28] sm:$0xff] %vm74_vm0, %v141_v35 }
  0x16   :  { %151 = vst [vmem:[#allocation1 + $0x30] sm:$0xff] %v150_v37  ;;  %v220_v44 = vld [vmem:[#allocation1 + $0x10] sm:$0xff] }
  0x17   :  { %159 = vst.msk [vmem:[#allocation1 + $0x30] sm:$0xff] %vm74_vm0, %v155_v39 }
  0x18   :  { %165 = vst [vmem:[#allocation1 + $0x38] sm:$0xff] %v164_v40  ;;  %v222_v45 = vld [vmem:[#allocation1 + $0x18] sm:$0xff] }
  0x19   :  { %173 = vst.msk [vmem:[#allocation1 + $0x38] sm:$0xff] %vm74_vm0, %v169_v41 }
  0x1a   :  { %217 = vst [vmem:[%s332_s1] sm:$0xff] %v216_v42  ;;  %v224_v46 = vld [vmem:[#allocation1 + $0x20] sm:$0xff] }
  0x1b   :  { %219 = vst [vmem:[%s332_s1 + $0x8] sm:$0xff] %v218_v43 }
  0x1c   :  { %221 = vst [vmem:[%s332_s1 + $0x10] sm:$0xff] %v220_v44  ;;  %v226_v47 = vld [vmem:[#allocation1 + $0x28] sm:$0xff] }
  0x1d   :  { %223 = vst [vmem:[%s332_s1 + $0x18] sm:$0xff] %v222_v45 }
  0x1e   :  { %225 = vst [vmem:[%s332_s1 + $0x20] sm:$0xff] %v224_v46  ;;  %v228_v48 = vld [vmem:[#allocation1 + $0x30] sm:$0xff] }
  0x1f   :  { %227 = vst [vmem:[%s332_s1 + $0x28] sm:$0xff] %v226_v47 }
  0x20   :  { %229 = vst [vmem:[%s332_s1 + $0x30] sm:$0xff] %v228_v48  ;;  %v230_v49 = vld [vmem:[#allocation1 + $0x38] sm:$0xff] }
  0x21   :  { %231 = vst [vmem:[%s332_s1 + $0x38] sm:$0xff] %v230_v49 }

// kernel: _lambda_.6
= control target key start
LH: loop header
LB: loop body
LE: loop exit
PB: predicated region body
PF: predicated region fallthrough
CT: control target
= control target key end

     0   :  { %s1181_s30 = smov 0   ;;  %s1553_s0 = inlined_call_operand.vmem [shape: f32[2,4,256], index: 0, kind: input, shape index: {}, may-alias: {0,8}]   ;;  %s1554_s1 = inlined_call_operand.vmem [shape: bf16[2,4,256], index: 1, kind: input, shape index: {}]   ;;  %s1555_s2 = inlined_call_operand.vmem [shape: bf16[4,4], index: 2, kind: input, shape index: {}]   ;;  %s1556_s3 = inlined_call_operand.vmem [shape: f32[4,1], index: 3, kind: input, shape index: {}]   ;;  %s1557_s4 = inlined_call_operand.vmem [shape: f32[4,1], index: 4, kind: input, shape index: {}]   ;;  %s1558_s5 = inlined_call_operand.vmem [shape: bf16[16,4], index: 5, kind: input, shape index: {}]   ;;  %s1559_s6 = inlined_call_operand.vmem [shape: f32[16,9], index: 6, kind: input, shape index: {}]   ;;  %s1560_s7 = inlined_call_operand.vmem [shape: f32[8,256], index: 7, kind: input, shape index: {}]   ;;  %s1561_s8 = inlined_call_operand.vmem [shape: f32[2,4,256], index: 8, kind: output, shape index: {0}, may-alias: {0,8}]   ;;  %s1562_s9 = inlined_call_operand.vmem [shape: f32[2,16,256], index: 9, kind: output, shape index: {1}]  }
   0x1 LB: > { %s1018_s10 = sadd.s32 4294967295, %s1110_s30   ;;  %p1022_p0 = scmp.ge.s32.totalorder %s1110_s30, 1  ;;  %s1110_s30 = sphi %s1181_s30, %s20_s30  }
   0x2   : > { %p300_p1 = scmp.lt.s32.totalorder %s1110_s30, 3 }
   0x4   : > { %p301_p2 = pnand %p1022_p0, %p300_p1 }
   0x5   : > { %p346_p3 = scmp.lt.s32.totalorder (!%p301_p2), %s1018_s10, 1  ;;  %s1122_s15 = smov (!%p301_p2), 34  }
   0x6   : > { %304 = sbr.rel (%p301_p2) target bundleno = 593 (0x251), region = 52  ;;  %s1124_s17 = smov (!%p301_p2), 30  }
   0x7   : > { %s1125_s18 = smov (!%p301_p2), 2   ;;  %s1126_s19 = smov (!%p301_p2), 126  }
   0x8   : > { %s1127_s20 = smov (!%p301_p2), 98   ;;  %s1128_s21 = smov (!%p301_p2), 96  }
   0x9   : > { %s1129_s22 = smov (!%p301_p2), 94  }
   0xb   : > { %v1112_v0 = vmov 0   ;;  %v417_v1 = vld [vmem:[%s1556_s3] sm:$0xf]  ;;  %s1564_s10 = smov (!%p346_p3, %s1018_s10), 1  ;;  %vm378_vm0 = vcmask 1041408   ;;  %v1206_v8 = vld [vmem:[%s1559_s6 + $0x8] sm:$0xff] }
   0xc   : > { %1080 = vset.pattern.permute.xlu0 %v1112_v0  ;;  %1082 = vset.pattern.permute.xlu2 %v1112_v0  ;;  %s1049_s13 = sshll.u32 %s1564_s10, 2  ;;  %v418_v3 = vld [vmem:[%s1557_s4] sm:$0xf]  ;;  %vm374_vm1 = vcmask 31744   ;;  %s1048_s23 = sshll.u32 %s1564_s10, 3  ;;  %vm412_vm2 = vcmask 1043456  }
   0xd   : > { %507 = vperm.xlu0 %1080, %v417_v1   ;;  %s355_s16 = scalar_lea.vmem %s1554_s1, %s1049_s13  ;;  %v368_v9 = vld [vmem:[%s1555_s2] sm:$0x3]  ;;  %s350_s26 = scalar_lea.vmem %s1553_s0, %s1048_s23  ;;  %v1113_v12 = vmov 4.0  }
   0xe   : > { %v369_v2 = vld [vmem:[%s355_s16] sm:$0xf]  ;;  %1098 = vrcp.f32 %v1113_v12  ;;  %s360_s29 = scalar_lea.vmem %s1561_s8, %s1048_s23  ;;  %v1114_v12 = vmov 4   ;;  %s1123_s16 = smov 32  }
   0xf   : > { %371 = vst [vmem:[#allocation1] ss:$4 sm:$0xff] %v369_v2  ;;  %v367_v13 = vld [vmem:[%s350_s26] sm:$0xff]  ;;  %1081 = vset.pattern.permute.xlu1 %v1114_v12 }
  0x14   : > { %v1099_v17 = vpop.eup %1098 }
  0x15   : > { %517 = vperm.xlu0 %1080, %v418_v3   ;;  %v440_v20 = vmul.f32 4.0, %v1099_v17  ;;  %vm444_vm3 = vweird.f32 %v1099_v17 }
  0x16   : > { %v372_v4 = vld.sshfl [vmem:[#allocation1] sm:$0xff pattern:$0x73625140]  ;;  %v373_v5 = vld.sshfl [vmem:[#allocation1 + $0x8] sm:$0xff pattern:$0x73625140] }
  0x17   : > { %v379_v6 = vsel %vm378_vm0, %v372_v4, 0  ;;  %v381_v7 = vsel %vm378_vm0, %v373_v5, 0  ;;  %v441_v21 = vsub.f32 1.0, %v440_v20 }
  0x18   : > { %390 = vmatpush.bf16.msra.mxu0 %v379_v6  ;;  %403 = vmatpush.bf16.msra.mxu1 %v381_v7 }
  0x19   : > { %v442_v28 = vmul.f32 %v1099_v17, %v441_v21 }
  0x1b   : > { %1031 = vmatmul.msk.bf16.vlgmr.msra.gmra.mxu0 %vm374_vm1, %v368_v9  ;;  %1032 = vmatmul.msk.bf16.vlgmr.msra.gmra.mxu1 %vm374_vm1, %v368_v9  ;;  %v443_v33 = vadd.f32 %v1099_v17, %v442_v28 }
  0x1d   : > { %613 = vperm.xlu0 %1080, %v1206_v8   ;;  %v445_v38 = vsel %vm444_vm3, %v1099_v17, %v443_v33  ;;  %v1116_v17 = vmov 839922192  }
  0x98   : > { %v392_v10 = vpop.f32.mrf.mxu0  ;;  %v405_v11 = vpop.f32.mrf.mxu1 }
  0x99   : > { %v411_v14 = vrot.slane %v405_v11, 4 }
  0x9b   : > { %v413_v15 = vsel %vm412_vm2, %v392_v10, %v411_v14  ;;  %v1234_v10 = vld [vmem:[%s1559_s6] sm:$0xff]  ;;  %v1115_v14 = vmov 1  }
  0x9c   : > { %v415_v16 = vadd.f32 %v413_v15, %v367_v13  ;;  %609 = vperm.xlu2 %1082, %v1234_v10   ;;  %581 = vperm.xlu1 %1081, %v1234_v10   ;;  %v508_v15 = vpop.permute.xlu0 %507 }
  0x9d   : > { %1084 = vset.pattern.permute.xlu0 %v1115_v14 }
  0x9e   : > { %416 = vst [vmem:[%s360_s29] sm:$0xff] %v415_v16  ;;  %652 = vperm.xlu0 %1084, %v1206_v8  }
  0x9f   : > { %420 = vst [vmem:[#allocation1] ss:$2 sm:$0xff] %v415_v16 }
  0xa0   : > { %v394_v18 = vpop.f32.mrf.mxu0  ;;  %v407_v19 = vpop.f32.mrf.mxu1 }
  0xa1   : > { %v510_v18 = vunpack.c.l.s4 %v1116_v17 }
  0xa4   : > { %1083 = vset.pattern.permute.xlu2 %v1115_v14  ;;  %586 = vperm.xlu1 %1081, %v1206_v8  }
  0xa5   : > { %648 = vperm.xlu2 %1083, %v1234_v10  }
  0xa6   : > { %v421_v22 = vld.sshfl [vmem:[#allocation1] sm:$0xff pattern:$0x75316420]  ;;  %v422_v23 = vld.sshfl [vmem:[#allocation1 + $0x8] sm:$0xff pattern:$0x75316420] }
  0xa7   : > { %v425_v24 = vsel %vm412_vm2, %v421_v22, 0.0  ;;  %v432_v25 = vsel %vm412_vm2, %v422_v23, 0.0  ;;  %v511_v22 = vunpack.c.0.s8 %v510_v18 }
  0xa8   : > { %v426_v26 = vrot.slane %v425_v24, 4  ;;  %v433_v27 = vrot.slane %v432_v25, 4 }
  0xaa   : > { %v427_v29 = vadd.f32 %v426_v26, %v425_v24  ;;  %v434_v30 = vadd.f32 %v433_v27, %v432_v25  ;;  %v1117_v27 = vmov 2  }
  0xab   : > { %1085 = vset.pattern.permute.xlu0 %v1117_v27 }
  0xac   : > { %v428_v31 = vrot.slane %v427_v29, 2  ;;  %v435_v32 = vrot.slane %v434_v30, 2  ;;  %688 = vperm.xlu0 %1085, %v1234_v10   ;;  %1086 = vset.pattern.permute.xlu1 %v1117_v27 }
  0xad   : > { %692 = vperm.xlu1 %1086, %v1206_v8  }
  0xae   : > { %v429_v34 = vadd.f32 %v428_v31, %v427_v29  ;;  %v436_v35 = vadd.f32 %v435_v32, %v434_v30  ;;  %v512_v29 = vperm.slane %v508_v15, %v511_v22  ;;  %v518_v30 = vpop.permute.xlu0 %517 }
  0xaf   : > { %v522_v32 = vperm.slane %v518_v30, %v511_v22 }
  0xb0   : > { %v430_v36 = vrot.slane %v429_v34, 1  ;;  %v437_v37 = vrot.slane %v436_v35, 1 }
  0xb2   : > { %v431_v39 = vadd.f32 %v430_v36, %v429_v34  ;;  %v438_v40 = vadd.f32 %v437_v37, %v436_v35  ;;  %v1118_v34 = vmov 3  }
  0xb3   : > { %1088 = vset.pattern.permute.xlu2 %v1118_v34 }
  0xb4   : > { %v447_v41 = vmul.f32 %v445_v38, %v438_v40  ;;  %v446_v42 = vmul.f32 %v445_v38, %v431_v39  ;;  %732 = vperm.xlu2 %1088, %v1206_v8   ;;  %v1119_v39 = vmov 5  }
  0xb5   : > { %1087 = vset.pattern.permute.xlu1 %v1118_v34 }
  0xb6   : > { %v450_v43 = vrot.slane %v447_v41, 4  ;;  %728 = vperm.xlu1 %1087, %v1234_v10  }
  0xb8   : > { %v451_v44 = vsel %vm412_vm2, %v446_v42, %v450_v43  ;;  %v1052_v42 = vld [vmem:[%s1558_s5] sm:$0xff]  ;;  %v1120_v43 = vmov 6  }
  0xb9   : > { %v1225_v45 = vsub.f32 %v415_v16, %v451_v44  ;;  %v1121_v44 = vmov 7  }
  0xbb   : > { %v454_v46 = vmul.f32 %v1225_v45, %v1225_v45 }
  0xbc   : > { %1090 = vset.pattern.permute.xlu2 %v1119_v39 }
  0xbd   : > { %456 = vst [vmem:[#allocation1] ss:$2 sm:$0xff] %v454_v46  ;;  %772 = vperm.xlu2 %1090, %v1206_v8  }
  0xbe   : > { %1089 = vset.pattern.permute.xlu1 %v1119_v39 }
  0xbf   : > { %768 = vperm.xlu1 %1089, %v1234_v10  }
  0xc4   : > { %v457_v47 = vld.sshfl [vmem:[#allocation1] sm:$0xff pattern:$0x75316420]  ;;  %v458_v48 = vld.sshfl [vmem:[#allocation1 + $0x8] sm:$0xff pattern:$0x75316420] }
  0xc5   : > { %v461_v49 = vsel %vm412_vm2, %v457_v47, 0.0  ;;  %v468_v50 = vsel %vm412_vm2, %v458_v48, 0.0  ;;  %1092 = vset.pattern.permute.xlu2 %v1120_v43 }
  0xc6   : > { %v462_v51 = vrot.slane %v461_v49, 4  ;;  %v469_v52 = vrot.slane %v468_v50, 4  ;;  %812 = vperm.xlu2 %1092, %v1206_v8  }
  0xc7   : > { %1091 = vset.pattern.permute.xlu1 %v1120_v43  ;;  %v1379_v43 = vld [vmem:[%s1560_s7 + $0x3] ss:$8 sm:$0x3] }
  0xc8   : > { %v463_v53 = vadd.f32 %v462_v51, %v461_v49  ;;  %v470_v54 = vadd.f32 %v469_v52, %v468_v50  ;;  %808 = vperm.xlu1 %1091, %v1234_v10  }
  0xca   : > { %v464_v55 = vrot.slane %v463_v53, 2  ;;  %v471_v56 = vrot.slane %v470_v54, 2 }
  0xcc   : > { %v465_v57 = vadd.f32 %v464_v55, %v463_v53  ;;  %v472_v58 = vadd.f32 %v471_v56, %v470_v54  ;;  %v1130_v55 = vmov 8  }
  0xcd   : > { %1097 = vset.pattern.permute.xlu0 %v1130_v55 }
  0xce   : > { %v466_v59 = vrot.slane %v465_v57, 1  ;;  %v473_v60 = vrot.slane %v472_v58, 1  ;;  %1094 = vset.pattern.permute.xlu2 %v1121_v44 }
  0xcf   : > { %852 = vperm.xlu2 %1094, %v1206_v8  }
  0xd0   : > { %v467_v61 = vadd.f32 %v466_v59, %v465_v57  ;;  %v474_v62 = vadd.f32 %v473_v60, %v472_v58  ;;  %1093 = vset.pattern.permute.xlu1 %v1121_v44 }
  0xd1   : > { %848 = vperm.xlu1 %1093, %v1234_v10  }
  0xd2   : > { %v475_v63 = vmul.f32 %v467_v61, %v445_v38  ;;  %v476_v0 = vmul.f32 %v474_v62, %v445_v38 }
  0xd4   : > { %v477_v1 = vadd.f32 1e-05, %v475_v63  ;;  %v478_v2 = vadd.f32 1e-05, %v476_v0  ;;  %v1317_v63 = vpop.permute.xlu0 %613 }
  0xd6   : > { %1100 = vrsqrt.f32 %v477_v1  ;;  %vm495_vm6 = vweird.f32 %v478_v2  ;;  %vm485_vm8 = vweird.f32 %v477_v1 }
  0xd7   : > { %1102 = vrsqrt.f32 %v478_v2  ;;  %1096 = vset.pattern.permute.xlu2 %v1130_v55 }
  0xd9   : > { %1095 = vset.pattern.permute.xlu1 %v1130_v55 }
  0xdc   : > { %v1101_v3 = vpop.eup %1100 }
  0xdd   : > { %v1103_v4 = vpop.eup %1102  ;;  %v480_v5 = vmul.f32 %v1101_v3, %v477_v1  ;;  %vm486_vm5 = vweird.f32 %v1101_v3 }
  0xde   : > { %v490_v6 = vmul.f32 %v1103_v4, %v478_v2  ;;  %vm496_vm4 = vweird.f32 %v1103_v4  ;;  %vm487_vm9 = vmor %vm485_vm8, %vm486_vm5 }
  0xdf   : > { %v481_v7 = vmul.f32 %v1101_v3, %v480_v5  ;;  %vm497_vm7 = vmor %vm495_vm6, %vm496_vm4 }
  0xe0   : > { %v491_v9 = vmul.f32 %v1103_v4, %v490_v6 }
  0xe1   : > { %v482_v11 = vmul.f32 0.5, %v481_v7 }
  0xe2   : > { %v492_v13 = vmul.f32 0.5, %v491_v9 }
  0xe3   : > { %v483_v16 = vsub.f32 1.5, %v482_v11 }
  0xe4   : > { %v493_v19 = vsub.f32 1.5, %v492_v13  ;;  %v1336_v13 = vld [vmem:[%s1560_s7] ss:$8 sm:$0x3] }
  0xe5   : > { %v484_v20 = vmul.f32 %v1101_v3, %v483_v16  ;;  %v622_v14 = vperm.slane %v1336_v13, 0  ;;  %v623_v15 = vperm.slane %v1336_v13, 1 }
  0xe6   : > { %v494_v21 = vmul.f32 %v1103_v4, %v493_v19 }
  0xe7   : > { %v488_v25 = vsel %vm487_vm9, %v1101_v3, %v484_v20  ;;  %v601_v3 = vlaneseq }
  0xe8   : > { %v498_v23 = vsel %vm497_vm7, %v1103_v4, %v494_v21 }
  0xe9   : > { %v501_v24 = vrot.slane %v498_v23, 4  ;;  %v1324_v5 = vand.u32 127, %v601_v3 }
  0xeb   : > { %v502_v26 = vsel %vm412_vm2, %v488_v25, %v501_v24  ;;  %vm722_vm10 = vcmp.lt.s32.totalorder %v1324_v5, 2  ;;  %vm603_vm11 = vcmp.lt.s32.totalorder %v1324_v5, 34  ;;  %vm642_vm12 = vcmp.lt.s32.totalorder %v1324_v5, 32 }
  0xec   : > { %v504_v28 = vmul.f32 %v502_v26, %v1225_v45  ;;  %v1354_v26 = vld [vmem:[%s1560_s7 + $0x1] ss:$8 sm:$0x3]  ;;  %vm682_vm13 = vcmp.lt.s32.totalorder %v1324_v5, 30  ;;  %vm762_vm14 = vcmp.lt.s32.totalorder %v1324_v5, 126  ;;  %vm802_vm15 = vcmp.lt.s32.totalorder %v1324_v5, 98 }
  0xed   : > { %v663_v30 = vperm.slane %v1354_v26, 1 }
  0xee   : > { %v514_v31 = vmul.f32 %v512_v29, %v504_v28  ;;  %v662_v29 = vperm.slane %v1354_v26, 0 }
  0xf0   : > { %v524_v33 = vadd.f32 %v522_v32, %v514_v31 }
  0xf2   : > { %528 = vst [vmem:[#allocation1] ss:$2 sm:$0xff] %v524_v33 }
  0xf6   : > { %v610_v53 = vpop.permute.xlu2 %609 }
  0xf9   : > { %v529_v35 = vld.sshfl [vmem:[#allocation1] sm:$0xff pattern:$0x75316420]  ;;  %v530_v36 = vld.sshfl [vmem:[#allocation1 + $0x8] sm:$0xff pattern:$0x75316420] }
  0xfa   : > { %v533_v37 = vpack.c.bf16 %v529_v35, %v529_v35  ;;  %v534_v38 = vpack.c.bf16 %v530_v36, %v530_v36 }
  0xfc   : > { %v544_v40 = vsel %vm378_vm0, %v533_v37, 0  ;;  %v547_v41 = vsel %vm378_vm0, %v534_v38, 0  ;;  %vm842_vm0 = vcmp.lt.s32.totalorder %v1324_v5, 96 }
  0xfd   : > { %556 = vmatpush.bf16.msra.mxu2 %v544_v40  ;;  %570 = vmatpush.bf16.msra.mxu3 %v547_v41  ;;  %v1373_v40 = vld [vmem:[%s1560_s7 + $0x2] ss:$8 sm:$0x3] }
  0xff   : > { %v1291_v54 = vpop.permute.xlu2 %648 }
 0x100   : > { %1037 = vmatmul.msk.bf16.vlgmr.msra.gmra.mxu2 %vm374_vm1, %v1052_v42  ;;  %1038 = vmatmul.msk.bf16.vlgmr.msra.gmra.mxu3 %vm374_vm1, %v1052_v42  ;;  %vm882_vm1 = vcmp.lt.s32.totalorder %v1324_v5, 94 }
 0x10e   : > { %v1260_v45 = vpop.permute.xlu1 %581  ;;  %v1295_v56 = vpop.permute.xlu2 %732 }
 0x110   : > { %v1320_v1 = vpop.permute.xlu0 %652 }
 0x116   : > { %v1271_v49 = vpop.permute.xlu1 %586 }
 0x117   : > { %v1299_v57 = vpop.permute.xlu2 %772 }
 0x11e   : > { %v689_v7 = vpop.permute.xlu0 %688 }
 0x11f   : > { %v1302_v58 = vpop.permute.xlu1 %692 }
 0x120   : > { %v1305_v59 = vpop.permute.xlu2 %812 }
 0x128   : > { %v729_v60 = vpop.permute.xlu1 %728 }
 0x129   : > { %v1313_v61 = vpop.permute.xlu2 %852 }
 0x131   : > { %v1315_v62 = vpop.permute.xlu1 %768 }
 0x13a   : > { %v1322_v2 = vpop.permute.xlu1 %808 }
 0x143   : > { %v1326_v6 = vpop.permute.xlu1 %848 }
 0x183   : > { %v558_v46 = vpop.f32.mrf.mxu2  ;;  %v1262_v47 = vpop.f32.mrf.mxu3 }
 0x184   : > { %597 = vrot.lane.b32.xlu0 %v1262_v47, %s1122_s15  ;;  %634 = vrot.lane.b32.xlu1 %v558_v46, %s1123_s16  ;;  %v1268_v48 = vmul.f32 %v1260_v45, %v558_v46  ;;  %v590_v23 = vmul.f32 %v1260_v45, %v1262_v47  ;;  %v702_v45 = vperm.slane %v1373_v40, 0 }
 0x185   : > { %593 = vrot.lane.b32.xlu2 %v558_v46, %s1122_s15 }
 0x18b   : > { %v560_v50 = vpop.f32.mrf.mxu2  ;;  %v1282_v52 = vpop.f32.mrf.mxu3 }
 0x18c   : > { %638 = vrot.lane.b32.xlu0 %v1262_v47, %s1123_s16  ;;  %674 = vrot.lane.b32.xlu1 %v558_v46, %s1124_s17  ;;  %v1277_v51 = vmul.f32 %v1271_v49, %v560_v50 }
 0x18d   : > { %714 = vrot.lane.b32.xlu2 %v558_v46, %s1125_s18 }
 0x194   : > { %754 = vrot.lane.b32.xlu0 %v558_v46, %s1126_s19  ;;  %678 = vrot.lane.b32.xlu1 %v1262_v47, %s1124_s17 }
 0x195   : > { %718 = vrot.lane.b32.xlu2 %v1262_v47, %s1125_s18 }
 0x19c   : > { %794 = vrot.lane.b32.xlu0 %v558_v46, %s1127_s20  ;;  %599 = vrot.lane.b32.xlu1 %v1282_v52, %s1122_s15 }
 0x19d   : > { %758 = vrot.lane.b32.xlu2 %v1262_v47, %s1126_s19 }
 0x1a4   : > { %834 = vrot.lane.b32.xlu0 %v558_v46, %s1128_s21  ;;  %640 = vrot.lane.b32.xlu1 %v1282_v52, %s1123_s16 }
 0x1a5   : > { %798 = vrot.lane.b32.xlu2 %v1262_v47, %s1127_s20 }
 0x1ac   : > { %874 = vrot.lane.b32.xlu0 %v558_v46, %s1129_s22  ;;  %716 = vrot.lane.b32.xlu1 %v560_v50, %s1125_s18  ;;  %v703_v46 = vperm.slane %v1373_v40, 1 }
 0x1ad   : > { %838 = vrot.lane.b32.xlu2 %v1262_v47, %s1128_s21 }
 0x1b4   : > { %720 = vrot.lane.b32.xlu0 %v1282_v52, %s1125_s18  ;;  %756 = vrot.lane.b32.xlu1 %v560_v50, %s1126_s19 }
 0x1b5   : > { %595 = vrot.lane.b32.xlu2 %v560_v50, %s1122_s15 }
 0x1bc   : > { %760 = vrot.lane.b32.xlu0 %v1282_v52, %s1126_s19  ;;  %796 = vrot.lane.b32.xlu1 %v560_v50, %s1127_s20 }
 0x1bd   : > { %636 = vrot.lane.b32.xlu2 %v560_v50, %s1123_s16 }
 0x1c4   : > { %800 = vrot.lane.b32.xlu0 %v1282_v52, %s1127_s20  ;;  %836 = vrot.lane.b32.xlu1 %v560_v50, %s1128_s21  ;;  %s1051_s20 = sshll.u32 %s1564_s10, 5 }
 0x1c5   : > { %676 = vrot.lane.b32.xlu2 %v560_v50, %s1124_s17  ;;  %s365_s23 = scalar_lea.vmem %s1562_s9, %s1051_s20 }
 0x1cc   : > { %840 = vrot.lane.b32.xlu0 %v1282_v52, %s1128_s21  ;;  %876 = vrot.lane.b32.xlu1 %v560_v50, %s1129_s22 }
 0x1cd   : > { %680 = vrot.lane.b32.xlu2 %v1282_v52, %s1124_s17 }
 0x1d4   : > { %880 = vrot.lane.b32.xlu0 %v1282_v52, %s1129_s22  ;;  %888 = vperm.xlu1 %1095, %v1234_v10  }
 0x1d5   : > { %878 = vrot.lane.b32.xlu2 %v1262_v47, %s1129_s22 }
 0x1dd   : > { %892 = vperm.xlu2 %1096, %v1206_v8  }
 0x1df   : > { %v594_v0 = vpop.permute.xlu2 %593 }
 0x1e7   : > { %v715_v4 = vpop.permute.xlu2 %714 }
 0x1ef   : > { %v719_v9 = vpop.permute.xlu2 %718 }
 0x1f0   : > { %v723_v10 = vsel %vm722_vm10, %v715_v4, %v719_v9  ;;  %v725_v8 = vsel %vm722_vm10, %v719_v9, %v715_v4 }
 0x1f1   : > { %v735_v11 = vmul.f32 %v729_v60, %v725_v8  ;;  %v736_v12 = vmul.f32 %v729_v60, %v723_v10 }
 0x1f6   : > { %v598_v16 = vpop.permute.xlu0 %597  ;;  %v635_v17 = vpop.permute.xlu1 %634 }
 0x1f7   : > { %v604_v18 = vsel %vm603_vm11, %v594_v0, %v598_v16  ;;  %v606_v19 = vsel %vm603_vm11, %v598_v16, %v594_v0  ;;  %v759_v20 = vpop.permute.xlu2 %758 }
 0x1f8   : > { %v616_v21 = vmul.f32 %v610_v53, %v606_v19  ;;  %v617_v22 = vmul.f32 %v610_v53, %v604_v18  ;;  %v742_v53 = vperm.slane %v1379_v43, 0  ;;  %v1407_v19 = vld [vmem:[%s1560_s7 + $0x5] ss:$8 sm:$0x3] }
 0x1fa   : > { %v626_v24 = vmul.f32 %v622_v14, %v616_v21  ;;  %v627_v25 = vmul.f32 %v623_v15, %v617_v22  ;;  %v746_v9 = vmul.f32 %v742_v53, %v735_v11 }
 0x1fc   : > { %v630_v27 = vadd.f32 %v626_v24, %v1268_v48  ;;  %v631_v28 = vadd.f32 %v627_v25, %v590_v23 }
 0x1fe   : > { %v639_v31 = vpop.permute.xlu0 %638  ;;  %v675_v32 = vpop.permute.xlu1 %674 }
 0x1ff   : > { %v643_v33 = vsel %vm642_vm12, %v635_v17, %v639_v31  ;;  %v645_v34 = vsel %vm642_vm12, %v639_v31, %v635_v17  ;;  %v799_v35 = vpop.permute.xlu2 %798  ;;  %v823_v31 = vperm.slane %v1407_v19, 1 }
 0x200   : > { %v655_v36 = vmul.f32 %v1291_v54, %v645_v34  ;;  %v656_v37 = vmul.f32 %v1291_v54, %v643_v33  ;;  %v743_v54 = vperm.slane %v1379_v43, 1 }
 0x202   : > { %v666_v38 = vmul.f32 %v662_v29, %v655_v36  ;;  %v667_v39 = vmul.f32 %v663_v30, %v656_v37  ;;  %v747_v10 = vmul.f32 %v743_v54, %v736_v12 }
 0x204   : > { %v670_v41 = vadd.f32 %v666_v38, %v630_v27  ;;  %v671_v42 = vadd.f32 %v667_v39, %v631_v28  ;;  %v822_v28 = vperm.slane %v1407_v19, 0 }
 0x206   : > { %v755_v44 = vpop.permute.xlu0 %754  ;;  %v679_v47 = vpop.permute.xlu1 %678 }
 0x207   : > { %v683_v48 = vsel %vm682_vm13, %v675_v32, %v679_v47  ;;  %v685_v50 = vsel %vm682_vm13, %v679_v47, %v675_v32  ;;  %v839_v0 = vpop.permute.xlu2 %838  ;;  %v763_v11 = vsel %vm762_vm14, %v755_v44, %v759_v20  ;;  %v765_v12 = vsel %vm762_vm14, %v759_v20, %v755_v44 }
 0x208   : > { %v695_v55 = vmul.f32 %v689_v7, %v685_v50  ;;  %v696_v60 = vmul.f32 %v689_v7, %v683_v48  ;;  %v1402_v7 = vld [vmem:[%s1560_s7 + $0x4] ss:$8 sm:$0x3]  ;;  %v775_v32 = vmul.f32 %v1315_v62, %v763_v11  ;;  %v776_v33 = vmul.f32 %v1315_v62, %v765_v12 }
 0x209   : > { %v782_v25 = vperm.slane %v1402_v7, 0  ;;  %v783_v27 = vperm.slane %v1402_v7, 1 }
 0x20a   : > { %v706_v3 = vmul.f32 %v702_v45, %v695_v55  ;;  %v707_v4 = vmul.f32 %v703_v46, %v696_v60 }
 0x20b   : > { %v786_v39 = vmul.f32 %v782_v25, %v775_v32  ;;  %v787_v62 = vmul.f32 %v783_v27, %v776_v33 }
 0x20c   : > { %v710_v8 = vadd.f32 %v706_v3, %v670_v41  ;;  %v711_v16 = vadd.f32 %v707_v4, %v671_v42 }
 0x20e   : > { %v750_v17 = vadd.f32 %v746_v9, %v710_v8  ;;  %v751_v18 = vadd.f32 %v747_v10, %v711_v16  ;;  %v795_v21 = vpop.permute.xlu0 %794  ;;  %v600_v22 = vpop.permute.xlu1 %599 }
 0x20f   : > { %v803_v23 = vsel %vm802_vm15, %v795_v21, %v799_v35  ;;  %v805_v24 = vsel %vm802_vm15, %v799_v35, %v795_v21  ;;  %v1428_v35 = vld [vmem:[%s1560_s7 + $0x6] ss:$8 sm:$0x3]  ;;  %v596_v36 = vpop.permute.xlu2 %595 }
 0x210   : > { %v815_v20 = vmul.f32 %v1322_v2, %v803_v23  ;;  %v816_v34 = vmul.f32 %v1322_v2, %v805_v24  ;;  %v862_v37 = vperm.slane %v1428_v35, 0  ;;  %v863_v38 = vperm.slane %v1428_v35, 1 }
 0x211   : > { %v790_v50 = vadd.f32 %v786_v39, %v750_v17  ;;  %v791_v55 = vadd.f32 %v787_v62, %v751_v18  ;;  %v605_v32 = vsel %vm603_vm11, %v596_v36, %v600_v22  ;;  %v607_v33 = vsel %vm603_vm11, %v600_v22, %v596_v36 }
 0x212   : > { %v826_v2 = vmul.f32 %v822_v28, %v815_v20  ;;  %v827_v41 = vmul.f32 %v823_v31, %v816_v34  ;;  %v618_v62 = vmul.f32 %v1317_v63, %v607_v33 }
 0x214   : > { %v830_v4 = vadd.f32 %v826_v2, %v790_v50  ;;  %v831_v9 = vadd.f32 %v827_v41, %v791_v55  ;;  %v619_v2 = vmul.f32 %v1317_v63, %v605_v32  ;;  %v628_v50 = vmul.f32 %v622_v14, %v618_v62 }
 0x216   : > { %v835_v42 = vpop.permute.xlu0 %834  ;;  %v641_v44 = vpop.permute.xlu1 %640 }
 0x217   : > { %v843_v47 = vsel %vm842_vm0, %v835_v42, %v839_v0  ;;  %v845_v48 = vsel %vm842_vm0, %v839_v0, %v835_v42  ;;  %v637_v11 = vpop.permute.xlu2 %636 }
 0x218   : > { %v855_v60 = vmul.f32 %v1326_v6, %v843_v47  ;;  %v856_v3 = vmul.f32 %v1326_v6, %v845_v48  ;;  %v644_v34 = vsel %vm642_vm12, %v637_v11, %v641_v44  ;;  %v646_v39 = vsel %vm642_vm12, %v641_v44, %v637_v11 }
 0x219   : > { %v657_v47 = vmul.f32 %v1320_v1, %v646_v39  ;;  %v658_v22 = vmul.f32 %v1320_v1, %v644_v34  ;;  %v629_v44 = vmul.f32 %v623_v15, %v619_v2 }
 0x21a   : > { %v866_v10 = vmul.f32 %v862_v37, %v855_v60  ;;  %v867_v8 = vmul.f32 %v863_v38, %v856_v3  ;;  %v592_v60 = vmul.f32 %v1271_v49, %v1282_v52  ;;  %v632_v49 = vadd.f32 %v628_v50, %v1277_v51 }
 0x21b   : > { %v668_v3 = vmul.f32 %v662_v29, %v657_v47  ;;  %v669_v1 = vmul.f32 %v663_v30, %v658_v22 }
 0x21c   : > { %v1451_v16 = vadd.f32 %v866_v10, %v830_v4  ;;  %v1453_v21 = vadd.f32 %v867_v8, %v831_v9  ;;  %v633_v52 = vadd.f32 %v629_v44, %v592_v60 }
 0x21d   : > { %v672_v11 = vadd.f32 %v668_v3, %v632_v49 }
 0x21e   : > { %v1455_v0 = vpop.permute.xlu0 %874  ;;  %v717_v17 = vpop.permute.xlu1 %716  ;;  %v673_v51 = vadd.f32 %v669_v1, %v633_v52 }
 0x21f   : > { %v677_v23 = vpop.permute.xlu2 %676 }
 0x226   : > { %v721_v18 = vpop.permute.xlu0 %720  ;;  %v757_v12 = vpop.permute.xlu1 %756 }
 0x227   : > { %v681_v20 = vpop.permute.xlu2 %680  ;;  %v724_v4 = vsel %vm722_vm10, %v717_v17, %v721_v18  ;;  %v726_v13 = vsel %vm722_vm10, %v721_v18, %v717_v17 }
 0x228   : > { %v684_v41 = vsel %vm682_vm13, %v677_v23, %v681_v20  ;;  %v686_v42 = vsel %vm682_vm13, %v681_v20, %v677_v23  ;;  %v737_v29 = vmul.f32 %v1295_v56, %v726_v13  ;;  %v738_v30 = vmul.f32 %v1295_v56, %v724_v4 }
 0x229   : > { %v697_v63 = vmul.f32 %v1302_v58, %v686_v42  ;;  %v698_v55 = vmul.f32 %v1302_v58, %v684_v41 }
 0x22a   : > { %v748_v32 = vmul.f32 %v742_v53, %v737_v29 }
 0x22b   : > { %v708_v15 = vmul.f32 %v702_v45, %v697_v63  ;;  %v709_v26 = vmul.f32 %v703_v46, %v698_v55 }
 0x22d   : > { %v713_v23 = vadd.f32 %v709_v26, %v673_v51 }
 0x22e   : > { %v761_v6 = vpop.permute.xlu0 %760  ;;  %v797_v24 = vpop.permute.xlu1 %796 }
 0x22f   : > { %v764_v14 = vsel %vm762_vm14, %v757_v12, %v761_v6  ;;  %v766_v58 = vsel %vm762_vm14, %v761_v6, %v757_v12  ;;  %v879_v9 = vpop.permute.xlu2 %878  ;;  %v712_v12 = vadd.f32 %v708_v15, %v672_v11 }
 0x230   : > { %v777_v17 = vmul.f32 %v1299_v57, %v764_v14  ;;  %v778_v45 = vmul.f32 %v1299_v57, %v766_v58  ;;  %v749_v57 = vmul.f32 %v743_v54, %v738_v30 }
 0x231   : > { %v752_v53 = vadd.f32 %v748_v32, %v712_v12 }
 0x232   : > { %v788_v33 = vmul.f32 %v782_v25, %v777_v17  ;;  %v789_v20 = vmul.f32 %v783_v27, %v778_v45  ;;  %v753_v43 = vadd.f32 %v749_v57, %v713_v23  ;;  %v883_v27 = vsel %vm882_vm1, %v1455_v0, %v879_v9 }
 0x234   : > { %v792_v41 = vadd.f32 %v788_v33, %v752_v53  ;;  %v793_v42 = vadd.f32 %v789_v20, %v753_v43 }
 0x236   : > { %v801_v36 = vpop.permute.xlu0 %800  ;;  %v837_v48 = vpop.permute.xlu1 %836 }
 0x237   : > { %v804_v10 = vsel %vm802_vm15, %v797_v24, %v801_v36  ;;  %v806_v8 = vsel %vm802_vm15, %v801_v36, %v797_v24  ;;  %v893_v2 = vpop.permute.xlu2 %892 }
 0x238   : > { %v817_v6 = vmul.f32 %v1305_v59, %v804_v10  ;;  %v818_v24 = vmul.f32 %v1305_v59, %v806_v8  ;;  %v1045_v59 = vld [vmem:[%s1560_s7 + $0x7] ss:$8 sm:$0x3] }
 0x239   : > { %v902_v62 = vperm.slane %v1045_v59, 0  ;;  %v903_v7 = vperm.slane %v1045_v59, 1 }
 0x23a   : > { %v828_v54 = vmul.f32 %v822_v28, %v817_v6  ;;  %v829_v25 = vmul.f32 %v823_v31, %v818_v24 }
 0x23c   : > { %v832_v50 = vadd.f32 %v828_v54, %v792_v41  ;;  %v833_v44 = vadd.f32 %v829_v25, %v793_v42 }
 0x23e   : > { %v841_v18 = vpop.permute.xlu0 %840  ;;  %v877_v40 = vpop.permute.xlu1 %876 }
 0x23f   : > { %v844_v46 = vsel %vm842_vm0, %v837_v48, %v841_v18  ;;  %v846_v56 = vsel %vm842_vm0, %v841_v18, %v837_v48 }
 0x240   : > { %v857_v34 = vmul.f32 %v1313_v61, %v844_v46  ;;  %v858_v39 = vmul.f32 %v1313_v61, %v846_v56  ;;  %v885_v61 = vsel %vm882_vm1, %v879_v9, %v1455_v0 }
 0x242   : > { %v868_v47 = vmul.f32 %v862_v37, %v857_v34  ;;  %v869_v19 = vmul.f32 %v863_v38, %v858_v39 }
 0x244   : > { %v873_v35 = vadd.f32 %v869_v19, %v833_v44  ;;  %v872_v38 = vadd.f32 %v868_v47, %v832_v50 }
 0x246   : > { %v881_v28 = vpop.permute.xlu0 %880  ;;  %v889_v31 = vpop.permute.xlu1 %888 }
 0x247   : > { %v895_v22 = vmul.f32 %v889_v31, %v883_v27  ;;  %v896_v36 = vmul.f32 %v889_v31, %v885_v61  ;;  %v884_v48 = vsel %vm882_vm1, %v877_v40, %v881_v28  ;;  %v886_v0 = vsel %vm882_vm1, %v881_v28, %v877_v40 }
 0x248   : > { %v897_v63 = vmul.f32 %v893_v2, %v884_v48  ;;  %v898_v55 = vmul.f32 %v893_v2, %v886_v0 }
 0x249   : > { %v906_v60 = vmul.f32 %v902_v62, %v895_v22  ;;  %v907_v37 = vmul.f32 %v903_v7, %v896_v36 }
 0x24a   : > { %v908_v3 = vmul.f32 %v902_v62, %v897_v63  ;;  %v909_v1 = vmul.f32 %v903_v7, %v898_v55 }
 0x24b   : > { %v910_v4 = vadd.f32 %v906_v60, %v1451_v16  ;;  %v911_v13 = vadd.f32 %v907_v37, %v1453_v21 }
 0x24c   : > { %v912_v5 = vadd.f32 %v908_v3, %v872_v38  ;;  %v913_v14 = vadd.f32 %v909_v1, %v873_v35 }
 0x24d   : > { %914 = vst [vmem:[%s365_s23] sm:$0xff] %v910_v4 }
 0x24e   : > { %915 = vst [vmem:[%s365_s23 + $0x8] sm:$0xff] %v911_v13 }
 0x24f   : > { %916 = vst [vmem:[%s365_s23 + $0x10] sm:$0xff] %v912_v5 }
 0x250   : > { %917 = vst [vmem:[%s365_s23 + $0x18] sm:$0xff] %v913_v14 }
 0x251 PF: > { %s20_s30 = sadd.s32 1, %s1110_s30  }
 0x252   : > { %p17_p4 = scmp.ge.s32.totalorder %s20_s30, 4  }
 0x254   :  { %19 = sbr.rel (!%p17_p4) target bundleno = 1 (0x1), region = 104 }

// kernel: reverse.3
= control target key start
LH: loop header
LB: loop body
LE: loop exit
PB: predicated region body
PF: predicated region fallthrough
CT: control target
= control target key end

     0   :  { %s344_s0 = inlined_call_operand.vmem [shape: f32[2,16,16,7], index: 0, kind: input, shape index: {}]   ;;  %s345_s1 = inlined_call_operand.vmem [shape: f32[2,16,16,7], index: 1, kind: output, shape index: {}]  }
   0x1   :  { %v112_v0 = vld [vmem:[%s344_s0 + $0x60] sm:$0xff]  ;;  %v113_v1 = vld [vmem:[%s344_s0 + $0xd0] sm:$0xff]  ;;  %v138_v14 = vld [vmem:[%s344_s0 + $0x68] sm:$0xff] }
   0x2   :  { %v115_v2 = vld [vmem:[%s344_s0 + $0x50] sm:$0xff]  ;;  %4 = vst [vmem:[%s345_s1] sm:$0xff] %v112_v0  ;;  %v117_v3 = vld [vmem:[%s344_s0 + $0xc0] sm:$0xff]  ;;  %v140_v15 = vld [vmem:[%s344_s0 + $0xd8] sm:$0xff] }
   0x3   :  { %114 = vst [vmem:[%s345_s1 + $0x70] sm:$0xff] %v113_v1  ;;  %v119_v4 = vld [vmem:[%s344_s0 + $0x40] sm:$0xff]  ;;  %v121_v5 = vld [vmem:[%s344_s0 + $0xb0] sm:$0xff]  ;;  %v142_v16 = vld [vmem:[%s344_s0 + $0x58] sm:$0xff] }
   0x4   :  { %116 = vst [vmem:[%s345_s1 + $0x10] sm:$0xff] %v115_v2  ;;  %v123_v6 = vld [vmem:[%s344_s0 + $0x30] sm:$0xff]  ;;  %v125_v7 = vld [vmem:[%s344_s0 + $0xa0] sm:$0xff]  ;;  %v144_v17 = vld [vmem:[%s344_s0 + $0xc8] sm:$0xff] }
   0x5   :  { %118 = vst [vmem:[%s345_s1 + $0x80] sm:$0xff] %v117_v3  ;;  %v127_v8 = vld [vmem:[%s344_s0 + $0x20] sm:$0xff]  ;;  %v129_v9 = vld [vmem:[%s344_s0 + $0x90] sm:$0xff]  ;;  %v146_v18 = vld [vmem:[%s344_s0 + $0x48] sm:$0xff] }
   0x6   :  { %120 = vst [vmem:[%s345_s1 + $0x20] sm:$0xff] %v119_v4  ;;  %v131_v10 = vld [vmem:[%s344_s0 + $0x10] sm:$0xff]  ;;  %v133_v11 = vld [vmem:[%s344_s0 + $0x80] sm:$0xff]  ;;  %v148_v19 = vld [vmem:[%s344_s0 + $0xb8] sm:$0xff] }
   0x7   :  { %122 = vst [vmem:[%s345_s1 + $0x90] sm:$0xff] %v121_v5  ;;  %v49_v12 = vld [vmem:[%s344_s0] sm:$0xff]  ;;  %v136_v13 = vld [vmem:[%s344_s0 + $0x70] sm:$0xff]  ;;  %v150_v20 = vld [vmem:[%s344_s0 + $0x38] sm:$0xff] }
   0x8   :  { %124 = vst [vmem:[%s345_s1 + $0x30] sm:$0xff] %v123_v6  ;;  %v152_v21 = vld [vmem:[%s344_s0 + $0xa8] sm:$0xff]  ;;  %v156_v23 = vld [vmem:[%s344_s0 + $0x98] sm:$0xff] }
   0x9   :  { %126 = vst [vmem:[%s345_s1 + $0xa0] sm:$0xff] %v125_v7  ;;  %v154_v22 = vld [vmem:[%s344_s0 + $0x28] sm:$0xff]  ;;  %v158_v24 = vld [vmem:[%s344_s0 + $0x18] sm:$0xff] }
   0xa   :  { %128 = vst [vmem:[%s345_s1 + $0x40] sm:$0xff] %v127_v8  ;;  %v160_v25 = vld [vmem:[%s344_s0 + $0x88] sm:$0xff]  ;;  %v164_v27 = vld [vmem:[%s344_s0 + $0x78] sm:$0xff] }
   0xb   :  { %130 = vst [vmem:[%s345_s1 + $0xb0] sm:$0xff] %v129_v9  ;;  %v162_v26 = vld [vmem:[%s344_s0 + $0x8] sm:$0xff] }
   0xc   :  { %132 = vst [vmem:[%s345_s1 + $0x50] sm:$0xff] %v131_v10 }
   0xd   :  { %134 = vst [vmem:[%s345_s1 + $0xc0] sm:$0xff] %v133_v11 }
   0xe   :  { %135 = vst [vmem:[%s345_s1 + $0x60] sm:$0xff] %v49_v12 }
   0xf   :  { %137 = vst [vmem:[%s345_s1 + $0xd0] sm:$0xff] %v136_v13 }
  0x10   :  { %139 = vst [vmem:[%s345_s1 + $0x8] sm:$0xff] %v138_v14 }
  0x11   :  { %141 = vst [vmem:[%s345_s1 + $0x78] sm:$0xff] %v140_v15 }
  0x12   :  { %143 = vst [vmem:[%s345_s1 + $0x18] sm:$0xff] %v142_v16 }
  0x13   :  { %145 = vst [vmem:[%s345_s1 + $0x88] sm:$0xff] %v144_v17 }
  0x14   :  { %147 = vst [vmem:[%s345_s1 + $0x28] sm:$0xff] %v146_v18 }
  0x15   :  { %149 = vst [vmem:[%s345_s1 + $0x98] sm:$0xff] %v148_v19 }
  0x16   :  { %151 = vst [vmem:[%s345_s1 + $0x38] sm:$0xff] %v150_v20 }
  0x17   :  { %153 = vst [vmem:[%s345_s1 + $0xa8] sm:$0xff] %v152_v21 }
  0x18   :  { %155 = vst [vmem:[%s345_s1 + $0x48] sm:$0xff] %v154_v22 }
  0x19   :  { %157 = vst [vmem:[%s345_s1 + $0xb8] sm:$0xff] %v156_v23 }
  0x1a   :  { %159 = vst [vmem:[%s345_s1 + $0x58] sm:$0xff] %v158_v24 }
  0x1b   :  { %161 = vst [vmem:[%s345_s1 + $0xc8] sm:$0xff] %v160_v25 }
  0x1c   :  { %163 = vst [vmem:[%s345_s1 + $0x68] sm:$0xff] %v162_v26 }
  0x1d   :  { %165 = vst [vmem:[%s345_s1 + $0xd8] sm:$0xff] %v164_v27 }

// kernel: _lambda_.7
= control target key start
LH: loop header
LB: loop body
LE: loop exit
PB: predicated region body
PF: predicated region fallthrough
CT: control target
= control target key end

     0   :  { %s542_s12 = smov 0   ;;  %s544_s13 = smov 0   ;;  %s592_s0 = inlined_call_operand.vmem [shape: f32[2,4,256], index: 0, kind: input, shape index: {}, may-alias: {0,3}]   ;;  %s593_s1 = inlined_call_operand.vmem [shape: bf16[2,16,256], index: 1, kind: input, shape index: {}]   ;;  %s594_s2 = inlined_call_operand.vmem [shape: bf16[4,8], index: 2, kind: input, shape index: {}]   ;;  %s595_s3 = inlined_call_operand.vmem [shape: f32[2,4,256], index: 3, kind: output, shape index: {}, may-alias: {0,3}]  }
   0x1   :  { %s546_s14 = smov 0  }
   0x2 LB: > { %s25_s15 = sadd.s32 1, %s516_s13  ;;  %p452_p0 = scmp.ge.s32.totalorder %s520_s14, 1  ;;  %s520_s14 = sphi %s546_s14, %s13_s14   ;;  %s516_s13 = sphi %s544_s13, %s597_s13   ;;  %s512_s12 = sphi %s542_s12, %s596_s12  }
   0x3   : > { %p27_p1 = scmp.ge.s32.totalorder %s25_s15, 2  ;;  %p175_p2 = scmp.lt.s32.totalorder %s520_s14, 3 }
   0x5   : > { %s599_s15 = smov (%p27_p1, %s25_s15), 0  ;;  %p176_p3 = pnand %p452_p0, %p175_p2 }
   0x6   : > { %p217_p4 = scmp.lt.s32.totalorder (!%p176_p3), %s512_s12, 1 }
   0x7   : > { %179 = sbr.rel (%p176_p3) target bundleno = 193 (0xc1), region = 32 }
   0xc   : > { %s601_s12 = smov (!%p217_p4, %s512_s12), 1  ;;  %vm302_vm8 = vcmask 1043456   ;;  %v295_v42 = vld [vmem:[%s594_s2] sm:$0x3]  ;;  %vm298_vm9 = vcmask 64512  }
   0xd   : > { %s464_s16 = sshll.u32 %s601_s12, 4  ;;  %s463_s22 = sshll.u32 %s601_s12, 3 }
   0xe   : > { %s566_s19 = scalar_lea.vmem %s593_s1, %s464_s16  ;;  %s224_s25 = scalar_lea.vmem %s592_s0, %s463_s22 }
   0xf   : > { %v247_v0 = vld [vmem:[%s566_s19] sm:$0xff]  ;;  %v248_v22 = vld [vmem:[%s566_s19 + $0x8] sm:$0xff]  ;;  %s244_s28 = scalar_lea.vmem %s595_s3, %s463_s22 }
  0x10   : > { %v249_v1 = vunpack.c.l.bf16 %v247_v0  ;;  %v250_v2 = vunpack.c.h.bf16 %v247_v0  ;;  %v251_v28 = vunpack.c.l.bf16 %v248_v22  ;;  %v252_v31 = vunpack.c.h.bf16 %v248_v22  ;;  %v335_v45 = vld [vmem:[%s224_s25] sm:$0xff] }
  0x12   : > { %v253_v3 = vsub.f32 0.0, %v249_v1  ;;  %v254_v4 = vsub.f32 0.0, %v250_v2 }
  0x14   : > { %v255_v5 = vmul.f32 1.442695, %v253_v3  ;;  %v257_v6 = vmul.f32 1.442695, %v254_v4 }
  0x16   : > { %490 = vpow2.f32 %v255_v5 }
  0x17   : > { %492 = vpow2.f32 %v257_v6 }
  0x1c   : > { %v491_v7 = vpop.eup %490 }
  0x1d   : > { %v493_v8 = vpop.eup %492  ;;  %v259_v9 = vadd.f32 1.0, %v491_v7 }
  0x1e   : > { %v260_v10 = vadd.f32 1.0, %v493_v8 }
  0x1f   : > { %494 = vrcp.f32 %v259_v9  ;;  %vm266_vm0 = vweird.f32 %v259_v9  ;;  %v272_v14 = vand.u32 2147483648, %v259_v9  ;;  %v270_v17 = vand.u32 2147483647, %v259_v9 }
  0x20   : > { %496 = vrcp.f32 %v260_v10  ;;  %v287_v18 = vand.u32 2147483648, %v260_v10  ;;  %vm281_vm2 = vweird.f32 %v260_v10  ;;  %v285_v20 = vand.u32 2147483647, %v260_v10 }
  0x21   : > { %v273_v23 = vor.u32 1.1754944e-38, %v272_v14  ;;  %vm271_vm5 = vcmp.eq.f32.partialorder %v270_v17, 8.507059e+37 }
  0x22   : > { %v288_v26 = vor.u32 1.1754944e-38, %v287_v18  ;;  %vm286_vm7 = vcmp.eq.f32.partialorder %v285_v20, 8.507059e+37 }
  0x25   : > { %v495_v11 = vpop.eup %494 }
  0x26   : > { %v497_v12 = vpop.eup %496  ;;  %v262_v13 = vmul.f32 %v495_v11, %v259_v9  ;;  %vm267_vm1 = vweird.f32 %v495_v11 }
  0x27   : > { %v277_v15 = vmul.f32 %v497_v12, %v260_v10  ;;  %vm282_vm3 = vweird.f32 %v497_v12  ;;  %vm268_vm4 = vmor %vm266_vm0, %vm267_vm1 }
  0x28   : > { %v263_v16 = vsub.f32 1.0, %v262_v13  ;;  %vm283_vm6 = vmor %vm281_vm2, %vm282_vm3 }
  0x29   : > { %v278_v19 = vsub.f32 1.0, %v277_v15 }
  0x2a   : > { %v264_v21 = vmul.f32 %v495_v11, %v263_v16 }
  0x2b   : > { %v279_v24 = vmul.f32 %v497_v12, %v278_v19 }
  0x2c   : > { %v265_v25 = vadd.f32 %v495_v11, %v264_v21 }
  0x2d   : > { %v280_v27 = vadd.f32 %v497_v12, %v279_v24 }
  0x2e   : > { %v269_v29 = vsel %vm268_vm4, %v495_v11, %v265_v25 }
  0x2f   : > { %v274_v30 = vsel %vm271_vm5, %v273_v23, %v269_v29  ;;  %v284_v32 = vsel %vm283_vm6, %v497_v12, %v280_v27 }
  0x30   : > { %v291_v33 = vmul.f32 %v274_v30, %v249_v1  ;;  %v289_v34 = vsel %vm286_vm7, %v288_v26, %v284_v32 }
  0x31   : > { %v292_v35 = vmul.f32 %v289_v34, %v250_v2 }
  0x32   : > { %v293_v36 = vmul.f32 %v291_v33, %v251_v28 }
  0x33   : > { %v294_v37 = vmul.f32 %v292_v35, %v252_v31 }
  0x34   : > { %v296_v38 = vpack.c.bf16 %v293_v36, %v293_v36 }
  0x35   : > { %v297_v39 = vpack.c.bf16 %v294_v37, %v294_v37 }
  0x36   : > { %v304_v40 = vsel %vm302_vm8, %v296_v38, 0 }
  0x37   : > { %316 = vmatpush.bf16.msra.mxu0 %v304_v40  ;;  %v307_v41 = vsel %vm302_vm8, %v297_v39, 0 }
  0x38   : > { %329 = vmatpush.bf16.msra.mxu1 %v307_v41 }
  0x3a   : > { %459 = vmatmul.msk.bf16.vlgmr.msra.gmra.mxu0 %vm298_vm9, %v295_v42 }
  0x3b   : > { %460 = vmatmul.msk.bf16.vlgmr.msra.gmra.mxu1 %vm298_vm9, %v295_v42 }
  0xb7   : > { %v318_v43 = vpop.f32.mrf.mxu0 }
  0xb8   : > { %v331_v44 = vpop.f32.mrf.mxu1 }
  0xb9   : > { %v338_v46 = vrot.slane %v331_v44, 4 }
  0xbb   : > { %v339_v47 = vsel %vm302_vm8, %v318_v43, %v338_v46 }
  0xbc   : > { %v341_v48 = vadd.f32 %v339_v47, %v335_v45 }
  0xbe   : > { %342 = vst [vmem:[%s244_s28] sm:$0xff] %v341_v48 }
  0xbf   : > { %v320_v49 = vpop.f32.mrf.mxu0 }
  0xc0   : > { %v333_v50 = vpop.f32.mrf.mxu1 }
  0xc1 PF: > { %s13_s14 = sadd.s32 1, %s520_s14   ;;  %s596_s12 = smov %s516_s13 }
  0xc2   : > { %p10_p5 = scmp.ge.s32.totalorder %s13_s14, 4   ;;  %s597_s13 = smov %s599_s15 }
  0xc4   :  { %12 = sbr.rel (!%p10_p5) target bundleno = 2 (0x2), region = 65 }

</bundles_post_ra>
